<compile_context>
chip_gen: v6e
topology: v6e:2x2x1
jax: 0.10.0
libtpu: 0.0.40
codegen_flags: <defaults>
</compile_context>

<pallas_src>
import functools
import math

import jax
import jax.numpy as jnp
from jax.experimental import pallas as pl
from jax.experimental.pallas import tpu as pltpu


LANE_PAD = 128    # lane-dense output width for the tiny actor/critic heads
NEG_BIG = -1e30   # softmax padding bias (exp underflows to exactly 0)


# --------------------------------------------------------------------------------------
# Fused forward kernel: conv1 GEMM -> conv2 -> fc -> actor (log-softmax) + critic.
# All row/lane indices are static; only ref loads/stores, dots and elementwise ops.
# Activation row layout is position-major, batch-minor:  row = p * B + b.
# --------------------------------------------------------------------------------------

def _fused_forward_kernel(B, OH1, OW1, OH2, OW2, K2, S2, C1, C2, P2, A_HID, C_HID,
                          pat1_ref, w1_ref, b1_ref, w2_ref, b2_ref,
                          wfc_ref, bfc_ref, wac1_ref, bac1_ref,
                          wa2_ref, ba2_ref, wc2_ref, bc2_ref,
                          out_ref,
                          h1_s, g_s, fcin_s):
    f32 = jnp.float32

    # ---- conv1: im2col GEMM + ReLU (patches built by the wrapper from the raw obs) ----
    h1 = jnp.dot(pat1_ref[...], w1_ref[...], preferred_element_type=f32) + b1_ref[...]
    h1_s[...] = jnp.maximum(h1, 0.0)          # (B*OH1*OW1, C1); row = (oh1*OW1+ow1)*B + b

    # ---- conv2: sum over the K2*K2 kernel taps; each tap gathers contiguous row blocks
    #      of B rows from h1 into a staging buffer, then one (B*P2, C1) @ (C1, C2) GEMM --
    acc2 = None
    for kh in range(K2):
        for kw in range(K2):
            for oh in range(OH2):
                for ow in range(OW2):
                    src = ((oh * S2 + kh) * OW1 + (ow * S2 + kw)) * B
                    dst = (oh * OW2 + ow) * B
                    g_s[dst:dst + B, :] = h1_s[src:src + B, :]
            base = (kh * K2 + kw) * C1
            term = jnp.dot(g_s[...], w2_ref[base:base + C1, :],
                           preferred_element_type=f32)
            acc2 = term if acc2 is None else acc2 + term
    h2 = jnp.maximum(acc2 + b2_ref[...], 0.0)             # (B*P2, C2); row = p*B + b

    # ---- scatter conv2's position blocks into the fc input layout (B, P2*C2).
    #      Column offsets are multiples of C2 (=128 lanes) -> lane-aligned stores. ------
    for p in range(P2):
        fcin_s[:, p * C2:(p + 1) * C2] = h2[p * B:(p + 1) * B, :]

    # ---- fc + ReLU: single GEMM; torch's NCHW flatten folded into pre-permuted rows ----
    encoded = jnp.maximum(
        jnp.dot(fcin_s[...], wfc_ref[...], preferred_element_type=f32) + bfc_ref[...],
        0.0)                                               # (B, hidden)

    def _ln_relu(y):  # LayerNorm(elementwise_affine=False, eps=1e-5) -> ReLU, f32 math
        mean = jnp.mean(y, axis=-1, keepdims=True)
        var = jnp.mean(jnp.square(y - mean), axis=-1, keepdims=True)
        return jnp.maximum((y - mean) * jax.lax.rsqrt(var + 1e-5), 0.0)

    # ---- actor & critic first layers fused into one GEMM (shared `encoded` input) -----
    ac1 = jnp.dot(encoded, wac1_ref[...], preferred_element_type=f32) + bac1_ref[...]
    a1 = _ln_relu(ac1[:, :A_HID])                          # actor hidden (B, 128)
    c1 = _ln_relu(ac1[:, A_HID:])                          # critic hidden (B, 512)

    # ---- actor: Linear -> log-softmax (lane-padded to 128; pads carry -1e30 bias) ------
    logits = jnp.dot(a1, wa2_ref[...], preferred_element_type=f32) + ba2_ref[...]
    m = jnp.max(logits, axis=-1, keepdims=True)
    lse = m + jnp.log(jnp.sum(jnp.exp(logits - m), axis=-1, keepdims=True))
    out_ref[:, :LANE_PAD] = logits - lse

    # ---- critic: Linear (lane-padded to 128; column 0 of this slab is the value) -------
    out_ref[:, LANE_PAD:] = (jnp.dot(c1, wc2_ref[...], preferred_element_type=f32)
                             + bc2_ref[...])


# --------------------------------------------------------------------------------------
# Wrapper-side im2col on the raw observation only (feeds the single fused pallas_call).
# --------------------------------------------------------------------------------------

def _im2col_nchw(x, k, s):
    """(B, C, H, W) -> (OH*OW*B, C*k*k).  Rows are position-major, batch-minor
    (row = (oh*OW+ow)*B + b); columns are (C, kh, kw) row-major, matching torch's
    Conv2d weight.reshape(O, -1)."""
    B, C, H, W = x.shape
    OH, OW = (H - k) // s + 1, (W - k) // s + 1
    cols = []
    for oh in range(OH):
        for ow in range(OW):
            patch = x[:, :, oh * s:oh * s + k, ow * s:ow * s + k]
            cols.append(patch.reshape(B, C * k * k))
    return jnp.stack(cols, axis=0).reshape(OH * OW * B, C * k * k)


# --------------------------------------------------------------------------------------
# Deterministic parameter init mirroring the torch schemes (xavier-uniform w/ relu gain
# for the encoder, orthogonal w/ relu gain for actor & critic, zero biases).  Weights are
# stored directly in the layouts the fused kernel consumes (no per-forward transposes).
# Also returns the raw torch-layout weights for the pure-JAX reference check.
# --------------------------------------------------------------------------------------

def _xavier_uniform(key, shape, fan_in, fan_out, gain):
    bound = gain * math.sqrt(6.0 / (fan_in + fan_out))
    return jax.random.uniform(key, shape, jnp.float32, -bound, bound)


def init_params(key, obs_dim, action_dim, hidden_dim=1024, channel_scale=4):
    C, H, W = obs_dim
    gain = math.sqrt(2.0)  # relu gain
    # SmallImpalaCNN kernel/stride selection logic
    k1, s1 = (8, 4) if H > 9 else (4, 2)
    k2, s2 = (4, 2) if W > 9 else (2, 1)
    c1, c2 = 16 * channel_scale, 32 * channel_scale          # 64, 128
    oh1, ow1 = (H - k1) // s1 + 1, (W - k1) // s1 + 1
    oh2, ow2 = (oh1 - k2) // s2 + 1, (ow1 - k2) // s2 + 1
    p2 = oh2 * ow2
    in_features = c2 * p2
    a_hid, c_hid = 128, 512
    assert action_dim <= LANE_PAD

    ks = jax.random.split(key, 7)
    ortho = jax.nn.initializers.orthogonal(scale=gain)

    # Draw in torch layouts (same distributions as the nn.Module init), then re-layout once.
    w_conv1 = _xavier_uniform(ks[0], (c1, C, k1, k1), C * k1 * k1, c1 * k1 * k1, gain)
    w_conv2 = _xavier_uniform(ks[1], (c2, c1, k2, k2), c1 * k2 * k2, c2 * k2 * k2, gain)
    w_fc = _xavier_uniform(ks[2], (hidden_dim, in_features), in_features, hidden_dim, gain)
    w_a1 = ortho(ks[3], (a_hid, hidden_dim), jnp.float32)
    w_a2 = ortho(ks[4], (action_dim, a_hid), jnp.float32)
    w_c1 = ortho(ks[5], (c_hid, hidden_dim), jnp.float32)
    w_c2 = ortho(ks[6], (1, c_hid), jnp.float32)

    params = {
        # conv1 weight as (C*k1*k1, c1); patch columns are (C, kh, kw) row-major.
        "w1": w_conv1.reshape(c1, C * k1 * k1).T,
        "b1": jnp.zeros((1, c1), jnp.float32),
        # conv2 weight rows ordered (kh, kw, c1) to match the kernel's per-tap GEMMs.
        "w2": jnp.transpose(w_conv2, (2, 3, 1, 0)).reshape(k2 * k2 * c1, c2),
        "b2": jnp.zeros((1, c2), jnp.float32),
        # fc weight rows permuted from torch's NCHW flatten order (c2, p) to (p, c2).
        "wfc": jnp.transpose(w_fc.reshape(hidden_dim, c2, p2), (2, 1, 0)).reshape(p2 * c2, hidden_dim),
        "bfc": jnp.zeros((1, hidden_dim), jnp.float32),
        # fused actor/critic first layers: columns [0:128]=actor, [128:640]=critic.
        "wac1": jnp.concatenate([w_a1.T, w_c1.T], axis=1),
        "bac1": jnp.zeros((1, a_hid + c_hid), jnp.float32),
        # actor head lane-padded to 128; pad biases -1e30 so log-softmax ignores them.
        "wa2": jnp.zeros((a_hid, LANE_PAD), jnp.float32).at[:, :action_dim].set(w_a2.T),
        "ba2": jnp.full((1, LANE_PAD), NEG_BIG, jnp.float32).at[0, :action_dim].set(0.0),
        # critic head lane-padded to 128; column 0 is the value.
        "wc2": jnp.zeros((c_hid, LANE_PAD), jnp.float32).at[:, :1].set(w_c2.T),
        "bc2": jnp.zeros((1, LANE_PAD), jnp.float32),
    }
    raw = dict(w_conv1=w_conv1, w_conv2=w_conv2, w_fc=w_fc,
               w_a1=w_a1, w_a2=w_a2, w_c1=w_c1, w_c2=w_c2)
    meta = dict(C=C, H=H, W=W, k1=k1, s1=s1, k2=k2, s2=s2, c1=c1, c2=c2,
                oh1=oh1, ow1=ow1, oh2=oh2, ow2=ow2, p2=p2, hidden=hidden_dim,
                a_hid=a_hid, c_hid=c_hid, action_dim=action_dim)
    return params, raw, meta


# --------------------------------------------------------------------------------------
# Forward: one fused pallas_call + categorical sampling.
# --------------------------------------------------------------------------------------

def build_model(meta):
    vmem = pl.BlockSpec(memory_space=pltpu.MemorySpace.VMEM)

    def _heads(params, states):
        x = states
        if x.shape[1] != meta["C"]:                 # NHWC -> NCHW, like the torch module
            x = jnp.transpose(x, (0, 3, 1, 2))
        x = x.astype(jnp.float32)
        B = x.shape[0]
        pat1 = _im2col_nchw(x, meta["k1"], meta["s1"])

        kernel = functools.partial(
            _fused_forward_kernel, B, meta["oh1"], meta["ow1"], meta["oh2"], meta["ow2"],
            meta["k2"], meta["s2"], meta["c1"], meta["c2"], meta["p2"],
            meta["a_hid"], meta["c_hid"])

        out = pl.pallas_call(
            kernel,
            out_shape=jax.ShapeDtypeStruct((B, 2 * LANE_PAD), jnp.float32),
            in_specs=[vmem] * 13,
            out_specs=vmem,
            scratch_shapes=[
                pltpu.VMEM((B * meta["oh1"] * meta["ow1"], meta["c1"]), jnp.float32),  # h1
                pltpu.VMEM((B * meta["p2"], meta["c1"]), jnp.float32),                 # tap gather
                pltpu.VMEM((B, meta["p2"] * meta["c2"]), jnp.float32),                 # fc input
            ],
            compiler_params=pltpu.CompilerParams(vmem_limit_bytes=32 * 1024 * 1024),
        )(pat1,
          params["w1"], params["b1"], params["w2"], params["b2"],
          params["wfc"], params["bfc"], params["wac1"], params["bac1"],
          params["wa2"], params["ba2"], params["wc2"], params["bc2"])

        logp = out[:, :meta["action_dim"]]          # (B, A) log-softmax
        value = out[:, LANE_PAD]                    # (B,)
        return logp, value

    heads = jax.jit(_heads)

    @jax.jit
    def forward(params, states, sample_key):
        logp, value = _heads(params, states)
        # TODO(synk): torch Categorical.sample() uses torch's RNG stream; here we sample
        # the same distribution with a jax.random key.
        action = jax.random.categorical(sample_key, logp, axis=-1)
        log_prob = jnp.take_along_axis(logp, action[:, None], axis=-1)[:, 0]
        return action, value, log_prob

    return forward, heads


# --------------------------------------------------------------------------------------
# Pure-JAX reference (torch-layout weights, biases are zero at init) for a sanity check.
# --------------------------------------------------------------------------------------

def _reference(raw, meta, x_nchw):
    P = jax.lax.Precision.HIGHEST
    dn = ("NCHW", "OIHW", "NCHW")
    h1 = jnp.maximum(jax.lax.conv_general_dilated(
        x_nchw, raw["w_conv1"], (meta["s1"], meta["s1"]), "VALID",
        dimension_numbers=dn, precision=P), 0.0)
    h2 = jnp.maximum(jax.lax.conv_general_dilated(
        h1, raw["w_conv2"], (meta["s2"], meta["s2"]), "VALID",
        dimension_numbers=dn, precision=P), 0.0)
    flat = h2.reshape(h2.shape[0], -1)
    enc = jnp.maximum(jnp.dot(flat, raw["w_fc"].T, precision=P), 0.0)

    def ln_relu(y):
        m = jnp.mean(y, axis=-1, keepdims=True)
        v = jnp.mean(jnp.square(y - m), axis=-1, keepdims=True)
        return jnp.maximum((y - m) * jax.lax.rsqrt(v + 1e-5), 0.0)

    a1 = ln_relu(jnp.dot(enc, raw["w_a1"].T, precision=P))
    logits = jnp.dot(a1, raw["w_a2"].T, precision=P)
    logp = jax.nn.log_softmax(logits, axis=-1)
    c1 = ln_relu(jnp.dot(enc, raw["w_c1"].T, precision=P))
    value = jnp.dot(c1, raw["w_c2"].T, precision=P)[:, 0]
    return logp, value


# --------------------------------------------------------------------------------------

if __name__ == "__main__":
    key = jax.random.PRNGKey(0)
    pkey, xkey, skey = jax.random.split(key, 3)

    obs_dim = (3, 8, 8)      # (C, H, W); H,W <= 9 -> conv1 k=4,s=2 ; conv2 k=2,s=1
    action_dim = 6
    batch = 2

    params, raw, meta = init_params(pkey, obs_dim, action_dim)
    forward, heads = build_model(meta)
    states = jax.random.normal(xkey, (batch,) + obs_dim, jnp.float32)   # NCHW

    # Sanity check of the fused kernel against a pure-JAX reference.  Loose bound: the
    # MXU's f32 emulation differs slightly from XLA HIGHEST; layout bugs show up as O(1).
    logp, value = heads(params, states)
    logp_ref, value_ref = _reference(raw, meta, states)
    jax.block_until_ready((logp, value, logp_ref, value_ref))
    assert float(jnp.max(jnp.abs(logp - logp_ref))) < 1e-1
    assert float(jnp.max(jnp.abs(value - value_ref))) < 1e-1

    action, value, log_prob = forward(params, states, skey)
    jax.block_until_ready((action, value, log_prob))

    assert action.shape == (batch,)
    assert value.shape == (batch,)
    assert log_prob.shape == (batch,)
    assert bool(jnp.all(jnp.isfinite(value)))
    assert bool(jnp.all(jnp.isfinite(log_prob)))
    assert bool(jnp.all((action >= 0) & (action < action_dim)))
    print("KERNEL_OK")
</pallas_src>

<mosaic_0001>
module attributes {stable_mosaic.version = 11 : i64} {
  func.func @_fused_forward_kernel(%arg0: memref<18x48xf32, #tpu.memory_space<vmem>>, %arg1: memref<48x64xf32, #tpu.memory_space<vmem>>, %arg2: memref<1x64xf32, #tpu.memory_space<vmem>>, %arg3: memref<256x128xf32, #tpu.memory_space<vmem>>, %arg4: memref<1x128xf32, #tpu.memory_space<vmem>>, %arg5: memref<512x1024xf32, #tpu.memory_space<vmem>>, %arg6: memref<1x1024xf32, #tpu.memory_space<vmem>>, %arg7: memref<1024x640xf32, #tpu.memory_space<vmem>>, %arg8: memref<1x640xf32, #tpu.memory_space<vmem>>, %arg9: memref<128x128xf32, #tpu.memory_space<vmem>>, %arg10: memref<1x128xf32, #tpu.memory_space<vmem>>, %arg11: memref<512x128xf32, #tpu.memory_space<vmem>>, %arg12: memref<1x128xf32, #tpu.memory_space<vmem>>, %arg13: memref<2x256xf32, #tpu.memory_space<vmem>>, %arg14: memref<18x64xf32, #tpu.memory_space<vmem>>, %arg15: memref<8x64xf32, #tpu.memory_space<vmem>>, %arg16: memref<2x512xf32, #tpu.memory_space<vmem>>) attributes {dimension_semantics = [], scalar_prefetch = 0 : i64, scratch_operands = 3 : i64, tpu.core_type = #tpu.core_type<tc>} {
    %c0 = arith.constant 0 : index
    %c0_0 = arith.constant 0 : index
    %0 = vector.load %arg0[%c0, %c0_0] : memref<18x48xf32, #tpu.memory_space<vmem>>, vector<18x48xf32>
    %c0_1 = arith.constant 0 : index
    %c0_2 = arith.constant 0 : index
    %1 = vector.load %arg1[%c0_1, %c0_2] : memref<48x64xf32, #tpu.memory_space<vmem>>, vector<48x64xf32>
    %cst = arith.constant dense<0.000000e+00> : vector<18x64xf32>
    %2 = tpu.matmul %0, %1, %cst {dimension_numbers = #tpu.dot_dimension_numbers<[1], [0], [0], [1], [0, 0, 1, 1], [], []>} : vector<18x48xf32>, vector<48x64xf32>, vector<18x64xf32> -> vector<18x64xf32>
    %c0_3 = arith.constant 0 : index
    %c0_4 = arith.constant 0 : index
    %3 = vector.load %arg2[%c0_3, %c0_4] : memref<1x64xf32, #tpu.memory_space<vmem>>, vector<1x64xf32>
    %4 = vector.broadcast %3 : vector<1x64xf32> to vector<18x64xf32>
    %5 = arith.addf %2, %4 : vector<18x64xf32>
    %cst_5 = arith.constant 0.000000e+00 : f32
    %6 = vector.broadcast %cst_5 : f32 to vector<18x64xf32>
    %7 = arith.maximumf %5, %6 : vector<18x64xf32>
    %c0_6 = arith.constant 0 : index
    %c0_7 = arith.constant 0 : index
    %8 = vector.load %arg14[%c0_6, %c0_7] : memref<18x64xf32, #tpu.memory_space<vmem>>, vector<18x64xf32>
    tpu.vector_store %arg14[%c0_6, %c0_7], %7 {strides = array<i32>} : memref<18x64xf32, #tpu.memory_space<vmem>>, vector<18x64xf32>,
    %c0_8 = arith.constant 0 : index
    %c0_9 = arith.constant 0 : index
    %9 = vector.load %arg14[%c0_8, %c0_9] : memref<18x64xf32, #tpu.memory_space<vmem>>, vector<2x64xf32>
    %c0_10 = arith.constant 0 : index
    %c0_11 = arith.constant 0 : index
    %10 = vector.load %arg15[%c0_10, %c0_11] : memref<8x64xf32, #tpu.memory_space<vmem>>, vector<2x64xf32>
    tpu.vector_store %arg15[%c0_10, %c0_11], %9 {strides = array<i32>} : memref<8x64xf32, #tpu.memory_space<vmem>>, vector<2x64xf32>,
    %c2 = arith.constant 2 : index
    %c0_12 = arith.constant 0 : index
    %11 = vector.load %arg14[%c2, %c0_12] : memref<18x64xf32, #tpu.memory_space<vmem>>, vector<2x64xf32>
    %c2_13 = arith.constant 2 : index
    %c0_14 = arith.constant 0 : index
    %12 = vector.load %arg15[%c2_13, %c0_14] : memref<8x64xf32, #tpu.memory_space<vmem>>, vector<2x64xf32>
    tpu.vector_store %arg15[%c2_13, %c0_14], %11 {strides = array<i32>} : memref<8x64xf32, #tpu.memory_space<vmem>>, vector<2x64xf32>,
    %c6 = arith.constant 6 : index
    %c0_15 = arith.constant 0 : index
    %13 = vector.load %arg14[%c6, %c0_15] : memref<18x64xf32, #tpu.memory_space<vmem>>, vector<2x64xf32>
    %c4 = arith.constant 4 : index
    %c0_16 = arith.constant 0 : index
    %14 = vector.load %arg15[%c4, %c0_16] : memref<8x64xf32, #tpu.memory_space<vmem>>, vector<2x64xf32>
    tpu.vector_store %arg15[%c4, %c0_16], %13 {strides = array<i32>} : memref<8x64xf32, #tpu.memory_space<vmem>>, vector<2x64xf32>,
    %c8 = arith.constant 8 : index
    %c0_17 = arith.constant 0 : index
    %15 = vector.load %arg14[%c8, %c0_17] : memref<18x64xf32, #tpu.memory_space<vmem>>, vector<2x64xf32>
    %c6_18 = arith.constant 6 : index
    %c0_19 = arith.constant 0 : index
    %16 = vector.load %arg15[%c6_18, %c0_19] : memref<8x64xf32, #tpu.memory_space<vmem>>, vector<2x64xf32>
    tpu.vector_store %arg15[%c6_18, %c0_19], %15 {strides = array<i32>} : memref<8x64xf32, #tpu.memory_space<vmem>>, vector<2x64xf32>,
    %c0_20 = arith.constant 0 : index
    %c0_21 = arith.constant 0 : index
    %17 = vector.load %arg15[%c0_20, %c0_21] : memref<8x64xf32, #tpu.memory_space<vmem>>, vector<8x64xf32>
    %c0_22 = arith.constant 0 : index
    %c0_23 = arith.constant 0 : index
    %18 = vector.load %arg3[%c0_22, %c0_23] : memref<256x128xf32, #tpu.memory_space<vmem>>, vector<64x128xf32>
    %cst_24 = arith.constant dense<0.000000e+00> : vector<8x128xf32>
    %19 = tpu.matmul %17, %18, %cst_24 {dimension_numbers = #tpu.dot_dimension_numbers<[1], [0], [0], [1], [0, 0, 1, 1], [], []>} : vector<8x64xf32>, vector<64x128xf32>, vector<8x128xf32> -> vector<8x128xf32>
    %c2_25 = arith.constant 2 : index
    %c0_26 = arith.constant 0 : index
    %20 = vector.load %arg14[%c2_25, %c0_26] : memref<18x64xf32, #tpu.memory_space<vmem>>, vector<2x64xf32>
    %c0_27 = arith.constant 0 : index
    %c0_28 = arith.constant 0 : index
    %21 = vector.load %arg15[%c0_27, %c0_28] : memref<8x64xf32, #tpu.memory_space<vmem>>, vector<2x64xf32>
    tpu.vector_store %arg15[%c0_27, %c0_28], %20 {strides = array<i32>} : memref<8x64xf32, #tpu.memory_space<vmem>>, vector<2x64xf32>,
    %c4_29 = arith.constant 4 : index
    %c0_30 = arith.constant 0 : index
    %22 = vector.load %arg14[%c4_29, %c0_30] : memref<18x64xf32, #tpu.memory_space<vmem>>, vector<2x64xf32>
    %c2_31 = arith.constant 2 : index
    %c0_32 = arith.constant 0 : index
    %23 = vector.load %arg15[%c2_31, %c0_32] : memref<8x64xf32, #tpu.memory_space<vmem>>, vector<2x64xf32>
    tpu.vector_store %arg15[%c2_31, %c0_32], %22 {strides = array<i32>} : memref<8x64xf32, #tpu.memory_space<vmem>>, vector<2x64xf32>,
    %c8_33 = arith.constant 8 : index
    %c0_34 = arith.constant 0 : index
    %24 = vector.load %arg14[%c8_33, %c0_34] : memref<18x64xf32, #tpu.memory_space<vmem>>, vector<2x64xf32>
    %c4_35 = arith.constant 4 : index
    %c0_36 = arith.constant 0 : index
    %25 = vector.load %arg15[%c4_35, %c0_36] : memref<8x64xf32, #tpu.memory_space<vmem>>, vector<2x64xf32>
    tpu.vector_store %arg15[%c4_35, %c0_36], %24 {strides = array<i32>} : memref<8x64xf32, #tpu.memory_space<vmem>>, vector<2x64xf32>,
    %c10 = arith.constant 10 : index
    %c0_37 = arith.constant 0 : index
    %26 = vector.load %arg14[%c10, %c0_37] : memref<18x64xf32, #tpu.memory_space<vmem>>, vector<2x64xf32>
    %c6_38 = arith.constant 6 : index
    %c0_39 = arith.constant 0 : index
    %27 = vector.load %arg15[%c6_38, %c0_39] : memref<8x64xf32, #tpu.memory_space<vmem>>, vector<2x64xf32>
    tpu.vector_store %arg15[%c6_38, %c0_39], %26 {strides = array<i32>} : memref<8x64xf32, #tpu.memory_space<vmem>>, vector<2x64xf32>,
    %c0_40 = arith.constant 0 : index
    %c0_41 = arith.constant 0 : index
    %28 = vector.load %arg15[%c0_40, %c0_41] : memref<8x64xf32, #tpu.memory_space<vmem>>, vector<8x64xf32>
    %c64 = arith.constant 64 : index
    %c0_42 = arith.constant 0 : index
    %29 = vector.load %arg3[%c64, %c0_42] : memref<256x128xf32, #tpu.memory_space<vmem>>, vector<64x128xf32>
    %cst_43 = arith.constant dense<0.000000e+00> : vector<8x128xf32>
    %30 = tpu.matmul %28, %29, %cst_43 {dimension_numbers = #tpu.dot_dimension_numbers<[1], [0], [0], [1], [0, 0, 1, 1], [], []>} : vector<8x64xf32>, vector<64x128xf32>, vector<8x128xf32> -> vector<8x128xf32>
    %31 = arith.addf %19, %30 : vector<8x128xf32>
    %c6_44 = arith.constant 6 : index
    %c0_45 = arith.constant 0 : index
    %32 = vector.load %arg14[%c6_44, %c0_45] : memref<18x64xf32, #tpu.memory_space<vmem>>, vector<2x64xf32>
    %c0_46 = arith.constant 0 : index
    %c0_47 = arith.constant 0 : index
    %33 = vector.load %arg15[%c0_46, %c0_47] : memref<8x64xf32, #tpu.memory_space<vmem>>, vector<2x64xf32>
    tpu.vector_store %arg15[%c0_46, %c0_47], %32 {strides = array<i32>} : memref<8x64xf32, #tpu.memory_space<vmem>>, vector<2x64xf32>,
    %c8_48 = arith.constant 8 : index
    %c0_49 = arith.constant 0 : index
    %34 = vector.load %arg14[%c8_48, %c0_49] : memref<18x64xf32, #tpu.memory_space<vmem>>, vector<2x64xf32>
    %c2_50 = arith.constant 2 : index
    %c0_51 = arith.constant 0 : index
    %35 = vector.load %arg15[%c2_50, %c0_51] : memref<8x64xf32, #tpu.memory_space<vmem>>, vector<2x64xf32>
    tpu.vector_store %arg15[%c2_50, %c0_51], %34 {strides = array<i32>} : memref<8x64xf32, #tpu.memory_space<vmem>>, vector<2x64xf32>,
    %c12 = arith.constant 12 : index
    %c0_52 = arith.constant 0 : index
    %36 = vector.load %arg14[%c12, %c0_52] : memref<18x64xf32, #tpu.memory_space<vmem>>, vector<2x64xf32>
    %c4_53 = arith.constant 4 : index
    %c0_54 = arith.constant 0 : index
    %37 = vector.load %arg15[%c4_53, %c0_54] : memref<8x64xf32, #tpu.memory_space<vmem>>, vector<2x64xf32>
    tpu.vector_store %arg15[%c4_53, %c0_54], %36 {strides = array<i32>} : memref<8x64xf32, #tpu.memory_space<vmem>>, vector<2x64xf32>,
    %c14 = arith.constant 14 : index
    %c0_55 = arith.constant 0 : index
    %38 = vector.load %arg14[%c14, %c0_55] : memref<18x64xf32, #tpu.memory_space<vmem>>, vector<2x64xf32>
    %c6_56 = arith.constant 6 : index
    %c0_57 = arith.constant 0 : index
    %39 = vector.load %arg15[%c6_56, %c0_57] : memref<8x64xf32, #tpu.memory_space<vmem>>, vector<2x64xf32>
    tpu.vector_store %arg15[%c6_56, %c0_57], %38 {strides = array<i32>} : memref<8x64xf32, #tpu.memory_space<vmem>>, vector<2x64xf32>,
    %c0_58 = arith.constant 0 : index
    %c0_59 = arith.constant 0 : index
    %40 = vector.load %arg15[%c0_58, %c0_59] : memref<8x64xf32, #tpu.memory_space<vmem>>, vector<8x64xf32>
    %c128 = arith.constant 128 : index
    %c0_60 = arith.constant 0 : index
    %41 = vector.load %arg3[%c128, %c0_60] : memref<256x128xf32, #tpu.memory_space<vmem>>, vector<64x128xf32>
    %cst_61 = arith.constant dense<0.000000e+00> : vector<8x128xf32>
    %42 = tpu.matmul %40, %41, %cst_61 {dimension_numbers = #tpu.dot_dimension_numbers<[1], [0], [0], [1], [0, 0, 1, 1], [], []>} : vector<8x64xf32>, vector<64x128xf32>, vector<8x128xf32> -> vector<8x128xf32>
    %43 = arith.addf %31, %42 : vector<8x128xf32>
    %c8_62 = arith.constant 8 : index
    %c0_63 = arith.constant 0 : index
    %44 = vector.load %arg14[%c8_62, %c0_63] : memref<18x64xf32, #tpu.memory_space<vmem>>, vector<2x64xf32>
    %c0_64 = arith.constant 0 : index
    %c0_65 = arith.constant 0 : index
    %45 = vector.load %arg15[%c0_64, %c0_65] : memref<8x64xf32, #tpu.memory_space<vmem>>, vector<2x64xf32>
    tpu.vector_store %arg15[%c0_64, %c0_65], %44 {strides = array<i32>} : memref<8x64xf32, #tpu.memory_space<vmem>>, vector<2x64xf32>,
    %c10_66 = arith.constant 10 : index
    %c0_67 = arith.constant 0 : index
    %46 = vector.load %arg14[%c10_66, %c0_67] : memref<18x64xf32, #tpu.memory_space<vmem>>, vector<2x64xf32>
    %c2_68 = arith.constant 2 : index
    %c0_69 = arith.constant 0 : index
    %47 = vector.load %arg15[%c2_68, %c0_69] : memref<8x64xf32, #tpu.memory_space<vmem>>, vector<2x64xf32>
    tpu.vector_store %arg15[%c2_68, %c0_69], %46 {strides = array<i32>} : memref<8x64xf32, #tpu.memory_space<vmem>>, vector<2x64xf32>,
    %c14_70 = arith.constant 14 : index
    %c0_71 = arith.constant 0 : index
    %48 = vector.load %arg14[%c14_70, %c0_71] : memref<18x64xf32, #tpu.memory_space<vmem>>, vector<2x64xf32>
    %c4_72 = arith.constant 4 : index
    %c0_73 = arith.constant 0 : index
    %49 = vector.load %arg15[%c4_72, %c0_73] : memref<8x64xf32, #tpu.memory_space<vmem>>, vector<2x64xf32>
    tpu.vector_store %arg15[%c4_72, %c0_73], %48 {strides = array<i32>} : memref<8x64xf32, #tpu.memory_space<vmem>>, vector<2x64xf32>,
    %c16 = arith.constant 16 : index
    %c0_74 = arith.constant 0 : index
    %50 = vector.load %arg14[%c16, %c0_74] : memref<18x64xf32, #tpu.memory_space<vmem>>, vector<2x64xf32>
    %c6_75 = arith.constant 6 : index
    %c0_76 = arith.constant 0 : index
    %51 = vector.load %arg15[%c6_75, %c0_76] : memref<8x64xf32, #tpu.memory_space<vmem>>, vector<2x64xf32>
    tpu.vector_store %arg15[%c6_75, %c0_76], %50 {strides = array<i32>} : memref<8x64xf32, #tpu.memory_space<vmem>>, vector<2x64xf32>,
    %c0_77 = arith.constant 0 : index
    %c0_78 = arith.constant 0 : index
    %52 = vector.load %arg15[%c0_77, %c0_78] : memref<8x64xf32, #tpu.memory_space<vmem>>, vector<8x64xf32>
    %c192 = arith.constant 192 : index
    %c0_79 = arith.constant 0 : index
    %53 = vector.load %arg3[%c192, %c0_79] : memref<256x128xf32, #tpu.memory_space<vmem>>, vector<64x128xf32>
    %cst_80 = arith.constant dense<0.000000e+00> : vector<8x128xf32>
    %54 = tpu.matmul %52, %53, %cst_80 {dimension_numbers = #tpu.dot_dimension_numbers<[1], [0], [0], [1], [0, 0, 1, 1], [], []>} : vector<8x64xf32>, vector<64x128xf32>, vector<8x128xf32> -> vector<8x128xf32>
    %55 = arith.addf %43, %54 : vector<8x128xf32>
    %c0_81 = arith.constant 0 : index
    %c0_82 = arith.constant 0 : index
    %56 = vector.load %arg4[%c0_81, %c0_82] : memref<1x128xf32, #tpu.memory_space<vmem>>, vector<1x128xf32>
    %57 = vector.broadcast %56 : vector<1x128xf32> to vector<8x128xf32>
    %58 = arith.addf %55, %57 : vector<8x128xf32>
    %cst_83 = arith.constant 0.000000e+00 : f32
    %59 = vector.broadcast %cst_83 : f32 to vector<8x128xf32>
    %60 = arith.maximumf %58, %59 : vector<8x128xf32>
    %61 = vector.extract_strided_slice %60 {offsets = [0, 0], sizes = [2, 128], strides = [1, 1]} : vector<8x128xf32> to vector<2x128xf32>
    %c0_84 = arith.constant 0 : index
    %c0_85 = arith.constant 0 : index
    %62 = vector.load %arg16[%c0_84, %c0_85] : memref<2x512xf32, #tpu.memory_space<vmem>>, vector<2x128xf32>
    tpu.vector_store %arg16[%c0_84, %c0_85], %61 {strides = array<i32>} : memref<2x512xf32, #tpu.memory_space<vmem>>, vector<2x128xf32>,
    %63 = vector.extract_strided_slice %60 {offsets = [2, 0], sizes = [2, 128], strides = [1, 1]} : vector<8x128xf32> to vector<2x128xf32>
    %c0_86 = arith.constant 0 : index
    %c128_87 = arith.constant 128 : index
    %64 = vector.load %arg16[%c0_86, %c128_87] : memref<2x512xf32, #tpu.memory_space<vmem>>, vector<2x128xf32>
    tpu.vector_store %arg16[%c0_86, %c128_87], %63 {strides = array<i32>} : memref<2x512xf32, #tpu.memory_space<vmem>>, vector<2x128xf32>,
    %65 = vector.extract_strided_slice %60 {offsets = [4, 0], sizes = [2, 128], strides = [1, 1]} : vector<8x128xf32> to vector<2x128xf32>
    %c0_88 = arith.constant 0 : index
    %c256 = arith.constant 256 : index
    %66 = vector.load %arg16[%c0_88, %c256] : memref<2x512xf32, #tpu.memory_space<vmem>>, vector<2x128xf32>
    tpu.vector_store %arg16[%c0_88, %c256], %65 {strides = array<i32>} : memref<2x512xf32, #tpu.memory_space<vmem>>, vector<2x128xf32>,
    %67 = vector.extract_strided_slice %60 {offsets = [6, 0], sizes = [2, 128], strides = [1, 1]} : vector<8x128xf32> to vector<2x128xf32>
    %c0_89 = arith.constant 0 : index
    %c384 = arith.constant 384 : index
    %68 = vector.load %arg16[%c0_89, %c384] : memref<2x512xf32, #tpu.memory_space<vmem>>, vector<2x128xf32>
    tpu.vector_store %arg16[%c0_89, %c384], %67 {strides = array<i32>} : memref<2x512xf32, #tpu.memory_space<vmem>>, vector<2x128xf32>,
    %c0_90 = arith.constant 0 : index
    %c0_91 = arith.constant 0 : index
    %69 = vector.load %arg16[%c0_90, %c0_91] : memref<2x512xf32, #tpu.memory_space<vmem>>, vector<2x512xf32>
    %c0_92 = arith.constant 0 : index
    %c0_93 = arith.constant 0 : index
    %70 = vector.load %arg5[%c0_92, %c0_93] : memref<512x1024xf32, #tpu.memory_space<vmem>>, vector<512x1024xf32>
    %cst_94 = arith.constant dense<0.000000e+00> : vector<2x1024xf32>
    %71 = tpu.matmul %69, %70, %cst_94 {dimension_numbers = #tpu.dot_dimension_numbers<[1], [0], [0], [1], [0, 0, 1, 1], [], []>} : vector<2x512xf32>, vector<512x1024xf32>, vector<2x1024xf32> -> vector<2x1024xf32>
    %c0_95 = arith.constant 0 : index
    %c0_96 = arith.constant 0 : index
    %72 = vector.load %arg6[%c0_95, %c0_96] : memref<1x1024xf32, #tpu.memory_space<vmem>>, vector<1x1024xf32>
    %73 = vector.broadcast %72 : vector<1x1024xf32> to vector<2x1024xf32>
    %74 = arith.addf %71, %73 : vector<2x1024xf32>
    %cst_97 = arith.constant 0.000000e+00 : f32
    %75 = vector.broadcast %cst_97 : f32 to vector<2x1024xf32>
    %76 = arith.maximumf %74, %75 : vector<2x1024xf32>
    %c0_98 = arith.constant 0 : index
    %c0_99 = arith.constant 0 : index
    %77 = vector.load %arg7[%c0_98, %c0_99] : memref<1024x640xf32, #tpu.memory_space<vmem>>, vector<1024x640xf32>
    %cst_100 = arith.constant dense<0.000000e+00> : vector<2x640xf32>
    %78 = tpu.matmul %76, %77, %cst_100 {dimension_numbers = #tpu.dot_dimension_numbers<[1], [0], [0], [1], [0, 0, 1, 1], [], []>} : vector<2x1024xf32>, vector<1024x640xf32>, vector<2x640xf32> -> vector<2x640xf32>
    %c0_101 = arith.constant 0 : index
    %c0_102 = arith.constant 0 : index
    %79 = vector.load %arg8[%c0_101, %c0_102] : memref<1x640xf32, #tpu.memory_space<vmem>>, vector<1x640xf32>
    %80 = vector.broadcast %79 : vector<1x640xf32> to vector<2x640xf32>
    %81 = arith.addf %78, %80 : vector<2x640xf32>
    %82 = vector.extract_strided_slice %81 {offsets = [0, 0], sizes = [2, 128], strides = [1, 1]} : vector<2x640xf32> to vector<2x128xf32>
    %cst_103 = arith.constant dense<0.000000e+00> : vector<2xf32>
    %83 = vector.multi_reduction <add>, %82, %cst_103 [1] : vector<2x128xf32> to vector<2xf32>
    %84 = vector.shape_cast %83 : vector<2xf32> to vector<2x1xf32>
    %cst_104 = arith.constant 1.280000e+02 : f32
    %85 = vector.broadcast %cst_104 : f32 to vector<2x1xf32>
    %86 = arith.divf %84, %85 : vector<2x1xf32>
    %87 = vector.broadcast %86 : vector<2x1xf32> to vector<2x128xf32>
    %88 = arith.subf %82, %87 : vector<2x128xf32>
    %89 = arith.mulf %88, %88 : vector<2x128xf32>
    %cst_105 = arith.constant dense<0.000000e+00> : vector<2xf32>
    %90 = vector.multi_reduction <add>, %89, %cst_105 [1] : vector<2x128xf32> to vector<2xf32>
    %91 = vector.shape_cast %90 : vector<2xf32> to vector<2x1xf32>
    %cst_106 = arith.constant 1.280000e+02 : f32
    %92 = vector.broadcast %cst_106 : f32 to vector<2x1xf32>
    %93 = arith.divf %91, %92 : vector<2x1xf32>
    %94 = vector.broadcast %86 : vector<2x1xf32> to vector<2x128xf32>
    %95 = arith.subf %82, %94 : vector<2x128xf32>
    %cst_107 = arith.constant 9.99999974E-6 : f32
    %96 = vector.broadcast %cst_107 : f32 to vector<2x1xf32>
    %97 = arith.addf %93, %96 : vector<2x1xf32>
    %98 = math.rsqrt %97 : vector<2x1xf32>
    %99 = vector.broadcast %98 : vector<2x1xf32> to vector<2x128xf32>
    %100 = arith.mulf %95, %99 : vector<2x128xf32>
    %cst_108 = arith.constant 0.000000e+00 : f32
    %101 = vector.broadcast %cst_108 : f32 to vector<2x128xf32>
    %102 = arith.maximumf %100, %101 : vector<2x128xf32>
    %103 = vector.extract_strided_slice %81 {offsets = [0, 128], sizes = [2, 512], strides = [1, 1]} : vector<2x640xf32> to vector<2x512xf32>
    %cst_109 = arith.constant dense<0.000000e+00> : vector<2xf32>
    %104 = vector.multi_reduction <add>, %103, %cst_109 [1] : vector<2x512xf32> to vector<2xf32>
    %105 = vector.shape_cast %104 : vector<2xf32> to vector<2x1xf32>
    %cst_110 = arith.constant 5.120000e+02 : f32
    %106 = vector.broadcast %cst_110 : f32 to vector<2x1xf32>
    %107 = arith.divf %105, %106 : vector<2x1xf32>
    %108 = vector.broadcast %107 : vector<2x1xf32> to vector<2x512xf32>
    %109 = arith.subf %103, %108 : vector<2x512xf32>
    %110 = arith.mulf %109, %109 : vector<2x512xf32>
    %cst_111 = arith.constant dense<0.000000e+00> : vector<2xf32>
    %111 = vector.multi_reduction <add>, %110, %cst_111 [1] : vector<2x512xf32> to vector<2xf32>
    %112 = vector.shape_cast %111 : vector<2xf32> to vector<2x1xf32>
    %cst_112 = arith.constant 5.120000e+02 : f32
    %113 = vector.broadcast %cst_112 : f32 to vector<2x1xf32>
    %114 = arith.divf %112, %113 : vector<2x1xf32>
    %115 = vector.broadcast %107 : vector<2x1xf32> to vector<2x512xf32>
    %116 = arith.subf %103, %115 : vector<2x512xf32>
    %cst_113 = arith.constant 9.99999974E-6 : f32
    %117 = vector.broadcast %cst_113 : f32 to vector<2x1xf32>
    %118 = arith.addf %114, %117 : vector<2x1xf32>
    %119 = math.rsqrt %118 : vector<2x1xf32>
    %120 = vector.broadcast %119 : vector<2x1xf32> to vector<2x512xf32>
    %121 = arith.mulf %116, %120 : vector<2x512xf32>
    %cst_114 = arith.constant 0.000000e+00 : f32
    %122 = vector.broadcast %cst_114 : f32 to vector<2x512xf32>
    %123 = arith.maximumf %121, %122 : vector<2x512xf32>
    %c0_115 = arith.constant 0 : index
    %c0_116 = arith.constant 0 : index
    %124 = vector.load %arg9[%c0_115, %c0_116] : memref<128x128xf32, #tpu.memory_space<vmem>>, vector<128x128xf32>
    %cst_117 = arith.constant dense<0.000000e+00> : vector<2x128xf32>
    %125 = tpu.matmul %102, %124, %cst_117 {dimension_numbers = #tpu.dot_dimension_numbers<[1], [0], [0], [1], [0, 0, 1, 1], [], []>} : vector<2x128xf32>, vector<128x128xf32>, vector<2x128xf32> -> vector<2x128xf32>
    %c0_118 = arith.constant 0 : index
    %c0_119 = arith.constant 0 : index
    %126 = vector.load %arg10[%c0_118, %c0_119] : memref<1x128xf32, #tpu.memory_space<vmem>>, vector<1x128xf32>
    %127 = vector.broadcast %126 : vector<1x128xf32> to vector<2x128xf32>
    %128 = arith.addf %125, %127 : vector<2x128xf32>
    %cst_120 = arith.constant dense<0xFF800000> : vector<2xf32>
    %129 = vector.multi_reduction <maximumf>, %128, %cst_120 [1] : vector<2x128xf32> to vector<2xf32>
    %130 = vector.shape_cast %129 : vector<2xf32> to vector<2x1xf32>
    %131 = vector.broadcast %130 : vector<2x1xf32> to vector<2x128xf32>
    %132 = arith.subf %128, %131 : vector<2x128xf32>
    %133 = math.exp %132 : vector<2x128xf32>
    %cst_121 = arith.constant dense<0.000000e+00> : vector<2xf32>
    %134 = vector.multi_reduction <add>, %133, %cst_121 [1] : vector<2x128xf32> to vector<2xf32>
    %135 = vector.shape_cast %134 : vector<2xf32> to vector<2x1xf32>
    %136 = math.log %135 : vector<2x1xf32>
    %137 = arith.addf %130, %136 : vector<2x1xf32>
    %138 = vector.broadcast %137 : vector<2x1xf32> to vector<2x128xf32>
    %139 = arith.subf %128, %138 : vector<2x128xf32>
    %c0_122 = arith.constant 0 : index
    %c0_123 = arith.constant 0 : index
    %140 = vector.load %arg13[%c0_122, %c0_123] : memref<2x256xf32, #tpu.memory_space<vmem>>, vector<2x128xf32>
    tpu.vector_store %arg13[%c0_122, %c0_123], %139 {strides = array<i32>} : memref<2x256xf32, #tpu.memory_space<vmem>>, vector<2x128xf32>,
    %c0_124 = arith.constant 0 : index
    %c0_125 = arith.constant 0 : index
    %141 = vector.load %arg11[%c0_124, %c0_125] : memref<512x128xf32, #tpu.memory_space<vmem>>, vector<512x128xf32>
    %cst_126 = arith.constant dense<0.000000e+00> : vector<2x128xf32>
    %142 = tpu.matmul %123, %141, %cst_126 {dimension_numbers = #tpu.dot_dimension_numbers<[1], [0], [0], [1], [0, 0, 1, 1], [], []>} : vector<2x512xf32>, vector<512x128xf32>, vector<2x128xf32> -> vector<2x128xf32>
    %c0_127 = arith.constant 0 : index
    %c0_128 = arith.constant 0 : index
    %143 = vector.load %arg12[%c0_127, %c0_128] : memref<1x128xf32, #tpu.memory_space<vmem>>, vector<1x128xf32>
    %144 = vector.broadcast %143 : vector<1x128xf32> to vector<2x128xf32>
    %145 = arith.addf %142, %144 : vector<2x128xf32>
    %c0_129 = arith.constant 0 : index
    %c128_130 = arith.constant 128 : index
    %146 = vector.load %arg13[%c0_129, %c128_130] : memref<2x256xf32, #tpu.memory_space<vmem>>, vector<2x128xf32>
    tpu.vector_store %arg13[%c0_129, %c128_130], %145 {strides = array<i32>} : memref<2x256xf32, #tpu.memory_space<vmem>>, vector<2x128xf32>,
    return
  }
}

</mosaic_0001>

<bundles_post_ra>
// kernel: _heads.1
= control target key start
LH: loop header
LB: loop body
LE: loop exit
PB: predicated region body
PF: predicated region fallthrough
CT: control target
= control target key end

     0   :  { %18 = vsyncpa [#allocation6], 0  ;;  %s4884_s0 = inlined_call_operand.vmem [shape: f32[18,48], index: 0, kind: input, shape index: {}]   ;;  %s4885_s1 = inlined_call_operand.hbm [shape: f32[48,64], index: 1, kind: input, shape index: {}]   ;;  %s4886_s2 = inlined_call_operand.hbm [shape: f32[1,64], index: 2, kind: input, shape index: {}]   ;;  %s4887_s3 = inlined_call_operand.hbm [shape: f32[256,128], index: 3, kind: input, shape index: {}]   ;;  %s4888_s4 = inlined_call_operand.hbm [shape: f32[1,128], index: 4, kind: input, shape index: {}]   ;;  %s4889_s5 = inlined_call_operand.hbm [shape: f32[512,1024], index: 5, kind: input, shape index: {}]   ;;  %s4890_s6 = inlined_call_operand.hbm [shape: f32[1,1024], index: 6, kind: input, shape index: {}]   ;;  %s4891_s7 = inlined_call_operand.hbm [shape: f32[1024,640], index: 7, kind: input, shape index: {}]   ;;  %s4892_s8 = inlined_call_operand.hbm [shape: f32[1,640], index: 8, kind: input, shape index: {}]   ;;  %s4893_s9 = inlined_call_operand.hbm [shape: f32[128,128], index: 9, kind: input, shape index: {}]   ;;  %s4894_s10 = inlined_call_operand.hbm [shape: f32[1,128], index: 10, kind: input, shape index: {}]   ;;  %s4895_s11 = inlined_call_operand.hbm [shape: f32[512,128], index: 11, kind: input, shape index: {}]   ;;  %s4896_s12 = inlined_call_operand.hbm [shape: f32[1,128], index: 12, kind: input, shape index: {}]   ;;  %s4897_s13 = inlined_call_operand.vmem [shape: f32[2,256], index: 13, kind: output, shape index: {}]  }
   0x1   :  { %19 = vsyncpa [#allocation8], 0 }
   0x2   :  { %20 = vsyncpa [#allocation11], 0 }
   0x3   :  { %21 = vsyncpa [#allocation14], 0 }
   0x4   :  { %22 = vsyncpa [#allocation17], 0 }
   0x5   :  { %23 = vsyncpa [#allocation20], 0 }
   0x6   :  { %24 = vsyncpa [#allocation23], 0  ;;  %s4459_s25 = smov [#allocation7]   ;;  %s4460_s27 = smov [#allocation10]  }
   0x7   :  { %s45_s26 = sshll.u32 %s4459_s25, 4  ;;  %s67_s28 = sshll.u32 %s4460_s27, 4  ;;  %s46_s26 = int_to_ptr.vmem [resolvable:$true] %s45_s26  ;;  %s68_s28 = int_to_ptr.vmem [resolvable:$true] %s67_s28 }
   0x8   :  { %s4213_s29 = scalar_lea.vmem %s46_s26, 16  ;;  %s4217_s30 = scalar_lea.vmem %s46_s26, 32 }
   0x9   :  { %p4214_p0 = scmp.ne.s32.totalorder %s46_s26, %s4213_s29  ;;  %p4218_p1 = scmp.lt.s32.totalorder %s46_s26, %s46_s26 }
   0xa   :  { %p4219_p2 = scmp.lt.s32.totalorder %s4217_s30, %s4213_s29 }
   0xc   :  { %p4220_p3 = por %p4219_p2, %p4218_p1 }
   0xe   :  { %p4221_p4 = pnand %p4220_p3, %p4214_p0 }
  0x10   :  { %4224 = shalt.err (!%p4221_p4)
}
  0x11   :  { %48 = dma.hbm_to_vmem [thread:$0]  %s4886_s2, 16, %s46_s26, [#allocation8]  }
  0x12   :  { %s4233_s16 = scalar_lea.vmem %s68_s28, 16  ;;  %s4237_s17 = scalar_lea.vmem %s68_s28, 32 }
  0x13   :  { %p4234_p5 = scmp.ne.s32.totalorder %s68_s28, %s4233_s16  ;;  %p4238_p6 = scmp.lt.s32.totalorder %s68_s28, %s68_s28 }
  0x14   :  { %p4239_p7 = scmp.lt.s32.totalorder %s4237_s17, %s4233_s16 }
  0x16   :  { %p4240_p8 = por %p4239_p7, %p4238_p6 }
  0x18   :  { %p4241_p9 = pnand %p4240_p8, %p4234_p5 }
  0x1a   :  { %4244 = shalt.err (!%p4241_p9)
}
  0x1b   :  { %70 = dma.hbm_to_vmem [thread:$0]  %s4888_s4, 16, %s68_s28, [#allocation11]  }
  0x1c   :  { %s4461_s20 = smov [#allocation13]   ;;  %s4462_s22 = smov [#allocation16]  }
  0x1d   :  { %s89_s21 = sshll.u32 %s4461_s20, 4  ;;  %s111_s23 = sshll.u32 %s4462_s22, 4  ;;  %s90_s21 = int_to_ptr.vmem [resolvable:$true] %s89_s21  ;;  %s112_s23 = int_to_ptr.vmem [resolvable:$true] %s111_s23 }
  0x1e   :  { %s4253_s24 = scalar_lea.vmem %s90_s21, 128  ;;  %p4258_p11 = scmp.lt.s32.totalorder %s90_s21, %s90_s21 }
  0x1f   :  { %p4254_p10 = scmp.ne.s32.totalorder %s90_s21, %s4253_s24  ;;  %p4259_p12 = scmp.lt.s32.totalorder %s4253_s24, %s4253_s24 }
  0x21   :  { %p4260_p13 = por %p4259_p12, %p4258_p11 }
  0x23   :  { %p4261_p0 = pnand %p4260_p13, %p4254_p10 }
  0x25   :  { %4264 = shalt.err (!%p4261_p0)
}
  0x26   :  { %92 = dma.hbm_to_vmem [thread:$0]  %s4890_s6, 128, %s90_s21, [#allocation14]  }
  0x27   :  { %s4273_s26 = scalar_lea.vmem %s112_s23, 80  ;;  %s4277_s4 = scalar_lea.vmem %s112_s23, 96 }
  0x28   :  { %p4274_p1 = scmp.ne.s32.totalorder %s112_s23, %s4273_s26  ;;  %p4278_p2 = scmp.lt.s32.totalorder %s112_s23, %s112_s23 }
  0x29   :  { %p4279_p3 = scmp.lt.s32.totalorder %s4277_s4, %s4273_s26 }
  0x2b   :  { %p4280_p4 = por %p4279_p3, %p4278_p2 }
  0x2d   :  { %p4281_p5 = pnand %p4280_p4, %p4274_p1 }
  0x2f   :  { %4284 = shalt.err (!%p4281_p5)
}
  0x30   :  { %114 = dma.hbm_to_vmem [thread:$0]  %s4892_s8, 80, %s112_s23, [#allocation17]  }
  0x31   :  { %s4463_s29 = smov [#allocation19]   ;;  %s4464_s14 = smov [#allocation5]  }
  0x32   :  { %s133_s30 = sshll.u32 %s4463_s29, 4  ;;  %s32_s15 = sshll.u32 %s4464_s14, 4  ;;  %s134_s30 = int_to_ptr.vmem [resolvable:$true] %s133_s30  ;;  %s33_s15 = int_to_ptr.vmem [resolvable:$true] %s32_s15 }
  0x33   :  { %s4293_s16 = scalar_lea.vmem %s134_s30, 16  ;;  %s4297_s6 = scalar_lea.vmem %s134_s30, 32 }
  0x34   :  { %p4294_p6 = scmp.ne.s32.totalorder %s134_s30, %s4293_s16  ;;  %p4298_p7 = scmp.lt.s32.totalorder %s134_s30, %s134_s30 }
  0x35   :  { %p4299_p8 = scmp.lt.s32.totalorder %s4297_s6, %s4293_s16 }
  0x37   :  { %p4300_p9 = por %p4299_p8, %p4298_p7 }
  0x39   :  { %p4301_p10 = pnand %p4300_p9, %p4294_p6 }
  0x3b   :  { %4304 = shalt.err (!%p4301_p10)
}
  0x3c   :  { %136 = dma.hbm_to_vmem [thread:$0]  %s4894_s10, 16, %s134_s30, [#allocation20]  }
  0x3d   :  { %s4313_s19 = scalar_lea.vmem %s33_s15, 768  ;;  %p4318_p12 = scmp.lt.s32.totalorder %s33_s15, %s33_s15 }
  0x3e   :  { %p4314_p11 = scmp.ne.s32.totalorder %s33_s15, %s4313_s19  ;;  %p4319_p13 = scmp.lt.s32.totalorder %s4313_s19, %s4313_s19 }
  0x40   :  { %p4320_p0 = por %p4319_p13, %p4318_p12 }
  0x42   :  { %p4321_p1 = pnand %p4320_p0, %p4314_p11 }
  0x44   :  { %4324 = shalt.err (!%p4321_p1)
}
  0x45   :  { %s4465_s8 = smov 128   ;;  %s4466_s20 = smov 8  }
  0x46   :  { %38 = dma.hbm_to_vmem [thread:$0]  %s4885_s1, 768, %s33_s15, [#allocation6], %s4465_s8, %s4465_s8, %s4466_s20  }
  0x47   :  { %s4467_s23 = smov [#allocation9]   ;;  %s4468_s2 = smov [#allocation12]  }
  0x48   :  { %s54_s24 = sshll.u32 %s4467_s23, 4  ;;  %s76_s10 = sshll.u32 %s4468_s2, 4  ;;  %s55_s24 = int_to_ptr.vmem [resolvable:$true] %s54_s24  ;;  %s77_s10 = int_to_ptr.vmem [resolvable:$true] %s76_s10 }
  0x49   :  { %s4333_s25 = scalar_lea.vmem %s55_s24, 4096  ;;  %p4338_p3 = scmp.lt.s32.totalorder %s55_s24, %s55_s24 }
  0x4a   :  { %p4334_p2 = scmp.ne.s32.totalorder %s55_s24, %s4333_s25  ;;  %p4339_p4 = scmp.lt.s32.totalorder %s4333_s25, %s4333_s25 }
  0x4c   :  { %p4340_p5 = por %p4339_p4, %p4338_p3 }
  0x4e   :  { %p4341_p6 = pnand %p4340_p5, %p4334_p2 }
  0x50   :  { %4344 = shalt.err (!%p4341_p6)
}
  0x51   :  { %60 = dma.hbm_to_vmem [thread:$0]  %s4887_s3, 4096, %s55_s24, [#allocation8], %s4465_s8, %s4465_s8, %s4466_s20  }
  0x52   :  { %s4353_s1 = scalar_lea.vmem %s77_s10, 65536  ;;  %p4358_p8 = scmp.lt.s32.totalorder %s77_s10, %s77_s10 }
  0x53   :  { %p4354_p7 = scmp.ne.s32.totalorder %s77_s10, %s4353_s1  ;;  %p4359_p9 = scmp.lt.s32.totalorder %s4353_s1, %s4353_s1 }
  0x55   :  { %p4360_p10 = por %p4359_p9, %p4358_p8 }
  0x57   :  { %p4361_p11 = pnand %p4360_p10, %p4354_p7 }
  0x59   :  { %4364 = shalt.err (!%p4361_p11)
}
  0x5a   :  { %s4469_s27 = smov 1024   ;;  %s4470_s28 = smov 64  }
  0x5b   :  { %82 = dma.hbm_to_vmem [thread:$0]  %s4889_s5, 65536, %s77_s10, [#allocation11], %s4469_s27, %s4469_s27, %s4470_s28  }
  0x5c   :  { %s4471_s14 = smov [#allocation15]  }
  0x5d   :  { %s98_s15 = sshll.u32 %s4471_s14, 4  ;;  %s99_s15 = int_to_ptr.vmem [resolvable:$true] %s98_s15 }
  0x5e   :  { %s4373_s16 = scalar_lea.vmem %s99_s15, 81920  ;;  %p4378_p13 = scmp.lt.s32.totalorder %s99_s15, %s99_s15 }
  0x5f   :  { %p4374_p12 = scmp.ne.s32.totalorder %s99_s15, %s4373_s16  ;;  %p4379_p0 = scmp.lt.s32.totalorder %s4373_s16, %s4373_s16 }
  0x61   :  { %p4380_p1 = por %p4379_p0, %p4378_p13 }
  0x63   :  { %p4381_p2 = pnand %p4380_p1, %p4374_p12 }
  0x65   :  { %4384 = shalt.err (!%p4381_p2)
}
  0x66   :  { %s4472_s3 = smov 640   ;;  %s4473_s6 = smov 40  }
  0x67   :  { %104 = dma.hbm_to_vmem [thread:$0]  %s4891_s7, 81920, %s99_s15, [#allocation14], %s4472_s3, %s4472_s3, %s4473_s6  }
  0x68   :  { %s4474_s19 = smov [#allocation18]   ;;  %s4475_s5 = smov [#allocation21]  }
  0x69   :  { %s120_s21 = sshll.u32 %s4474_s19, 4  ;;  %s142_s22 = sshll.u32 %s4475_s5, 4  ;;  %s121_s21 = int_to_ptr.vmem [resolvable:$true] %s120_s21  ;;  %s143_s22 = int_to_ptr.vmem [resolvable:$true] %s142_s22 }
  0x6a   :  { %s4393_s23 = scalar_lea.vmem %s121_s21, 2048  ;;  %p4398_p4 = scmp.lt.s32.totalorder %s121_s21, %s121_s21 }
  0x6b   :  { %p4394_p3 = scmp.ne.s32.totalorder %s121_s21, %s4393_s23  ;;  %p4399_p5 = scmp.lt.s32.totalorder %s4393_s23, %s4393_s23 }
  0x6d   :  { %p4400_p6 = por %p4399_p5, %p4398_p4 }
  0x6f   :  { %p4401_p7 = pnand %p4400_p6, %p4394_p3 }
  0x71   :  { %4404 = shalt.err (!%p4401_p7)
}
  0x72   :  { %126 = dma.hbm_to_vmem [thread:$0]  %s4893_s9, 2048, %s121_s21, [#allocation17], %s4465_s8, %s4465_s8, %s4466_s20  }
  0x73   :  { %s4413_s7 = scalar_lea.vmem %s143_s22, 8192  ;;  %p4418_p9 = scmp.lt.s32.totalorder %s143_s22, %s143_s22 }
  0x74   :  { %p4414_p8 = scmp.ne.s32.totalorder %s143_s22, %s4413_s7  ;;  %p4419_p10 = scmp.lt.s32.totalorder %s4413_s7, %s4413_s7 }
  0x76   :  { %p4420_p11 = por %p4419_p10, %p4418_p9 }
  0x78   :  { %p4421_p12 = pnand %p4420_p11, %p4414_p8 }
  0x7a   :  { %4424 = shalt.err (!%p4421_p12)
}
  0x7b   :  { %148 = dma.hbm_to_vmem [thread:$0]  %s4895_s11, 8192, %s143_s22, [#allocation20], %s4465_s8, %s4465_s8, %s4466_s20  }
  0x7c   :  { %s4476_s26 = smov [#allocation22]  }
  0x7d   :  { %s155_s4 = sshll.u32 %s4476_s26, 4  ;;  %s156_s4 = int_to_ptr.vmem [resolvable:$true] %s155_s4 }
  0x7e   :  { %s4433_s1 = scalar_lea.vmem %s156_s4, 16  ;;  %s4437_s9 = scalar_lea.vmem %s156_s4, 32 }
  0x7f   :  { %p4434_p13 = scmp.ne.s32.totalorder %s156_s4, %s4433_s1  ;;  %p4438_p0 = scmp.lt.s32.totalorder %s156_s4, %s156_s4 }
  0x80   :  { %p4439_p1 = scmp.lt.s32.totalorder %s4437_s9, %s4433_s1 }
  0x82   :  { %p4440_p2 = por %p4439_p1, %p4438_p0 }
  0x84   :  { %p4441_p3 = pnand %p4440_p2, %p4434_p13 }
  0x86   :  { %4444 = shalt.err (!%p4441_p3)
}
  0x87   :  { %158 = dma.hbm_to_vmem [thread:$0]  %s4896_s12, 16, %s156_s4, [#allocation23]  }
  0x88   :  { %4445 = dma.done.wait [#allocation6], 768  }
  0x89   :  { %4446 = vsyncadd [#allocation6], 4294966528 }
  0x8a   :  { %4447 = dma.done.wait [#allocation8], 4112  }
  0x8b   :  { %4448 = vsyncadd [#allocation8], 4294963184 }
  0x8c   :  { %4449 = dma.done.wait [#allocation11], 65552  }
  0x8d   :  { %4450 = vsyncadd [#allocation11], 4294901744 }
  0x8e   :  { %4451 = dma.done.wait [#allocation14], 82048  }
  0x8f   :  { %4452 = vsyncadd [#allocation14], 4294885248 }
  0x90   :  { %4453 = dma.done.wait [#allocation17], 2128  }
  0x91   :  { %4454 = vsyncadd [#allocation17], 4294965168 }
  0x92   :  { %4455 = dma.done.wait [#allocation20], 8208  }
  0x93   :  { %4456 = vsyncadd [#allocation20], 4294959088 }
  0x94   :  { %4457 = dma.done.wait [#allocation23], 16  }
  0x95   :  { %4458 = vsyncadd [#allocation23], 4294967280  ;;  %v4477_v0 = vmov 0.0   ;;  %vm4478_vm0 = vmmov 0   ;;  %v203_v1 = vld [vmem:[#allocation5 + $0x28] sm:$0xff]  ;;  %v202_v2 = vld [vmem:[#allocation5 + $0x20] sm:$0xff] }
  0x96   :  { %4042 = vmatprep.subr.mxu0 %v4477_v0  ;;  %4054 = vmatprep.mubr.msk.f32.mxu0 %vm4478_vm0, %v4477_v0  ;;  %v201_v3 = vld [vmem:[#allocation5 + $0x18] sm:$0xff]  ;;  %v200_v4 = vld [vmem:[#allocation5 + $0x10] sm:$0xff]  ;;  %v199_v5 = vld [vmem:[#allocation5 + $0x8] sm:$0xff]  ;;  %vm211_vm1 = vcmask 392192   ;;  %vm304_vm2 = vcmask 523264   ;;  %vm307_vm3 = vcmask 517120  }
  0x97   :  { %4101 = vmatprep.subr.mxu1 %v4477_v0  ;;  %4117 = vmatprep.mubr.msk.f32.mxu1 %vm4478_vm0, %v4477_v0  ;;  %v198_v6 = vld [vmem:[#allocation5] sm:$0xff]  ;;  %v195_v7 = vld [vmem:[%s4884_s0] sm:$0xff]  ;;  %v197_v9 = vld [vmem:[%s4884_s0 + $0x10] sm:$0x3]  ;;  %vm3373_vm4 = vcmask 1041408  }
  0x98   :  { %4043 = vmatpush3.msra.mxu0 %v203_v1  ;;  %v196_v8 = vld [vmem:[%s4884_s0 + $0x8] sm:$0xff]  ;;  %v342_v10 = vld [vmem:[#allocation9 + $0x78] sm:$0xff]  ;;  %v339_v13 = vld [vmem:[#allocation9 + $0x60] sm:$0xff] }
  0x99   :  { %4044 = vmatprep.subr.mxu0 %v4477_v0  ;;  %v341_v11 = vld [vmem:[#allocation9 + $0x70] sm:$0xff]  ;;  %v340_v12 = vld [vmem:[#allocation9 + $0x68] sm:$0xff]  ;;  %v338_v14 = vld [vmem:[#allocation9 + $0x58] sm:$0xff] }
  0x9a   :  { %4045 = vmatpush3.msra.mxu0 %v202_v2  ;;  %v505_v15 = vld [vmem:[#allocation9 + $0xb8] sm:$0xff]  ;;  %v337_v16 = vld [vmem:[#allocation9 + $0x50] sm:$0xff]  ;;  %v336_v18 = vld [vmem:[#allocation9 + $0x48] sm:$0xff] }
  0x9b   :  { %4046 = vmatprep.subr.mxu0 %v4477_v0  ;;  %4102 = vmatpush3.msra.mxu1 %v505_v15  ;;  %v504_v17 = vld [vmem:[#allocation9 + $0xb0] sm:$0xff]  ;;  %v503_v19 = vld [vmem:[#allocation9 + $0xa8] sm:$0xff]  ;;  %v335_v20 = vld [vmem:[#allocation9 + $0x40] sm:$0xff] }
  0x9c   :  { %4047 = vmatpush3.msra.mxu0 %v201_v3  ;;  %4103 = vmatprep.subr.mxu1 %v4477_v0  ;;  %v502_v21 = vld [vmem:[#allocation9 + $0xa0] sm:$0xff]  ;;  %v501_v22 = vld [vmem:[#allocation9 + $0x98] sm:$0xff]  ;;  %v500_v23 = vld [vmem:[#allocation9 + $0x90] sm:$0xff] }
  0x9d   :  { %4048 = vmatprep.subr.mxu0 %v4477_v0  ;;  %4104 = vmatpush3.msra.mxu1 %v504_v17  ;;  %v499_v24 = vld [vmem:[#allocation9 + $0x88] sm:$0xff]  ;;  %v498_v25 = vld [vmem:[#allocation9 + $0x80] sm:$0xff]  ;;  %v3758_v27 = vld [vmem:[#allocation7] ss:$0 sm:$0xff] }
  0x9e   :  { %4049 = vmatpush3.msra.mxu0 %v200_v4  ;;  %4105 = vmatprep.subr.mxu1 %v4477_v0  ;;  %v827_v26 = vld [vmem:[#allocation12 + $0x3c8] sm:$0xff]  ;;  %v325_v51 = vld [vmem:[#allocation9 + $0x38] sm:$0xff]  ;;  %v322_v57 = vld [vmem:[#allocation9 + $0x20] sm:$0xff] }
  0x9f   :  { %4050 = vmatprep.subr.mxu0 %v4477_v0  ;;  %4106 = vmatpush3.msra.mxu1 %v503_v19  ;;  %v324_v55 = vld [vmem:[#allocation9 + $0x30] sm:$0xff]  ;;  %v323_v56 = vld [vmem:[#allocation9 + $0x28] sm:$0xff]  ;;  %v321_v58 = vld [vmem:[#allocation9 + $0x18] sm:$0xff] }
  0xa0   :  { %4051 = vmatpush3.msra.mxu0 %v199_v5  ;;  %4107 = vmatprep.subr.mxu1 %v4477_v0  ;;  %v826_v61 = vld [vmem:[#allocation12 + $0x3c0] sm:$0xff]  ;;  %v819_v62 = vld [vmem:[#allocation12 + $0x388] sm:$0xff]  ;;  %v592_v15 = vld [vmem:[#allocation9 + $0xd8] sm:$0xff] }
  0xa1   :  { %4052 = vmatprep.subr.mxu0 %v4477_v0  ;;  %4108 = vmatpush3.msra.mxu1 %v502_v21  ;;  %v320_v3 = vld [vmem:[#allocation9 + $0x10] sm:$0xff]  ;;  %v818_v4 = vld [vmem:[#allocation12 + $0x380] sm:$0xff] }
  0xa2   :  { %4053 = vmatpush3.msra.mxu0 %v198_v6  ;;  %4109 = vmatprep.subr.mxu1 %v4477_v0  ;;  %v811_v5 = vld [vmem:[#allocation12 + $0x348] sm:$0xff] }
  0xa3   :  { %4055 = vmatmul.mubr.msk.f32.vlgmr.msra.gmra.mxu0 %vm211_vm1, %v195_v7  ;;  %4063 = vmatprep.subr.mxu0 %v4477_v0  ;;  %v319_v6 = vld [vmem:[#allocation9 + $0x8] sm:$0xff] }
  0xa4   :  { %4057 = vmatprep.mubr.msk.f32.mxu0 %vm4478_vm0, %v4477_v0  ;;  %4064 = vmatpush3.msra.mxu0 %v342_v10  ;;  %v810_v7 = vld [vmem:[#allocation12 + $0x340] sm:$0xff]  ;;  %v1083_v19 = vld [vmem:[#allocation12 + $0xbc8] sm:$0xff] }
  0xa5   :  { %4065 = vmatprep.subr.mxu0 %v4477_v0  ;;  %4110 = vmatpush3.msra.mxu1 %v501_v22  ;;  %v802_v10 = vld [vmem:[#allocation12 + $0x300] sm:$0xff]  ;;  %v1075_v22 = vld [vmem:[#allocation12 + $0xb88] sm:$0xff] }
  0xa6   :  { %4066 = vmatpush3.msra.mxu0 %v341_v11  ;;  %4111 = vmatprep.subr.mxu1 %v4477_v0  ;;  %v596_v11 = vld [vmem:[#allocation9 + $0xf8] sm:$0xff]  ;;  %v590_v17 = vld [vmem:[#allocation9 + $0xc8] sm:$0xff] }
  0xa7   :  { %4058 = vmatmul.mubr.msk.f32.gmra.mxu0 %vm211_vm1, %v196_v8  ;;  %4067 = vmatprep.subr.mxu0 %v4477_v0  ;;  %v803_v8 = vld [vmem:[#allocation12 + $0x308] sm:$0xff] }
  0xa8   :  { %4060 = vmatprep.mubr.msk.f32.mxu0 %vm4478_vm0, %v4477_v0  ;;  %4068 = vmatpush3.msra.mxu0 %v340_v12  ;;  %v595_v12 = vld [vmem:[#allocation9 + $0xf0] sm:$0xff] }
  0xa9   :  { %4069 = vmatprep.subr.mxu0 %v4477_v0  ;;  %4112 = vmatpush3.msra.mxu1 %v500_v23  ;;  %v1074_v23 = vld [vmem:[#allocation12 + $0xb80] sm:$0xff] }
  0xaa   :  { %4070 = vmatpush3.msra.mxu0 %v339_v13  ;;  %4113 = vmatprep.subr.mxu1 %v4477_v0  ;;  %v594_v13 = vld [vmem:[#allocation9 + $0xe8] sm:$0xff] }
  0xab   :  { %4061 = vmatmul.mubr.msk.f32.gmra.mxu0 %vm211_vm1, %v197_v9  ;;  %4071 = vmatprep.subr.mxu0 %v4477_v0  ;;  %v318_v9 = vld [vmem:[#allocation9] sm:$0xff] }
  0xac   :  { %4079 = vmatprep.mubr.msk.f32.mxu0 %vm4478_vm0, %v4477_v0  ;;  %4072 = vmatpush3.msra.mxu0 %v338_v14  ;;  %v593_v14 = vld [vmem:[#allocation9 + $0xe0] sm:$0xff] }
  0xad   :  { %4073 = vmatprep.subr.mxu0 %v4477_v0  ;;  %4114 = vmatpush3.msra.mxu1 %v499_v24  ;;  %v1067_v24 = vld [vmem:[#allocation12 + $0xb48] sm:$0xff] }
  0xae   :  { %4074 = vmatpush3.msra.mxu0 %v337_v16  ;;  %4115 = vmatprep.subr.mxu1 %v4477_v0  ;;  %v591_v16 = vld [vmem:[#allocation9 + $0xd0] sm:$0xff] }
  0xaf   :  { %4075 = vmatprep.subr.mxu0 %v4477_v0  ;;  %4116 = vmatpush3.msra.mxu1 %v498_v25  ;;  %v1066_v25 = vld [vmem:[#allocation12 + $0xb40] sm:$0xff] }
  0xb0   :  { %4076 = vmatpush3.msra.mxu0 %v336_v18  ;;  %1282 = vmatprep.subr.mxu1 %v827_v26  ;;  %v589_v18 = vld [vmem:[#allocation9 + $0xc0] sm:$0xff]  ;;  %v795_v26 = vld [vmem:[#allocation12 + $0x2c8] sm:$0xff] }
  0xb1   :  { %4077 = vmatprep.subr.mxu0 %v4477_v0 }
  0xb2   :  { %4078 = vmatpush3.msra.mxu0 %v335_v20  ;;  %v1082_v20 = vld [vmem:[#allocation12 + $0xbc0] sm:$0xff] }
  0xb3   :  { %4082 = vmatprep.subr.mxu0 %v4477_v0 }
 0x163   :  { %v287_v28 = vpop.f32.mrf.mxu0 }
 0x164   :  { %v288_v29 = vadd.f32 %v3758_v27, %v287_v28  ;;  %v794_v28 = vld [vmem:[#allocation12 + $0x2c0] sm:$0xff] }
 0x165   :  { %v4056_v30 = vpop.f32.mrf.mxu0 }
 0x166   :  { %v301_v31 = vmax.f32 %v288_v29, 0.0  ;;  %v1058_v29 = vld [vmem:[#allocation12 + $0xb00] sm:$0xff]  ;;  %v787_v30 = vld [vmem:[#allocation12 + $0x288] sm:$0xff] }
 0x167   :  { %v292_v32 = vpop.f32.mrf.mxu0 }
 0x168   :  { %305 = vst.msk [vmem:[#allocation2] sm:$0xff] %vm304_vm2, %v301_v31  ;;  %v293_v33 = vadd.f32 %v3758_v27, %v292_v32  ;;  %v1051_v31 = vld [vmem:[#allocation12 + $0xac8] sm:$0xff]  ;;  %v786_v32 = vld [vmem:[#allocation12 + $0x280] sm:$0xff] }
 0x169   :  { %v4059_v34 = vpop.f32.mrf.mxu0 }
 0x16a   :  { %v302_v35 = vmax.f32 %v293_v33, 0.0  ;;  %v1050_v33 = vld [vmem:[#allocation12 + $0xac0] sm:$0xff]  ;;  %v779_v34 = vld [vmem:[#allocation12 + $0x248] sm:$0xff] }
 0x16b   :  { %v297_v36 = vpop.f32.mrf.mxu0 }
 0x16c   :  { %306 = vst.msk [vmem:[#allocation2 + $0x8] sm:$0xff] %vm304_vm2, %v302_v35  ;;  %v298_v37 = vadd.f32 %v3758_v27, %v297_v36  ;;  %v1059_v27 = vld [vmem:[#allocation12 + $0xb08] sm:$0xff]  ;;  %v778_v36 = vld [vmem:[#allocation12 + $0x240] sm:$0xff] }
 0x16d   :  { %v4062_v38 = vpop.f32.mrf.mxu0  ;;  %v1043_v35 = vld [vmem:[#allocation12 + $0xa88] sm:$0xff] }
 0x16e   :  { %v303_v39 = vmax.f32 %v298_v37, 0.0  ;;  %v1042_v37 = vld [vmem:[#allocation12 + $0xa80] sm:$0xff]  ;;  %v771_v38 = vld [vmem:[#allocation12 + $0x208] sm:$0xff] }
 0x16f   :  { %v309_v40 = vld [vmem:[#allocation2] sm:$0x3]  ;;  %v311_v41 = vld [vmem:[#allocation2 + $0x2] sm:$0x3]  ;;  %v313_v42 = vld [vmem:[#allocation2 + $0x6] sm:$0x3] }
 0x170   :  { %310 = vst.msk [vmem:[#allocation3] sm:$0x3] %vm307_vm3, %v309_v40  ;;  %312 = vst.msk [vmem:[#allocation3 + $0x2] sm:$0x3] %vm307_vm3, %v311_v41  ;;  %v326_v44 = vld [vmem:[#allocation2 + $0x2] sm:$0x3] }
 0x171   :  { %314 = vst.msk [vmem:[#allocation3 + $0x4] sm:$0x3] %vm307_vm3, %v313_v42  ;;  %308 = vst.msk [vmem:[#allocation2 + $0x10] sm:$0x3] %vm307_vm3, %v303_v39  ;;  %v328_v45 = vld [vmem:[#allocation2 + $0x4] sm:$0x3] }
 0x172   :  { %v489_v49 = vld [vmem:[#allocation2 + $0x6] sm:$0x3]  ;;  %v770_v40 = vld [vmem:[#allocation12 + $0x200] sm:$0xff] }
 0x173   :  { %v315_v43 = vld [vmem:[#allocation2 + $0x8] sm:$0x3]  ;;  %v332_v48 = vld [vmem:[#allocation2 + $0xa] sm:$0x3]  ;;  %v493_v52 = vld [vmem:[#allocation2 + $0xc] sm:$0x3] }
 0x174   :  { %316 = vst.msk [vmem:[#allocation3 + $0x6] sm:$0x3] %vm307_vm3, %v315_v43  ;;  %v330_v47 = vld [vmem:[#allocation2 + $0x8] sm:$0x3]  ;;  %v495_v53 = vld [vmem:[#allocation2 + $0xe] sm:$0x3] }
 0x175   :  { %v491_v50 = vld [vmem:[#allocation2 + $0x8] sm:$0x3]  ;;  %v582_v1 = vld [vmem:[#allocation2 + $0xa] sm:$0x3]  ;;  %v584_v2 = vld [vmem:[#allocation2 + $0xe] sm:$0x3] }
 0x176   :  { %v580_v60 = vld [vmem:[#allocation2 + $0x8] sm:$0x3]  ;;  %v1034_v41 = vld [vmem:[#allocation12 + $0xa40] sm:$0xff] }
 0x177   :  { %v1035_v39 = vld [vmem:[#allocation12 + $0xa48] sm:$0xff] }
 0x178   :  { %v586_v59 = vld [vmem:[#allocation2 + $0x10] sm:$0x3]  ;;  %v763_v42 = vld [vmem:[#allocation12 + $0x1c8] sm:$0xff] }
 0x179   :  { %v1027_v43 = vld [vmem:[#allocation12 + $0xa08] sm:$0xff] }
 0x17b   :  { %v4647_v46 = vld [vmem:[#allocation3] sm:$0xff] }
 0x17c   :  { %331 = vst.msk [vmem:[#allocation3 + $0x4] sm:$0x3] %vm307_vm3, %v330_v47  ;;  %333 = vst.msk [vmem:[#allocation3 + $0x6] sm:$0x3] %vm307_vm3, %v332_v48  ;;  %v1019_v47 = vld [vmem:[#allocation12 + $0x9c8] sm:$0xff]  ;;  %v754_v48 = vld [vmem:[#allocation12 + $0x180] sm:$0xff] }
 0x17d   :  { %327 = vst.msk [vmem:[#allocation3] sm:$0x3] %vm307_vm3, %v326_v44  ;;  %329 = vst.msk [vmem:[#allocation3 + $0x2] sm:$0x3] %vm307_vm3, %v328_v45  ;;  %v762_v44 = vld [vmem:[#allocation12 + $0x1c0] sm:$0xff] }
 0x17e   :  { %v1026_v45 = vld [vmem:[#allocation12 + $0xa00] sm:$0xff] }
 0x184   :  { %v334_v54 = vld [vmem:[#allocation3] sm:$0xff] }
 0x185   :  { %4080 = vmatmul.mubr.msk.f32.vlgmr.msra.gmra.mxu0 %vm304_vm2, %v334_v54  ;;  %490 = vst.msk [vmem:[#allocation3] sm:$0x3] %vm307_vm3, %v489_v49  ;;  %492 = vst.msk [vmem:[#allocation3 + $0x2] sm:$0x3] %vm307_vm3, %v491_v50  ;;  %v1018_v49 = vld [vmem:[#allocation12 + $0x9c0] sm:$0xff]  ;;  %v747_v50 = vld [vmem:[#allocation12 + $0x148] sm:$0xff] }
 0x186   :  { %494 = vst.msk [vmem:[#allocation3 + $0x4] sm:$0x3] %vm307_vm3, %v493_v52  ;;  %496 = vst.msk [vmem:[#allocation3 + $0x6] sm:$0x3] %vm307_vm3, %v495_v53  ;;  %4083 = vmatpush3.msra.mxu0 %v325_v51  ;;  %4098 = vmatprep.mubr.msk.f32.mxu0 %vm4478_vm0, %v4477_v0  ;;  %v1011_v51 = vld [vmem:[#allocation12 + $0x988] sm:$0xff]  ;;  %v746_v52 = vld [vmem:[#allocation12 + $0x140] sm:$0xff] }
 0x187   :  { %4084 = vmatprep.subr.mxu0 %v4477_v0  ;;  %v1010_v53 = vld [vmem:[#allocation12 + $0x980] sm:$0xff]  ;;  %v739_v54 = vld [vmem:[#allocation12 + $0x108] sm:$0xff] }
 0x188   :  { %4085 = vmatpush3.msra.mxu0 %v324_v55  ;;  %v1003_v55 = vld [vmem:[#allocation12 + $0x948] sm:$0xff] }
 0x189   :  { %4086 = vmatprep.subr.mxu0 %v4477_v0 }
 0x18a   :  { %4087 = vmatpush3.msra.mxu0 %v323_v56  ;;  %v738_v56 = vld [vmem:[#allocation12 + $0x100] sm:$0xff] }
 0x18b   :  { %4088 = vmatprep.subr.mxu0 %v4477_v0 }
 0x18c   :  { %4089 = vmatpush3.msra.mxu0 %v322_v57  ;;  %v1002_v57 = vld [vmem:[#allocation12 + $0x940] sm:$0xff] }
 0x18d   :  { %v497_v63 = vld [vmem:[#allocation3] sm:$0xff]  ;;  %4090 = vmatprep.subr.mxu0 %v4477_v0 }
 0x18e   :  { %4118 = vmatmul.mubr.msk.f32.vlgmr.msra.gmra.mxu1 %vm304_vm2, %v497_v63  ;;  %581 = vst.msk [vmem:[#allocation3] sm:$0x3] %vm307_vm3, %v580_v60  ;;  %583 = vst.msk [vmem:[#allocation3 + $0x2] sm:$0x3] %vm307_vm3, %v582_v1  ;;  %4091 = vmatpush3.msra.mxu0 %v321_v58  ;;  %v731_v58 = vld [vmem:[#allocation12 + $0xc8] sm:$0xff]  ;;  %v730_v60 = vld [vmem:[#allocation12 + $0xc0] sm:$0xff] }
 0x18f   :  { %585 = vst.msk [vmem:[#allocation3 + $0x4] sm:$0x3] %vm307_vm3, %v584_v2  ;;  %587 = vst.msk [vmem:[#allocation3 + $0x6] sm:$0x3] %vm307_vm3, %v586_v59  ;;  %1283 = vmatpush1.msra.mxu1 %v826_v61  ;;  %4092 = vmatprep.subr.mxu0 %v4477_v0  ;;  %v995_v59 = vld [vmem:[#allocation12 + $0x908] sm:$0xff]  ;;  %v994_v61 = vld [vmem:[#allocation12 + $0x900] sm:$0xff] }
 0x190   :  { %1284 = vmatprep.subr.mxu1 %v819_v62  ;;  %4093 = vmatpush3.msra.mxu0 %v320_v3  ;;  %v723_v62 = vld [vmem:[#allocation12 + $0x88] sm:$0xff]  ;;  %v722_v1 = vld [vmem:[#allocation12 + $0x80] sm:$0xff] }
 0x191   :  { %1285 = vmatpush1.msra.mxu1 %v818_v4  ;;  %4094 = vmatprep.subr.mxu0 %v4477_v0  ;;  %v987_v63 = vld [vmem:[#allocation12 + $0x8c8] sm:$0xff]  ;;  %v986_v2 = vld [vmem:[#allocation12 + $0x8c0] sm:$0xff] }
 0x192   :  { %1286 = vmatprep.subr.mxu1 %v811_v5  ;;  %4095 = vmatpush3.msra.mxu0 %v319_v6  ;;  %v715_v3 = vld [vmem:[#allocation12 + $0x48] sm:$0xff]  ;;  %v714_v5 = vld [vmem:[#allocation12 + $0x40] sm:$0xff] }
 0x193   :  { %1287 = vmatpush1.msra.mxu1 %v810_v7  ;;  %4096 = vmatprep.subr.mxu0 %v4477_v0  ;;  %v979_v4 = vld [vmem:[#allocation12 + $0x888] sm:$0xff]  ;;  %v978_v6 = vld [vmem:[#allocation12 + $0x880] sm:$0xff] }
 0x194   :  { %1288 = vmatprep.subr.mxu1 %v803_v8  ;;  %4097 = vmatpush3.msra.mxu0 %v318_v9  ;;  %v707_v7 = vld [vmem:[#allocation12 + $0x8] sm:$0xff]  ;;  %v706_v9 = vld [vmem:[#allocation12] sm:$0xff] }
 0x195   :  { %1289 = vmatpush1.msra.mxu1 %v802_v10  ;;  %4099 = vmatmul.mubr.msk.f32.vlgmr.msra.gmra.mxu0 %vm304_vm2, %v4647_v46  ;;  %v755_v46 = vld [vmem:[#allocation12 + $0x188] sm:$0xff]  ;;  %v970_v10 = vld [vmem:[#allocation12 + $0x840] sm:$0xff] }
 0x196   :  { %4120 = vmatprep.subr.mxu0 %v4477_v0  ;;  %4136 = vmatprep.mubr.msk.f32.mxu0 %vm4478_vm0, %v4477_v0  ;;  %v588_v21 = vld [vmem:[#allocation3] sm:$0xff]  ;;  %v971_v8 = vld [vmem:[#allocation12 + $0x848] sm:$0xff] }
 0x197   :  { %4121 = vmatpush3.msra.mxu0 %v596_v11  ;;  %1290 = vmatprep.subr.mxu1 %v795_v26  ;;  %v955_v11 = vld [vmem:[#allocation12 + $0x7c8] sm:$0xff]  ;;  %v1194_v26 = vld [vmem:[#allocation12 + $0xf40] sm:$0xff] }
 0x198   :  { %4122 = vmatprep.subr.mxu0 %v4477_v0  ;;  %1291 = vmatpush1.msra.mxu1 %v794_v28  ;;  %v1187_v28 = vld [vmem:[#allocation12 + $0xf08] sm:$0xff] }
 0x199   :  { %4123 = vmatpush3.msra.mxu0 %v595_v12  ;;  %1292 = vmatprep.subr.mxu1 %v787_v30  ;;  %v963_v12 = vld [vmem:[#allocation12 + $0x808] sm:$0xff]  ;;  %v1186_v30 = vld [vmem:[#allocation12 + $0xf00] sm:$0xff] }
 0x19a   :  { %4124 = vmatprep.subr.mxu0 %v4477_v0  ;;  %1293 = vmatpush1.msra.mxu1 %v786_v32  ;;  %v1179_v32 = vld [vmem:[#allocation12 + $0xec8] sm:$0xff] }
 0x19b   :  { %4125 = vmatpush3.msra.mxu0 %v594_v13  ;;  %1294 = vmatprep.subr.mxu1 %v779_v34  ;;  %v954_v13 = vld [vmem:[#allocation12 + $0x7c0] sm:$0xff] }
 0x19c   :  { %4126 = vmatprep.subr.mxu0 %v4477_v0  ;;  %1295 = vmatpush1.msra.mxu1 %v778_v36  ;;  %v1178_v34 = vld [vmem:[#allocation12 + $0xec0] sm:$0xff]  ;;  %v1171_v36 = vld [vmem:[#allocation12 + $0xe88] sm:$0xff] }
 0x19d   :  { %4127 = vmatpush3.msra.mxu0 %v593_v14  ;;  %1296 = vmatprep.subr.mxu1 %v771_v38  ;;  %v962_v14 = vld [vmem:[#allocation12 + $0x800] sm:$0xff] }
 0x19e   :  { %4128 = vmatprep.subr.mxu0 %v4477_v0  ;;  %1297 = vmatpush1.msra.mxu1 %v770_v40  ;;  %v1170_v38 = vld [vmem:[#allocation12 + $0xe80] sm:$0xff]  ;;  %v1163_v40 = vld [vmem:[#allocation12 + $0xe48] sm:$0xff] }
 0x19f   :  { %4129 = vmatpush3.msra.mxu0 %v592_v15  ;;  %1298 = vmatprep.subr.mxu1 %v763_v42  ;;  %v947_v15 = vld [vmem:[#allocation12 + $0x788] sm:$0xff]  ;;  %v1162_v42 = vld [vmem:[#allocation12 + $0xe40] sm:$0xff] }
 0x1a0   :  { %4130 = vmatprep.subr.mxu0 %v4477_v0  ;;  %1299 = vmatpush1.msra.mxu1 %v762_v44  ;;  %v1155_v44 = vld [vmem:[#allocation12 + $0xe08] sm:$0xff] }
 0x1a1   :  { %4131 = vmatpush3.msra.mxu0 %v591_v16  ;;  %1300 = vmatprep.subr.mxu1 %v755_v46  ;;  %v1211_v16 = vld [vmem:[#allocation12 + $0xfc8] sm:$0xff]  ;;  %v1154_v46 = vld [vmem:[#allocation12 + $0xe00] sm:$0xff] }
 0x1a2   :  { %4132 = vmatprep.subr.mxu0 %v4477_v0  ;;  %1301 = vmatpush1.msra.mxu1 %v754_v48  ;;  %v1147_v48 = vld [vmem:[#allocation12 + $0xdc8] sm:$0xff] }
 0x1a3   :  { %4133 = vmatpush3.msra.mxu0 %v590_v17  ;;  %1302 = vmatprep.subr.mxu1 %v747_v50  ;;  %v946_v17 = vld [vmem:[#allocation12 + $0x780] sm:$0xff] }
 0x1a4   :  { %4134 = vmatprep.subr.mxu0 %v4477_v0  ;;  %1303 = vmatpush1.msra.mxu1 %v746_v52  ;;  %v1146_v50 = vld [vmem:[#allocation12 + $0xdc0] sm:$0xff]  ;;  %v1139_v52 = vld [vmem:[#allocation12 + $0xd88] sm:$0xff] }
 0x1a5   :  { %4135 = vmatpush3.msra.mxu0 %v589_v18  ;;  %1304 = vmatprep.subr.mxu1 %v739_v54  ;;  %v1210_v18 = vld [vmem:[#allocation12 + $0xfc0] sm:$0xff] }
 0x1a6   :  { %4137 = vmatmul.mubr.msk.f32.vlgmr.msra.gmra.mxu0 %vm304_vm2, %v588_v21  ;;  %1353 = vmatprep.subr.mxu0 %v1083_v19  ;;  %v939_v19 = vld [vmem:[#allocation12 + $0x748] sm:$0xff]  ;;  %v938_v21 = vld [vmem:[#allocation12 + $0x740] sm:$0xff] }
 0x1a7   :  { %1354 = vmatpush1.msra.mxu0 %v1082_v20  ;;  %1305 = vmatpush1.msra.mxu1 %v738_v56  ;;  %v1203_v20 = vld [vmem:[#allocation12 + $0xf88] sm:$0xff]  ;;  %v1138_v54 = vld [vmem:[#allocation12 + $0xd80] sm:$0xff] }
 0x1a8   :  { %1355 = vmatprep.subr.mxu0 %v1075_v22  ;;  %1306 = vmatprep.subr.mxu1 %v731_v58  ;;  %v1202_v22 = vld [vmem:[#allocation12 + $0xf80] sm:$0xff]  ;;  %v1131_v56 = vld [vmem:[#allocation12 + $0xd48] sm:$0xff] }
 0x1a9   :  { %1356 = vmatpush1.msra.mxu0 %v1074_v23  ;;  %1307 = vmatpush1.msra.mxu1 %v730_v60  ;;  %v931_v23 = vld [vmem:[#allocation12 + $0x708] sm:$0xff]  ;;  %v1130_v58 = vld [vmem:[#allocation12 + $0xd40] sm:$0xff] }
 0x1aa   :  { %1357 = vmatprep.subr.mxu0 %v1067_v24  ;;  %1308 = vmatprep.subr.mxu1 %v723_v62  ;;  %v1195_v24 = vld [vmem:[#allocation12 + $0xf48] sm:$0xff]  ;;  %v1122_v62 = vld [vmem:[#allocation12 + $0xd00] sm:$0xff] }
 0x1ab   :  { %1358 = vmatpush1.msra.mxu0 %v1066_v25  ;;  %1309 = vmatpush1.msra.mxu1 %v722_v1  ;;  %v930_v25 = vld [vmem:[#allocation12 + $0x700] sm:$0xff]  ;;  %v1123_v60 = vld [vmem:[#allocation12 + $0xd08] sm:$0xff] }
 0x1ac   :  { %1359 = vmatprep.subr.mxu0 %v1059_v27  ;;  %1310 = vmatprep.subr.mxu1 %v715_v3  ;;  %v923_v27 = vld [vmem:[#allocation12 + $0x6c8] sm:$0xff]  ;;  %v1114_v3 = vld [vmem:[#allocation12 + $0xcc0] sm:$0xff] }
 0x1ad   :  { %1360 = vmatpush1.msra.mxu0 %v1058_v29  ;;  %1311 = vmatpush1.msra.mxu1 %v714_v5  ;;  %v922_v29 = vld [vmem:[#allocation12 + $0x6c0] sm:$0xff]  ;;  %v1115_v1 = vld [vmem:[#allocation12 + $0xcc8] sm:$0xff] }
 0x1ae   :  { %1361 = vmatprep.subr.mxu0 %v1051_v31  ;;  %1312 = vmatprep.subr.mxu1 %v707_v7  ;;  %v915_v31 = vld [vmem:[#allocation12 + $0x688] sm:$0xff]  ;;  %v1106_v7 = vld [vmem:[#allocation12 + $0xc80] sm:$0xff] }
 0x1af   :  { %1362 = vmatpush1.msra.mxu0 %v1050_v33  ;;  %1313 = vmatpush1.msra.mxu1 %v706_v9  ;;  %v914_v33 = vld [vmem:[#allocation12 + $0x680] sm:$0xff]  ;;  %v1107_v5 = vld [vmem:[#allocation12 + $0xc88] sm:$0xff] }
 0x1b0   :  { %1363 = vmatprep.subr.mxu0 %v1043_v35  ;;  %1314 = vmatprep.subr.mxu1 %v955_v11  ;;  %v907_v35 = vld [vmem:[#allocation12 + $0x648] sm:$0xff]  ;;  %v1098_v11 = vld [vmem:[#allocation12 + $0xc40] sm:$0xff] }
 0x1b1   :  { %1364 = vmatpush1.msra.mxu0 %v1042_v37  ;;  %1315 = vmatpush2.msra.mxu1 %v954_v13  ;;  %v906_v37 = vld [vmem:[#allocation12 + $0x640] sm:$0xff]  ;;  %v1099_v9 = vld [vmem:[#allocation12 + $0xc48] sm:$0xff]  ;;  %v829_v13 = vld [vmem:[#allocation12 + $0x3d8] sm:$0xff] }
 0x1b2   :  { %1365 = vmatprep.subr.mxu0 %v1035_v39  ;;  %1316 = vmatprep.subr.mxu1 %v947_v15  ;;  %v899_v39 = vld [vmem:[#allocation12 + $0x608] sm:$0xff]  ;;  %v1085_v15 = vld [vmem:[#allocation12 + $0xbd8] sm:$0xff] }
 0x1b3   :  { %1366 = vmatpush1.msra.mxu0 %v1034_v41  ;;  %1317 = vmatpush2.msra.mxu1 %v946_v17  ;;  %v898_v41 = vld [vmem:[#allocation12 + $0x600] sm:$0xff] }
 0x1b4   :  { %1367 = vmatprep.subr.mxu0 %v1027_v43  ;;  %1318 = vmatprep.subr.mxu1 %v939_v19  ;;  %v891_v43 = vld [vmem:[#allocation12 + $0x5c8] sm:$0xff] }
 0x1b5   :  { %1368 = vmatpush1.msra.mxu0 %v1026_v45  ;;  %1319 = vmatpush2.msra.mxu1 %v938_v21  ;;  %v890_v45 = vld [vmem:[#allocation12 + $0x5c0] sm:$0xff] }
 0x1b6   :  { %1369 = vmatprep.subr.mxu0 %v1019_v47  ;;  %1320 = vmatprep.subr.mxu1 %v931_v23  ;;  %v883_v47 = vld [vmem:[#allocation12 + $0x588] sm:$0xff]  ;;  %v4479_v23 = vmov 1983009808  }
 0x1b7   :  { %1370 = vmatpush1.msra.mxu0 %v1018_v49  ;;  %1321 = vmatpush2.msra.mxu1 %v930_v25  ;;  %v882_v49 = vld [vmem:[#allocation12 + $0x580] sm:$0xff]  ;;  %v685_v25 = vlaneseq }
 0x1b8   :  { %1371 = vmatprep.subr.mxu0 %v1011_v51  ;;  %1322 = vmatprep.subr.mxu1 %v923_v27  ;;  %v875_v51 = vld [vmem:[#allocation12 + $0x548] sm:$0xff] }
 0x1b9   :  { %1372 = vmatpush1.msra.mxu0 %v1010_v53  ;;  %1323 = vmatpush2.msra.mxu1 %v922_v29  ;;  %v874_v53 = vld [vmem:[#allocation12 + $0x540] sm:$0xff] }
 0x1ba   :  { %1373 = vmatprep.subr.mxu0 %v1003_v55  ;;  %1324 = vmatprep.subr.mxu1 %v915_v31  ;;  %v867_v55 = vld [vmem:[#allocation12 + $0x508] sm:$0xff] }
 0x1bb   :  { %1374 = vmatpush1.msra.mxu0 %v1002_v57  ;;  %1325 = vmatpush2.msra.mxu1 %v914_v33  ;;  %v866_v57 = vld [vmem:[#allocation12 + $0x500] sm:$0xff] }
 0x1bc   :  { %1375 = vmatprep.subr.mxu0 %v995_v59  ;;  %1326 = vmatprep.subr.mxu1 %v907_v35  ;;  %v859_v59 = vld [vmem:[#allocation12 + $0x4c8] sm:$0xff] }
 0x1bd   :  { %1376 = vmatpush1.msra.mxu0 %v994_v61  ;;  %1327 = vmatpush2.msra.mxu1 %v906_v37  ;;  %v858_v61 = vld [vmem:[#allocation12 + $0x4c0] sm:$0xff] }
 0x1be   :  { %1377 = vmatprep.subr.mxu0 %v987_v63  ;;  %1328 = vmatprep.subr.mxu1 %v899_v39  ;;  %v851_v63 = vld [vmem:[#allocation12 + $0x488] sm:$0xff] }
 0x1bf   :  { %1378 = vmatpush1.msra.mxu0 %v986_v2  ;;  %1329 = vmatpush2.msra.mxu1 %v898_v41  ;;  %v850_v2 = vld [vmem:[#allocation12 + $0x480] sm:$0xff] }
 0x1c0   :  { %1379 = vmatprep.subr.mxu0 %v979_v4  ;;  %1330 = vmatprep.subr.mxu1 %v891_v43  ;;  %v843_v4 = vld [vmem:[#allocation12 + $0x448] sm:$0xff] }
 0x1c1   :  { %1380 = vmatpush1.msra.mxu0 %v978_v6  ;;  %1331 = vmatpush2.msra.mxu1 %v890_v45  ;;  %v842_v6 = vld [vmem:[#allocation12 + $0x440] sm:$0xff] }
 0x1c2   :  { %1381 = vmatprep.subr.mxu0 %v971_v8  ;;  %1332 = vmatprep.subr.mxu1 %v883_v47  ;;  %v835_v8 = vld [vmem:[#allocation12 + $0x408] sm:$0xff] }
 0x1c3   :  { %1382 = vmatpush1.msra.mxu0 %v970_v10  ;;  %1333 = vmatpush2.msra.mxu1 %v882_v49  ;;  %v834_v10 = vld [vmem:[#allocation12 + $0x400] sm:$0xff]  ;;  %v820_v49 = vld [vmem:[#allocation12 + $0x390] sm:$0xff] }
 0x1c4   :  { %1383 = vmatprep.subr.mxu0 %v963_v12  ;;  %1334 = vmatprep.subr.mxu1 %v875_v51  ;;  %v1091_v12 = vld [vmem:[#allocation12 + $0xc08] sm:$0xff]  ;;  %v813_v51 = vld [vmem:[#allocation12 + $0x358] sm:$0xff] }
 0x1c5   :  { %1384 = vmatpush1.msra.mxu0 %v962_v14  ;;  %1335 = vmatpush2.msra.mxu1 %v874_v53  ;;  %v1090_v14 = vld [vmem:[#allocation12 + $0xc00] sm:$0xff]  ;;  %v812_v53 = vld [vmem:[#allocation12 + $0x350] sm:$0xff] }
 0x1c6   :  { %1385 = vmatprep.subr.mxu0 %v1211_v16  ;;  %1336 = vmatprep.subr.mxu1 %v867_v55  ;;  %v805_v55 = vld [vmem:[#allocation12 + $0x318] sm:$0xff] }
 0x1c7   :  { %1386 = vmatpush2.msra.mxu0 %v1210_v18  ;;  %1337 = vmatpush2.msra.mxu1 %v866_v57  ;;  %v804_v57 = vld [vmem:[#allocation12 + $0x310] sm:$0xff] }
 0x1c8   :  { %1387 = vmatprep.subr.mxu0 %v1203_v20  ;;  %1338 = vmatprep.subr.mxu1 %v859_v59  ;;  %v797_v59 = vld [vmem:[#allocation12 + $0x2d8] sm:$0xff] }
 0x1c9   :  { %1388 = vmatpush2.msra.mxu0 %v1202_v22  ;;  %1339 = vmatpush2.msra.mxu1 %v858_v61  ;;  %v796_v61 = vld [vmem:[#allocation12 + $0x2d0] sm:$0xff] }
 0x1ca   :  { %1389 = vmatprep.subr.mxu0 %v1195_v24  ;;  %1340 = vmatprep.subr.mxu1 %v851_v63  ;;  %v683_v24 = vunpack.c.l.s4 %v4479_v23  ;;  %v789_v63 = vld [vmem:[#allocation12 + $0x298] sm:$0xff]  ;;  %v1012_v23 = vld [vmem:[#allocation12 + $0x990] sm:$0xff] }
 0x1cb   :  { %1390 = vmatpush2.msra.mxu0 %v1194_v26  ;;  %1341 = vmatpush2.msra.mxu1 %v850_v2  ;;  %v788_v2 = vld [vmem:[#allocation12 + $0x290] sm:$0xff] }
 0x1cc   :  { %1391 = vmatprep.subr.mxu0 %v1187_v28  ;;  %1342 = vmatprep.subr.mxu1 %v843_v4  ;;  %v684_v27 = vunpack.c.0.s8 %v683_v24  ;;  %v4685_v28 = vshrl.u32 %v685_v25, 7  ;;  %v781_v4 = vld [vmem:[#allocation12 + $0x258] sm:$0xff] }
 0x1cd   :  { %1392 = vmatpush2.msra.mxu0 %v1186_v30  ;;  %1343 = vmatpush2.msra.mxu1 %v842_v6  ;;  %v3766_v30 = vld [vmem:[#allocation10] ss:$0 sm:$0xff]  ;;  %v780_v6 = vld [vmem:[#allocation12 + $0x250] sm:$0xff] }
 0x1ce   :  { %1393 = vmatprep.subr.mxu0 %v1179_v32  ;;  %1344 = vmatprep.subr.mxu1 %v835_v8  ;;  %v773_v8 = vld [vmem:[#allocation12 + $0x218] sm:$0xff] }
 0x1cf   :  { %1394 = vmatpush2.msra.mxu0 %v1178_v34  ;;  %1345 = vmatpush2.msra.mxu1 %v834_v10  ;;  %v687_v34 = vsub.s32 %v684_v27, %v4685_v28  ;;  %v772_v10 = vld [vmem:[#allocation12 + $0x210] sm:$0xff]  ;;  %v741_v24 = vld [vmem:[#allocation12 + $0x118] sm:$0xff] }
 0x1d0   :  { %1395 = vmatprep.subr.mxu0 %v1171_v36  ;;  %1424 = vmatprep.subr.mxu1 %v829_v13  ;;  %v1029_v13 = vld [vmem:[#allocation12 + $0xa18] sm:$0xff]  ;;  %v1004_v27 = vld [vmem:[#allocation12 + $0x950] sm:$0xff] }
 0x1d1   :  { %1396 = vmatpush2.msra.mxu0 %v1170_v38  ;;  %v1005_v25 = vld [vmem:[#allocation12 + $0x958] sm:$0xff] }
 0x1d2   :  { %1397 = vmatprep.subr.mxu0 %v1163_v40 }
 0x1d3   :  { %1398 = vmatpush2.msra.mxu0 %v1162_v42 }
 0x1d4   :  { %1399 = vmatprep.subr.mxu0 %v1155_v44 }
 0x1d5   :  { %1400 = vmatpush2.msra.mxu0 %v1154_v46  ;;  %v828_v46 = vld [vmem:[#allocation12 + $0x3d0] sm:$0xff] }
 0x1d6   :  { %1401 = vmatprep.subr.mxu0 %v1147_v48  ;;  %v821_v48 = vld [vmem:[#allocation12 + $0x398] sm:$0xff] }
 0x1d7   :  { %1402 = vmatpush2.msra.mxu0 %v1146_v50  ;;  %v1084_v50 = vld [vmem:[#allocation12 + $0xbd0] sm:$0xff] }
 0x1d8   :  { %1403 = vmatprep.subr.mxu0 %v1139_v52  ;;  %v1077_v52 = vld [vmem:[#allocation12 + $0xb98] sm:$0xff] }
 0x1d9   :  { %1404 = vmatpush2.msra.mxu0 %v1138_v54  ;;  %v1076_v54 = vld [vmem:[#allocation12 + $0xb90] sm:$0xff] }
 0x1da   :  { %1405 = vmatprep.subr.mxu0 %v1131_v56  ;;  %v1069_v56 = vld [vmem:[#allocation12 + $0xb58] sm:$0xff] }
 0x1db   :  { %1406 = vmatpush2.msra.mxu0 %v1130_v58  ;;  %v1068_v58 = vld [vmem:[#allocation12 + $0xb50] sm:$0xff] }
 0x1dc   :  { %1407 = vmatprep.subr.mxu0 %v1123_v60  ;;  %v1061_v60 = vld [vmem:[#allocation12 + $0xb18] sm:$0xff] }
 0x1dd   :  { %1408 = vmatpush2.msra.mxu0 %v1122_v62  ;;  %v1060_v62 = vld [vmem:[#allocation12 + $0xb10] sm:$0xff] }
 0x1de   :  { %1409 = vmatprep.subr.mxu0 %v1115_v1  ;;  %v1053_v1 = vld [vmem:[#allocation12 + $0xad8] sm:$0xff] }
 0x1df   :  { %1410 = vmatpush2.msra.mxu0 %v1114_v3  ;;  %v1052_v3 = vld [vmem:[#allocation12 + $0xad0] sm:$0xff] }
 0x1e0   :  { %1411 = vmatprep.subr.mxu0 %v1107_v5  ;;  %v1045_v5 = vld [vmem:[#allocation12 + $0xa98] sm:$0xff] }
 0x1e1   :  { %1412 = vmatpush2.msra.mxu0 %v1106_v7  ;;  %v1044_v7 = vld [vmem:[#allocation12 + $0xa90] sm:$0xff] }
 0x1e2   :  { %1413 = vmatprep.subr.mxu0 %v1099_v9  ;;  %v1037_v9 = vld [vmem:[#allocation12 + $0xa58] sm:$0xff] }
 0x1e3   :  { %1414 = vmatpush2.msra.mxu0 %v1098_v11  ;;  %v1036_v11 = vld [vmem:[#allocation12 + $0xa50] sm:$0xff] }
 0x1e4   :  { %1415 = vmatprep.subr.mxu0 %v1091_v12  ;;  %v765_v12 = vld [vmem:[#allocation12 + $0x1d8] sm:$0xff] }
 0x1e5   :  { %1416 = vmatpush2.msra.mxu0 %v1090_v14  ;;  %v764_v14 = vld [vmem:[#allocation12 + $0x1d0] sm:$0xff] }
 0x1e6   :  { %1495 = vmatprep.subr.mxu0 %v1085_v15  ;;  %v1028_v15 = vld [vmem:[#allocation12 + $0xa10] sm:$0xff] }
 0x245   :  { %v412_v16 = vpop.f32.mrf.mxu0 }
 0x247   :  { %v4081_v17 = vpop.f32.mrf.mxu0 }
 0x248   :  { %v1021_v17 = vld [vmem:[#allocation12 + $0x9d8] sm:$0xff] }
 0x24e   :  { %v575_v18 = vpop.f32.mrf.mxu1 }
 0x250   :  { %v4119_v19 = vpop.f32.mrf.mxu1 }
 0x251   :  { %v1020_v19 = vld [vmem:[#allocation12 + $0x9d0] sm:$0xff] }
 0x255   :  { %v485_v20 = vpop.f32.mrf.mxu0 }
 0x256   :  { %v486_v22 = vadd.f32 %v485_v20, %v412_v16  ;;  %v757_v16 = vld [vmem:[#allocation12 + $0x198] sm:$0xff] }
 0x257   :  { %v4100_v21 = vpop.f32.mrf.mxu0  ;;  %v749_v20 = vld [vmem:[#allocation12 + $0x158] sm:$0xff] }
 0x258   :  { %v579_v26 = vadd.f32 %v575_v18, %v486_v22  ;;  %v756_v18 = vld [vmem:[#allocation12 + $0x190] sm:$0xff]  ;;  %v1013_v21 = vld [vmem:[#allocation12 + $0x998] sm:$0xff] }
 0x259   :  { %v748_v22 = vld [vmem:[#allocation12 + $0x150] sm:$0xff] }
 0x266   :  { %v666_v29 = vpop.f32.mrf.mxu0 }
 0x267   :  { %v670_v31 = vadd.f32 %v666_v29, %v579_v26  ;;  %v740_v26 = vld [vmem:[#allocation12 + $0x110] sm:$0xff]  ;;  %v733_v29 = vld [vmem:[#allocation12 + $0xd8] sm:$0xff] }
 0x268   :  { %v4138_v32 = vpop.f32.mrf.mxu0 }
 0x269   :  { %v678_v33 = vadd.f32 %v3766_v30, %v670_v31  ;;  %v997_v30 = vld [vmem:[#allocation12 + $0x918] sm:$0xff]  ;;  %v732_v31 = vld [vmem:[#allocation12 + $0xd0] sm:$0xff] }
 0x26a   :  { %v996_v32 = vld [vmem:[#allocation12 + $0x910] sm:$0xff] }
 0x26b   :  { %v679_v35 = vmax.f32 %v678_v33, 0.0  ;;  %v725_v33 = vld [vmem:[#allocation12 + $0x98] sm:$0xff] }
 0x26d   :  { %680 = vst [vmem:[#allocation4] sm:$0x3] %v679_v35  ;;  %v688_v36 = vrot.slane %v679_v35, %v687_v34  ;;  %v692_v37 = vcombine.high %v679_v35, %v679_v35  ;;  %v724_v35 = vld [vmem:[#allocation12 + $0x90] sm:$0xff] }
 0x26f   :  { %v689_v38 = vcombine.high %v688_v36, %v688_v36  ;;  %v699_v39 = vrot.slane %v692_v37, %v687_v34  ;;  %3767 = vst.sshfl [vmem:[#allocation4 + $0x4] sm:$0x3 pattern:$0x76325410] %v692_v37  ;;  %v988_v36 = vld [vmem:[#allocation12 + $0x8d0] sm:$0xff]  ;;  %v717_v37 = vld [vmem:[#allocation12 + $0x58] sm:$0xff] }
 0x271   :  { %691 = vst [vmem:[#allocation4 + $0x2] sm:$0x3] %v689_v38  ;;  %v702_v40 = vcombine.high %v699_v39, %v699_v39  ;;  %v981_v38 = vld [vmem:[#allocation12 + $0x898] sm:$0xff]  ;;  %v716_v39 = vld [vmem:[#allocation12 + $0x50] sm:$0xff] }
 0x273   :  { %704 = vst [vmem:[#allocation4 + $0x6] sm:$0x3] %v702_v40  ;;  %v980_v40 = vld [vmem:[#allocation12 + $0x890] sm:$0xff] }
 0x27a   :  { %v705_v41 = vld [vmem:[#allocation4] sm:$0xff] }
 0x27b   :  { %v4688_v42 = vrot.slane %v705_v41, %v687_v34  ;;  %v1261_v43 = vcombine.high %v705_v41, %v705_v41  ;;  %v709_v41 = vld [vmem:[#allocation12 + $0x18] sm:$0xff] }
 0x27d   :  { %v4692_v44 = vcombine.high %v4688_v42, %v4688_v42  ;;  %v4694_v45 = vrot.slane %v1261_v43, %v687_v34  ;;  %v989_v34 = vld [vmem:[#allocation12 + $0x8d8] sm:$0xff] }
 0x27e   :  { %v973_v43 = vld [vmem:[#allocation12 + $0x858] sm:$0xff] }
 0x27f   :  { %1346 = vmatprep.mubr.f32.mxu1 %v4692_v44  ;;  %v4699_v47 = vcombine.high %v4694_v45, %v4694_v45 }
 0x280   :  { %1347 = vmatmul.mubr.f32.vlgmr.msra.gmra.mxu1 %v4688_v42 }
 0x281   :  { %1425 = vmatpush1.msra.mxu1 %v828_v46  ;;  %1417 = vmatprep.mubr.f32.mxu0 %v4699_v47  ;;  %v708_v46 = vld [vmem:[#allocation12 + $0x10] sm:$0xff] }
 0x282   :  { %1426 = vmatprep.subr.mxu1 %v821_v48  ;;  %1488 = vmatprep.mubr.f32.mxu1 %v4692_v44  ;;  %v972_v48 = vld [vmem:[#allocation12 + $0x850] sm:$0xff] }
 0x283   :  { %1418 = vmatmul.mubr.f32.vlgmr.msra.gmra.mxu0 %v4694_v45  ;;  %1427 = vmatpush1.msra.mxu1 %v820_v49  ;;  %v957_v49 = vld [vmem:[#allocation12 + $0x7d8] sm:$0xff] }
 0x284   :  { %1496 = vmatpush1.msra.mxu0 %v1084_v50  ;;  %1428 = vmatprep.subr.mxu1 %v813_v51  ;;  %v965_v50 = vld [vmem:[#allocation12 + $0x818] sm:$0xff]  ;;  %v956_v51 = vld [vmem:[#allocation12 + $0x7d0] sm:$0xff] }
 0x285   :  { %1497 = vmatprep.subr.mxu0 %v1077_v52  ;;  %1559 = vmatprep.mubr.f32.mxu0 %v4699_v47  ;;  %v964_v52 = vld [vmem:[#allocation12 + $0x810] sm:$0xff] }
 0x286   :  { %1429 = vmatpush1.msra.mxu1 %v812_v53  ;;  %1498 = vmatpush1.msra.mxu0 %v1076_v54  ;;  %v949_v53 = vld [vmem:[#allocation12 + $0x798] sm:$0xff] }
 0x287   :  { %1430 = vmatprep.subr.mxu1 %v805_v55  ;;  %1499 = vmatprep.subr.mxu0 %v1069_v56  ;;  %v1213_v54 = vld [vmem:[#allocation12 + $0xfd8] sm:$0xff]  ;;  %v948_v55 = vld [vmem:[#allocation12 + $0x790] sm:$0xff] }
 0x288   :  { %1431 = vmatpush1.msra.mxu1 %v804_v57  ;;  %1500 = vmatpush1.msra.mxu0 %v1068_v58  ;;  %v1212_v56 = vld [vmem:[#allocation12 + $0xfd0] sm:$0xff]  ;;  %v941_v57 = vld [vmem:[#allocation12 + $0x758] sm:$0xff] }
 0x289   :  { %1432 = vmatprep.subr.mxu1 %v797_v59  ;;  %1501 = vmatprep.subr.mxu0 %v1061_v60  ;;  %v1205_v58 = vld [vmem:[#allocation12 + $0xf98] sm:$0xff]  ;;  %v940_v59 = vld [vmem:[#allocation12 + $0x750] sm:$0xff] }
 0x28a   :  { %1433 = vmatpush1.msra.mxu1 %v796_v61  ;;  %1502 = vmatpush1.msra.mxu0 %v1060_v62  ;;  %v1204_v60 = vld [vmem:[#allocation12 + $0xf90] sm:$0xff]  ;;  %v933_v61 = vld [vmem:[#allocation12 + $0x718] sm:$0xff] }
 0x28b   :  { %1434 = vmatprep.subr.mxu1 %v789_v63  ;;  %1503 = vmatprep.subr.mxu0 %v1053_v1  ;;  %v1197_v62 = vld [vmem:[#allocation12 + $0xf58] sm:$0xff]  ;;  %v932_v63 = vld [vmem:[#allocation12 + $0x710] sm:$0xff] }
 0x28c   :  { %1435 = vmatpush1.msra.mxu1 %v788_v2  ;;  %1504 = vmatpush1.msra.mxu0 %v1052_v3  ;;  %v1196_v1 = vld [vmem:[#allocation12 + $0xf50] sm:$0xff]  ;;  %v925_v2 = vld [vmem:[#allocation12 + $0x6d8] sm:$0xff] }
 0x28d   :  { %1436 = vmatprep.subr.mxu1 %v781_v4  ;;  %1505 = vmatprep.subr.mxu0 %v1045_v5  ;;  %v1189_v3 = vld [vmem:[#allocation12 + $0xf18] sm:$0xff]  ;;  %v924_v4 = vld [vmem:[#allocation12 + $0x6d0] sm:$0xff] }
 0x28e   :  { %1437 = vmatpush1.msra.mxu1 %v780_v6  ;;  %1506 = vmatpush1.msra.mxu0 %v1044_v7  ;;  %v1188_v5 = vld [vmem:[#allocation12 + $0xf10] sm:$0xff]  ;;  %v917_v6 = vld [vmem:[#allocation12 + $0x698] sm:$0xff] }
 0x28f   :  { %1438 = vmatprep.subr.mxu1 %v773_v8  ;;  %1507 = vmatprep.subr.mxu0 %v1037_v9  ;;  %v1181_v7 = vld [vmem:[#allocation12 + $0xed8] sm:$0xff]  ;;  %v916_v8 = vld [vmem:[#allocation12 + $0x690] sm:$0xff] }
 0x290   :  { %1439 = vmatpush1.msra.mxu1 %v772_v10  ;;  %1508 = vmatpush1.msra.mxu0 %v1036_v11  ;;  %v1180_v9 = vld [vmem:[#allocation12 + $0xed0] sm:$0xff]  ;;  %v909_v10 = vld [vmem:[#allocation12 + $0x658] sm:$0xff] }
 0x291   :  { %1440 = vmatprep.subr.mxu1 %v765_v12  ;;  %1509 = vmatprep.subr.mxu0 %v1029_v13  ;;  %v1173_v11 = vld [vmem:[#allocation12 + $0xe98] sm:$0xff]  ;;  %v908_v12 = vld [vmem:[#allocation12 + $0x650] sm:$0xff] }
 0x292   :  { %1441 = vmatpush1.msra.mxu1 %v764_v14  ;;  %1510 = vmatpush1.msra.mxu0 %v1028_v15  ;;  %v1172_v13 = vld [vmem:[#allocation12 + $0xe90] sm:$0xff]  ;;  %v901_v14 = vld [vmem:[#allocation12 + $0x618] sm:$0xff] }
 0x293   :  { %1442 = vmatprep.subr.mxu1 %v757_v16  ;;  %1511 = vmatprep.subr.mxu0 %v1021_v17  ;;  %v1165_v15 = vld [vmem:[#allocation12 + $0xe58] sm:$0xff]  ;;  %v900_v16 = vld [vmem:[#allocation12 + $0x610] sm:$0xff] }
 0x294   :  { %1443 = vmatpush1.msra.mxu1 %v756_v18  ;;  %1512 = vmatpush1.msra.mxu0 %v1020_v19  ;;  %v1164_v17 = vld [vmem:[#allocation12 + $0xe50] sm:$0xff]  ;;  %v893_v18 = vld [vmem:[#allocation12 + $0x5d8] sm:$0xff] }
 0x295   :  { %1444 = vmatprep.subr.mxu1 %v749_v20  ;;  %1513 = vmatprep.subr.mxu0 %v1013_v21  ;;  %v1157_v19 = vld [vmem:[#allocation12 + $0xe18] sm:$0xff]  ;;  %v892_v20 = vld [vmem:[#allocation12 + $0x5d0] sm:$0xff] }
 0x296   :  { %1445 = vmatpush1.msra.mxu1 %v748_v22  ;;  %1514 = vmatpush1.msra.mxu0 %v1012_v23  ;;  %v1156_v21 = vld [vmem:[#allocation12 + $0xe10] sm:$0xff]  ;;  %v885_v22 = vld [vmem:[#allocation12 + $0x598] sm:$0xff] }
 0x297   :  { %1446 = vmatprep.subr.mxu1 %v741_v24  ;;  %1515 = vmatprep.subr.mxu0 %v1005_v25  ;;  %v1149_v23 = vld [vmem:[#allocation12 + $0xdd8] sm:$0xff]  ;;  %v884_v24 = vld [vmem:[#allocation12 + $0x590] sm:$0xff] }
 0x298   :  { %1447 = vmatpush1.msra.mxu1 %v740_v26  ;;  %1516 = vmatpush1.msra.mxu0 %v1004_v27  ;;  %v1148_v25 = vld [vmem:[#allocation12 + $0xdd0] sm:$0xff]  ;;  %v877_v26 = vld [vmem:[#allocation12 + $0x558] sm:$0xff] }
 0x299   :  { %1448 = vmatprep.subr.mxu1 %v733_v29  ;;  %1517 = vmatprep.subr.mxu0 %v997_v30  ;;  %v1141_v27 = vld [vmem:[#allocation12 + $0xd98] sm:$0xff]  ;;  %v876_v29 = vld [vmem:[#allocation12 + $0x550] sm:$0xff] }
 0x29a   :  { %1449 = vmatpush1.msra.mxu1 %v732_v31  ;;  %1518 = vmatpush1.msra.mxu0 %v996_v32  ;;  %v1140_v30 = vld [vmem:[#allocation12 + $0xd90] sm:$0xff]  ;;  %v869_v31 = vld [vmem:[#allocation12 + $0x518] sm:$0xff] }
 0x29b   :  { %1450 = vmatprep.subr.mxu1 %v725_v33  ;;  %1519 = vmatprep.subr.mxu0 %v989_v34  ;;  %v1133_v32 = vld [vmem:[#allocation12 + $0xd58] sm:$0xff]  ;;  %v868_v33 = vld [vmem:[#allocation12 + $0x510] sm:$0xff] }
 0x29c   :  { %1451 = vmatpush1.msra.mxu1 %v724_v35  ;;  %1520 = vmatpush1.msra.mxu0 %v988_v36  ;;  %v1132_v34 = vld [vmem:[#allocation12 + $0xd50] sm:$0xff]  ;;  %v861_v35 = vld [vmem:[#allocation12 + $0x4d8] sm:$0xff] }
 0x29d   :  { %1452 = vmatprep.subr.mxu1 %v717_v37  ;;  %1521 = vmatprep.subr.mxu0 %v981_v38  ;;  %v1125_v36 = vld [vmem:[#allocation12 + $0xd18] sm:$0xff]  ;;  %v860_v37 = vld [vmem:[#allocation12 + $0x4d0] sm:$0xff] }
 0x29e   :  { %1453 = vmatpush1.msra.mxu1 %v716_v39  ;;  %1522 = vmatpush1.msra.mxu0 %v980_v40  ;;  %v1124_v38 = vld [vmem:[#allocation12 + $0xd10] sm:$0xff]  ;;  %v853_v39 = vld [vmem:[#allocation12 + $0x498] sm:$0xff] }
 0x29f   :  { %1454 = vmatprep.subr.mxu1 %v709_v41  ;;  %1523 = vmatprep.subr.mxu0 %v973_v43  ;;  %v1117_v40 = vld [vmem:[#allocation12 + $0xcd8] sm:$0xff]  ;;  %v852_v41 = vld [vmem:[#allocation12 + $0x490] sm:$0xff] }
 0x2a0   :  { %1455 = vmatpush1.msra.mxu1 %v708_v46  ;;  %1524 = vmatpush1.msra.mxu0 %v972_v48  ;;  %v1116_v43 = vld [vmem:[#allocation12 + $0xcd0] sm:$0xff]  ;;  %v845_v46 = vld [vmem:[#allocation12 + $0x458] sm:$0xff] }
 0x2a1   :  { %1456 = vmatprep.subr.mxu1 %v957_v49  ;;  %1525 = vmatprep.subr.mxu0 %v965_v50  ;;  %v1109_v48 = vld [vmem:[#allocation12 + $0xc98] sm:$0xff]  ;;  %v844_v49 = vld [vmem:[#allocation12 + $0x450] sm:$0xff] }
 0x2a2   :  { %1457 = vmatpush2.msra.mxu1 %v956_v51  ;;  %1526 = vmatpush1.msra.mxu0 %v964_v52  ;;  %v1108_v50 = vld [vmem:[#allocation12 + $0xc90] sm:$0xff]  ;;  %v837_v51 = vld [vmem:[#allocation12 + $0x418] sm:$0xff] }
 0x2a3   :  { %1458 = vmatprep.subr.mxu1 %v949_v53  ;;  %1527 = vmatprep.subr.mxu0 %v1213_v54  ;;  %v1101_v52 = vld [vmem:[#allocation12 + $0xc58] sm:$0xff]  ;;  %v836_v53 = vld [vmem:[#allocation12 + $0x410] sm:$0xff] }
 0x2a4   :  { %1459 = vmatpush2.msra.mxu1 %v948_v55  ;;  %1528 = vmatpush2.msra.mxu0 %v1212_v56  ;;  %v1100_v54 = vld [vmem:[#allocation12 + $0xc50] sm:$0xff]  ;;  %v1093_v55 = vld [vmem:[#allocation12 + $0xc18] sm:$0xff]  ;;  %v831_v56 = vld [vmem:[#allocation12 + $0x3e8] sm:$0xff] }
 0x2a5   :  { %1460 = vmatprep.subr.mxu1 %v941_v57  ;;  %1529 = vmatprep.subr.mxu0 %v1205_v58  ;;  %v1092_v57 = vld [vmem:[#allocation12 + $0xc10] sm:$0xff]  ;;  %v830_v58 = vld [vmem:[#allocation12 + $0x3e0] sm:$0xff] }
 0x2a6   :  { %1461 = vmatpush2.msra.mxu1 %v940_v59  ;;  %1530 = vmatpush2.msra.mxu0 %v1204_v60  ;;  %v823_v59 = vld [vmem:[#allocation12 + $0x3a8] sm:$0xff] }
 0x2a7   :  { %1462 = vmatprep.subr.mxu1 %v933_v61  ;;  %1531 = vmatprep.subr.mxu0 %v1197_v62  ;;  %v1087_v60 = vld [vmem:[#allocation12 + $0xbe8] sm:$0xff]  ;;  %v822_v61 = vld [vmem:[#allocation12 + $0x3a0] sm:$0xff] }
 0x2a8   :  { %1463 = vmatpush2.msra.mxu1 %v932_v63  ;;  %1532 = vmatpush2.msra.mxu0 %v1196_v1  ;;  %v1086_v62 = vld [vmem:[#allocation12 + $0xbe0] sm:$0xff]  ;;  %v815_v63 = vld [vmem:[#allocation12 + $0x368] sm:$0xff] }
 0x2a9   :  { %1464 = vmatprep.subr.mxu1 %v925_v2  ;;  %1533 = vmatprep.subr.mxu0 %v1189_v3  ;;  %v1079_v1 = vld [vmem:[#allocation12 + $0xba8] sm:$0xff]  ;;  %v814_v2 = vld [vmem:[#allocation12 + $0x360] sm:$0xff] }
 0x2aa   :  { %1465 = vmatpush2.msra.mxu1 %v924_v4  ;;  %1534 = vmatpush2.msra.mxu0 %v1188_v5  ;;  %v1078_v3 = vld [vmem:[#allocation12 + $0xba0] sm:$0xff]  ;;  %v807_v4 = vld [vmem:[#allocation12 + $0x328] sm:$0xff] }
 0x2ab   :  { %1466 = vmatprep.subr.mxu1 %v917_v6  ;;  %1535 = vmatprep.subr.mxu0 %v1181_v7  ;;  %v1071_v5 = vld [vmem:[#allocation12 + $0xb68] sm:$0xff]  ;;  %v806_v6 = vld [vmem:[#allocation12 + $0x320] sm:$0xff] }
 0x2ac   :  { %1467 = vmatpush2.msra.mxu1 %v916_v8  ;;  %1536 = vmatpush2.msra.mxu0 %v1180_v9  ;;  %v1070_v7 = vld [vmem:[#allocation12 + $0xb60] sm:$0xff]  ;;  %v799_v8 = vld [vmem:[#allocation12 + $0x2e8] sm:$0xff] }
 0x2ad   :  { %1468 = vmatprep.subr.mxu1 %v909_v10  ;;  %1537 = vmatprep.subr.mxu0 %v1173_v11  ;;  %v1063_v9 = vld [vmem:[#allocation12 + $0xb28] sm:$0xff]  ;;  %v798_v10 = vld [vmem:[#allocation12 + $0x2e0] sm:$0xff] }
 0x2ae   :  { %1469 = vmatpush2.msra.mxu1 %v908_v12  ;;  %1538 = vmatpush2.msra.mxu0 %v1172_v13  ;;  %v1062_v11 = vld [vmem:[#allocation12 + $0xb20] sm:$0xff]  ;;  %v791_v12 = vld [vmem:[#allocation12 + $0x2a8] sm:$0xff] }
 0x2af   :  { %1470 = vmatprep.subr.mxu1 %v901_v14  ;;  %1539 = vmatprep.subr.mxu0 %v1165_v15  ;;  %v1055_v13 = vld [vmem:[#allocation12 + $0xae8] sm:$0xff]  ;;  %v790_v14 = vld [vmem:[#allocation12 + $0x2a0] sm:$0xff] }
 0x2b0   :  { %1471 = vmatpush2.msra.mxu1 %v900_v16  ;;  %1540 = vmatpush2.msra.mxu0 %v1164_v17  ;;  %v1054_v15 = vld [vmem:[#allocation12 + $0xae0] sm:$0xff]  ;;  %v783_v16 = vld [vmem:[#allocation12 + $0x268] sm:$0xff] }
 0x2b1   :  { %1472 = vmatprep.subr.mxu1 %v893_v18  ;;  %1541 = vmatprep.subr.mxu0 %v1157_v19  ;;  %v1047_v17 = vld [vmem:[#allocation12 + $0xaa8] sm:$0xff]  ;;  %v782_v18 = vld [vmem:[#allocation12 + $0x260] sm:$0xff] }
 0x2b2   :  { %1473 = vmatpush2.msra.mxu1 %v892_v20  ;;  %1542 = vmatpush2.msra.mxu0 %v1156_v21  ;;  %v1046_v19 = vld [vmem:[#allocation12 + $0xaa0] sm:$0xff]  ;;  %v775_v20 = vld [vmem:[#allocation12 + $0x228] sm:$0xff] }
 0x2b3   :  { %1474 = vmatprep.subr.mxu1 %v885_v22  ;;  %1543 = vmatprep.subr.mxu0 %v1149_v23  ;;  %v1039_v21 = vld [vmem:[#allocation12 + $0xa68] sm:$0xff]  ;;  %v774_v22 = vld [vmem:[#allocation12 + $0x220] sm:$0xff] }
 0x2b4   :  { %1475 = vmatpush2.msra.mxu1 %v884_v24  ;;  %1544 = vmatpush2.msra.mxu0 %v1148_v25  ;;  %v1038_v23 = vld [vmem:[#allocation12 + $0xa60] sm:$0xff]  ;;  %v767_v24 = vld [vmem:[#allocation12 + $0x1e8] sm:$0xff] }
 0x2b5   :  { %1476 = vmatprep.subr.mxu1 %v877_v26  ;;  %1545 = vmatprep.subr.mxu0 %v1141_v27  ;;  %v1031_v25 = vld [vmem:[#allocation12 + $0xa28] sm:$0xff]  ;;  %v766_v26 = vld [vmem:[#allocation12 + $0x1e0] sm:$0xff] }
 0x2b6   :  { %1477 = vmatpush2.msra.mxu1 %v876_v29  ;;  %1546 = vmatpush2.msra.mxu0 %v1140_v30  ;;  %v1030_v27 = vld [vmem:[#allocation12 + $0xa20] sm:$0xff]  ;;  %v759_v29 = vld [vmem:[#allocation12 + $0x1a8] sm:$0xff] }
 0x2b7   :  { %1478 = vmatprep.subr.mxu1 %v869_v31  ;;  %1547 = vmatprep.subr.mxu0 %v1133_v32  ;;  %v1023_v30 = vld [vmem:[#allocation12 + $0x9e8] sm:$0xff]  ;;  %v758_v31 = vld [vmem:[#allocation12 + $0x1a0] sm:$0xff] }
 0x2b8   :  { %1479 = vmatpush2.msra.mxu1 %v868_v33  ;;  %1548 = vmatpush2.msra.mxu0 %v1132_v34  ;;  %v1022_v32 = vld [vmem:[#allocation12 + $0x9e0] sm:$0xff]  ;;  %v751_v33 = vld [vmem:[#allocation12 + $0x168] sm:$0xff] }
 0x2b9   :  { %1480 = vmatprep.subr.mxu1 %v861_v35  ;;  %1549 = vmatprep.subr.mxu0 %v1125_v36  ;;  %v1015_v34 = vld [vmem:[#allocation12 + $0x9a8] sm:$0xff]  ;;  %v750_v35 = vld [vmem:[#allocation12 + $0x160] sm:$0xff] }
 0x2ba   :  { %1481 = vmatpush2.msra.mxu1 %v860_v37  ;;  %1550 = vmatpush2.msra.mxu0 %v1124_v38  ;;  %v1014_v36 = vld [vmem:[#allocation12 + $0x9a0] sm:$0xff]  ;;  %v743_v37 = vld [vmem:[#allocation12 + $0x128] sm:$0xff] }
 0x2bb   :  { %1482 = vmatprep.subr.mxu1 %v853_v39  ;;  %1551 = vmatprep.subr.mxu0 %v1117_v40  ;;  %v1007_v38 = vld [vmem:[#allocation12 + $0x968] sm:$0xff]  ;;  %v742_v39 = vld [vmem:[#allocation12 + $0x120] sm:$0xff] }
 0x2bc   :  { %1483 = vmatpush2.msra.mxu1 %v852_v41  ;;  %1552 = vmatpush2.msra.mxu0 %v1116_v43  ;;  %v1006_v40 = vld [vmem:[#allocation12 + $0x960] sm:$0xff]  ;;  %v735_v41 = vld [vmem:[#allocation12 + $0xe8] sm:$0xff] }
 0x2bd   :  { %1484 = vmatprep.subr.mxu1 %v845_v46  ;;  %1553 = vmatprep.subr.mxu0 %v1109_v48  ;;  %v999_v43 = vld [vmem:[#allocation12 + $0x928] sm:$0xff]  ;;  %v734_v46 = vld [vmem:[#allocation12 + $0xe0] sm:$0xff] }
 0x2be   :  { %1485 = vmatpush2.msra.mxu1 %v844_v49  ;;  %1554 = vmatpush2.msra.mxu0 %v1108_v50  ;;  %v998_v48 = vld [vmem:[#allocation12 + $0x920] sm:$0xff]  ;;  %v727_v49 = vld [vmem:[#allocation12 + $0xa8] sm:$0xff] }
 0x2bf   :  { %1486 = vmatprep.subr.mxu1 %v837_v51  ;;  %1555 = vmatprep.subr.mxu0 %v1101_v52  ;;  %v991_v50 = vld [vmem:[#allocation12 + $0x8e8] sm:$0xff]  ;;  %v726_v51 = vld [vmem:[#allocation12 + $0xa0] sm:$0xff] }
 0x2c0   :  { %1487 = vmatpush2.msra.mxu1 %v836_v53  ;;  %1556 = vmatpush2.msra.mxu0 %v1100_v54  ;;  %v990_v52 = vld [vmem:[#allocation12 + $0x8e0] sm:$0xff]  ;;  %v719_v53 = vld [vmem:[#allocation12 + $0x68] sm:$0xff] }
 0x2c1   :  { %1489 = vmatmul.mubr.f32.vlgmr.msra.gmra.mxu1 %v4688_v42  ;;  %1557 = vmatprep.subr.mxu0 %v1093_v55  ;;  %v983_v54 = vld [vmem:[#allocation12 + $0x8a8] sm:$0xff]  ;;  %v718_v55 = vld [vmem:[#allocation12 + $0x60] sm:$0xff] }
 0x2c2   :  { %1566 = vmatprep.subr.mxu1 %v831_v56  ;;  %1558 = vmatpush2.msra.mxu0 %v1092_v57  ;;  %v982_v56 = vld [vmem:[#allocation12 + $0x8a0] sm:$0xff]  ;;  %v711_v57 = vld [vmem:[#allocation12 + $0x28] sm:$0xff] }
 0x2c3   :  { %1567 = vmatpush1.msra.mxu1 %v830_v58  ;;  %1630 = vmatprep.mubr.f32.mxu1 %v4692_v44  ;;  %v975_v58 = vld [vmem:[#allocation12 + $0x868] sm:$0xff] }
 0x2c4   :  { %1560 = vmatmul.mubr.f32.vlgmr.msra.gmra.mxu0 %v4694_v45  ;;  %1568 = vmatprep.subr.mxu1 %v823_v59  ;;  %v710_v59 = vld [vmem:[#allocation12 + $0x20] sm:$0xff] }
 0x2c5   :  { %1637 = vmatprep.subr.mxu0 %v1087_v60  ;;  %1569 = vmatpush1.msra.mxu1 %v822_v61  ;;  %v974_v60 = vld [vmem:[#allocation12 + $0x860] sm:$0xff]  ;;  %v959_v61 = vld [vmem:[#allocation12 + $0x7e8] sm:$0xff] }
 0x2c6   :  { %1638 = vmatpush1.msra.mxu0 %v1086_v62  ;;  %1701 = vmatprep.mubr.f32.mxu0 %v4699_v47  ;;  %v967_v62 = vld [vmem:[#allocation12 + $0x828] sm:$0xff] }
 0x2c7   :  { %1570 = vmatprep.subr.mxu1 %v815_v63  ;;  %1639 = vmatprep.subr.mxu0 %v1079_v1  ;;  %v958_v63 = vld [vmem:[#allocation12 + $0x7e0] sm:$0xff] }
 0x2c8   :  { %1571 = vmatpush1.msra.mxu1 %v814_v2  ;;  %1640 = vmatpush1.msra.mxu0 %v1078_v3  ;;  %v966_v1 = vld [vmem:[#allocation12 + $0x820] sm:$0xff]  ;;  %v951_v2 = vld [vmem:[#allocation12 + $0x7a8] sm:$0xff] }
 0x2c9   :  { %1572 = vmatprep.subr.mxu1 %v807_v4  ;;  %1641 = vmatprep.subr.mxu0 %v1071_v5  ;;  %v1215_v3 = vld [vmem:[#allocation12 + $0xfe8] sm:$0xff]  ;;  %v950_v4 = vld [vmem:[#allocation12 + $0x7a0] sm:$0xff] }
 0x2ca   :  { %1573 = vmatpush1.msra.mxu1 %v806_v6  ;;  %1642 = vmatpush1.msra.mxu0 %v1070_v7  ;;  %v1214_v5 = vld [vmem:[#allocation12 + $0xfe0] sm:$0xff]  ;;  %v943_v6 = vld [vmem:[#allocation12 + $0x768] sm:$0xff] }
 0x2cb   :  { %1574 = vmatprep.subr.mxu1 %v799_v8  ;;  %1643 = vmatprep.subr.mxu0 %v1063_v9  ;;  %v1207_v7 = vld [vmem:[#allocation12 + $0xfa8] sm:$0xff]  ;;  %v942_v8 = vld [vmem:[#allocation12 + $0x760] sm:$0xff] }
 0x2cc   :  { %1575 = vmatpush1.msra.mxu1 %v798_v10  ;;  %1644 = vmatpush1.msra.mxu0 %v1062_v11  ;;  %v1206_v9 = vld [vmem:[#allocation12 + $0xfa0] sm:$0xff]  ;;  %v935_v10 = vld [vmem:[#allocation12 + $0x728] sm:$0xff] }
 0x2cd   :  { %1576 = vmatprep.subr.mxu1 %v791_v12  ;;  %1645 = vmatprep.subr.mxu0 %v1055_v13  ;;  %v1199_v11 = vld [vmem:[#allocation12 + $0xf68] sm:$0xff]  ;;  %v934_v12 = vld [vmem:[#allocation12 + $0x720] sm:$0xff] }
 0x2ce   :  { %1577 = vmatpush1.msra.mxu1 %v790_v14  ;;  %1646 = vmatpush1.msra.mxu0 %v1054_v15  ;;  %v1198_v13 = vld [vmem:[#allocation12 + $0xf60] sm:$0xff]  ;;  %v927_v14 = vld [vmem:[#allocation12 + $0x6e8] sm:$0xff] }
 0x2cf   :  { %1578 = vmatprep.subr.mxu1 %v783_v16  ;;  %1647 = vmatprep.subr.mxu0 %v1047_v17  ;;  %v1191_v15 = vld [vmem:[#allocation12 + $0xf28] sm:$0xff]  ;;  %v926_v16 = vld [vmem:[#allocation12 + $0x6e0] sm:$0xff] }
 0x2d0   :  { %1579 = vmatpush1.msra.mxu1 %v782_v18  ;;  %1648 = vmatpush1.msra.mxu0 %v1046_v19  ;;  %v1190_v17 = vld [vmem:[#allocation12 + $0xf20] sm:$0xff]  ;;  %v919_v18 = vld [vmem:[#allocation12 + $0x6a8] sm:$0xff] }
 0x2d1   :  { %1580 = vmatprep.subr.mxu1 %v775_v20  ;;  %1649 = vmatprep.subr.mxu0 %v1039_v21  ;;  %v1183_v19 = vld [vmem:[#allocation12 + $0xee8] sm:$0xff]  ;;  %v918_v20 = vld [vmem:[#allocation12 + $0x6a0] sm:$0xff] }
 0x2d2   :  { %1581 = vmatpush1.msra.mxu1 %v774_v22  ;;  %1650 = vmatpush1.msra.mxu0 %v1038_v23  ;;  %v1182_v21 = vld [vmem:[#allocation12 + $0xee0] sm:$0xff]  ;;  %v911_v22 = vld [vmem:[#allocation12 + $0x668] sm:$0xff] }
 0x2d3   :  { %1582 = vmatprep.subr.mxu1 %v767_v24  ;;  %1651 = vmatprep.subr.mxu0 %v1031_v25  ;;  %v1175_v23 = vld [vmem:[#allocation12 + $0xea8] sm:$0xff]  ;;  %v910_v24 = vld [vmem:[#allocation12 + $0x660] sm:$0xff] }
 0x2d4   :  { %1583 = vmatpush1.msra.mxu1 %v766_v26  ;;  %1652 = vmatpush1.msra.mxu0 %v1030_v27  ;;  %v1174_v25 = vld [vmem:[#allocation12 + $0xea0] sm:$0xff]  ;;  %v903_v26 = vld [vmem:[#allocation12 + $0x628] sm:$0xff] }
 0x2d5   :  { %1584 = vmatprep.subr.mxu1 %v759_v29  ;;  %1653 = vmatprep.subr.mxu0 %v1023_v30  ;;  %v1167_v27 = vld [vmem:[#allocation12 + $0xe68] sm:$0xff]  ;;  %v902_v29 = vld [vmem:[#allocation12 + $0x620] sm:$0xff] }
 0x2d6   :  { %1585 = vmatpush1.msra.mxu1 %v758_v31  ;;  %1654 = vmatpush1.msra.mxu0 %v1022_v32  ;;  %v1166_v30 = vld [vmem:[#allocation12 + $0xe60] sm:$0xff]  ;;  %v895_v31 = vld [vmem:[#allocation12 + $0x5e8] sm:$0xff] }
 0x2d7   :  { %1586 = vmatprep.subr.mxu1 %v751_v33  ;;  %1655 = vmatprep.subr.mxu0 %v1015_v34  ;;  %v1159_v32 = vld [vmem:[#allocation12 + $0xe28] sm:$0xff]  ;;  %v894_v33 = vld [vmem:[#allocation12 + $0x5e0] sm:$0xff] }
 0x2d8   :  { %1587 = vmatpush1.msra.mxu1 %v750_v35  ;;  %1656 = vmatpush1.msra.mxu0 %v1014_v36  ;;  %v1158_v34 = vld [vmem:[#allocation12 + $0xe20] sm:$0xff]  ;;  %v887_v35 = vld [vmem:[#allocation12 + $0x5a8] sm:$0xff] }
 0x2d9   :  { %1588 = vmatprep.subr.mxu1 %v743_v37  ;;  %1657 = vmatprep.subr.mxu0 %v1007_v38  ;;  %v1151_v36 = vld [vmem:[#allocation12 + $0xde8] sm:$0xff]  ;;  %v886_v37 = vld [vmem:[#allocation12 + $0x5a0] sm:$0xff] }
 0x2da   :  { %1589 = vmatpush1.msra.mxu1 %v742_v39  ;;  %1658 = vmatpush1.msra.mxu0 %v1006_v40  ;;  %v1150_v38 = vld [vmem:[#allocation12 + $0xde0] sm:$0xff]  ;;  %v879_v39 = vld [vmem:[#allocation12 + $0x568] sm:$0xff] }
 0x2db   :  { %1590 = vmatprep.subr.mxu1 %v735_v41  ;;  %1659 = vmatprep.subr.mxu0 %v999_v43  ;;  %v1143_v40 = vld [vmem:[#allocation12 + $0xda8] sm:$0xff]  ;;  %v878_v41 = vld [vmem:[#allocation12 + $0x560] sm:$0xff] }
 0x2dc   :  { %1591 = vmatpush1.msra.mxu1 %v734_v46  ;;  %1660 = vmatpush1.msra.mxu0 %v998_v48  ;;  %v1142_v43 = vld [vmem:[#allocation12 + $0xda0] sm:$0xff]  ;;  %v871_v46 = vld [vmem:[#allocation12 + $0x528] sm:$0xff] }
 0x2dd   :  { %1592 = vmatprep.subr.mxu1 %v727_v49  ;;  %1661 = vmatprep.subr.mxu0 %v991_v50  ;;  %v1135_v48 = vld [vmem:[#allocation12 + $0xd68] sm:$0xff]  ;;  %v870_v49 = vld [vmem:[#allocation12 + $0x520] sm:$0xff] }
 0x2de   :  { %1593 = vmatpush1.msra.mxu1 %v726_v51  ;;  %1662 = vmatpush1.msra.mxu0 %v990_v52  ;;  %v1134_v50 = vld [vmem:[#allocation12 + $0xd60] sm:$0xff]  ;;  %v863_v51 = vld [vmem:[#allocation12 + $0x4e8] sm:$0xff] }
 0x2df   :  { %1594 = vmatprep.subr.mxu1 %v719_v53  ;;  %1663 = vmatprep.subr.mxu0 %v983_v54  ;;  %v1127_v52 = vld [vmem:[#allocation12 + $0xd28] sm:$0xff]  ;;  %v862_v53 = vld [vmem:[#allocation12 + $0x4e0] sm:$0xff] }
 0x2e0   :  { %1595 = vmatpush1.msra.mxu1 %v718_v55  ;;  %1664 = vmatpush1.msra.mxu0 %v982_v56  ;;  %v1126_v54 = vld [vmem:[#allocation12 + $0xd20] sm:$0xff]  ;;  %v855_v55 = vld [vmem:[#allocation12 + $0x4a8] sm:$0xff] }
 0x2e1   :  { %1596 = vmatprep.subr.mxu1 %v711_v57  ;;  %1665 = vmatprep.subr.mxu0 %v975_v58  ;;  %v1119_v56 = vld [vmem:[#allocation12 + $0xce8] sm:$0xff]  ;;  %v854_v57 = vld [vmem:[#allocation12 + $0x4a0] sm:$0xff] }
 0x2e2   :  { %1597 = vmatpush1.msra.mxu1 %v710_v59  ;;  %1666 = vmatpush1.msra.mxu0 %v974_v60  ;;  %v1118_v58 = vld [vmem:[#allocation12 + $0xce0] sm:$0xff]  ;;  %v847_v59 = vld [vmem:[#allocation12 + $0x468] sm:$0xff] }
 0x2e3   :  { %1598 = vmatprep.subr.mxu1 %v959_v61  ;;  %1667 = vmatprep.subr.mxu0 %v967_v62  ;;  %v1111_v60 = vld [vmem:[#allocation12 + $0xca8] sm:$0xff]  ;;  %v846_v61 = vld [vmem:[#allocation12 + $0x460] sm:$0xff] }
 0x2e4   :  { %1599 = vmatpush2.msra.mxu1 %v958_v63  ;;  %1668 = vmatpush1.msra.mxu0 %v966_v1  ;;  %v1110_v62 = vld [vmem:[#allocation12 + $0xca0] sm:$0xff]  ;;  %v839_v63 = vld [vmem:[#allocation12 + $0x428] sm:$0xff] }
 0x2e5   :  { %1600 = vmatprep.subr.mxu1 %v951_v2  ;;  %1669 = vmatprep.subr.mxu0 %v1215_v3  ;;  %v1103_v1 = vld [vmem:[#allocation12 + $0xc68] sm:$0xff]  ;;  %v838_v2 = vld [vmem:[#allocation12 + $0x420] sm:$0xff] }
 0x2e6   :  { %1601 = vmatpush2.msra.mxu1 %v950_v4  ;;  %1670 = vmatpush2.msra.mxu0 %v1214_v5  ;;  %v1102_v3 = vld [vmem:[#allocation12 + $0xc60] sm:$0xff]  ;;  %v1095_v4 = vld [vmem:[#allocation12 + $0xc28] sm:$0xff]  ;;  %v833_v5 = vld [vmem:[#allocation12 + $0x3f8] sm:$0xff] }
 0x2e7   :  { %1602 = vmatprep.subr.mxu1 %v943_v6  ;;  %1671 = vmatprep.subr.mxu0 %v1207_v7  ;;  %v1094_v6 = vld [vmem:[#allocation12 + $0xc20] sm:$0xff]  ;;  %v832_v7 = vld [vmem:[#allocation12 + $0x3f0] sm:$0xff] }
 0x2e8   :  { %1603 = vmatpush2.msra.mxu1 %v942_v8  ;;  %1672 = vmatpush2.msra.mxu0 %v1206_v9  ;;  %v825_v8 = vld [vmem:[#allocation12 + $0x3b8] sm:$0xff] }
 0x2e9   :  { %1604 = vmatprep.subr.mxu1 %v935_v10  ;;  %1673 = vmatprep.subr.mxu0 %v1199_v11  ;;  %v1089_v9 = vld [vmem:[#allocation12 + $0xbf8] sm:$0xff]  ;;  %v824_v10 = vld [vmem:[#allocation12 + $0x3b0] sm:$0xff] }
 0x2ea   :  { %1605 = vmatpush2.msra.mxu1 %v934_v12  ;;  %1674 = vmatpush2.msra.mxu0 %v1198_v13  ;;  %v1088_v11 = vld [vmem:[#allocation12 + $0xbf0] sm:$0xff]  ;;  %v817_v12 = vld [vmem:[#allocation12 + $0x378] sm:$0xff] }
 0x2eb   :  { %1606 = vmatprep.subr.mxu1 %v927_v14  ;;  %1675 = vmatprep.subr.mxu0 %v1191_v15  ;;  %v1081_v13 = vld [vmem:[#allocation12 + $0xbb8] sm:$0xff]  ;;  %v816_v14 = vld [vmem:[#allocation12 + $0x370] sm:$0xff] }
 0x2ec   :  { %1607 = vmatpush2.msra.mxu1 %v926_v16  ;;  %1676 = vmatpush2.msra.mxu0 %v1190_v17  ;;  %v1080_v15 = vld [vmem:[#allocation12 + $0xbb0] sm:$0xff]  ;;  %v809_v16 = vld [vmem:[#allocation12 + $0x338] sm:$0xff] }
 0x2ed   :  { %1608 = vmatprep.subr.mxu1 %v919_v18  ;;  %1677 = vmatprep.subr.mxu0 %v1183_v19  ;;  %v1073_v17 = vld [vmem:[#allocation12 + $0xb78] sm:$0xff]  ;;  %v808_v18 = vld [vmem:[#allocation12 + $0x330] sm:$0xff] }
 0x2ee   :  { %1609 = vmatpush2.msra.mxu1 %v918_v20  ;;  %1678 = vmatpush2.msra.mxu0 %v1182_v21  ;;  %v1072_v19 = vld [vmem:[#allocation12 + $0xb70] sm:$0xff]  ;;  %v1065_v20 = vld [vmem:[#allocation12 + $0xb38] sm:$0xff] }
 0x2ef   :  { %1610 = vmatprep.subr.mxu1 %v911_v22  ;;  %1679 = vmatprep.subr.mxu0 %v1175_v23  ;;  %v800_v21 = vld [vmem:[#allocation12 + $0x2f0] sm:$0xff]  ;;  %v793_v23 = vld [vmem:[#allocation12 + $0x2b8] sm:$0xff] }
 0x2f0   :  { %1611 = vmatpush2.msra.mxu1 %v910_v24  ;;  %1680 = vmatpush2.msra.mxu0 %v1174_v25  ;;  %v1064_v22 = vld [vmem:[#allocation12 + $0xb30] sm:$0xff]  ;;  %v1057_v24 = vld [vmem:[#allocation12 + $0xaf8] sm:$0xff] }
 0x2f1   :  { %1612 = vmatprep.subr.mxu1 %v903_v26  ;;  %1681 = vmatprep.subr.mxu0 %v1167_v27  ;;  %v1056_v25 = vld [vmem:[#allocation12 + $0xaf0] sm:$0xff]  ;;  %v785_v26 = vld [vmem:[#allocation12 + $0x278] sm:$0xff] }
 0x2f2   :  { %1613 = vmatpush2.msra.mxu1 %v902_v29  ;;  %1682 = vmatpush2.msra.mxu0 %v1166_v30  ;;  %v1049_v27 = vld [vmem:[#allocation12 + $0xab8] sm:$0xff]  ;;  %v784_v29 = vld [vmem:[#allocation12 + $0x270] sm:$0xff] }
 0x2f3   :  { %1614 = vmatprep.subr.mxu1 %v895_v31  ;;  %1683 = vmatprep.subr.mxu0 %v1159_v32  ;;  %v1048_v30 = vld [vmem:[#allocation12 + $0xab0] sm:$0xff]  ;;  %v777_v31 = vld [vmem:[#allocation12 + $0x238] sm:$0xff] }
 0x2f4   :  { %1615 = vmatpush2.msra.mxu1 %v894_v33  ;;  %1684 = vmatpush2.msra.mxu0 %v1158_v34  ;;  %v1041_v32 = vld [vmem:[#allocation12 + $0xa78] sm:$0xff]  ;;  %v776_v33 = vld [vmem:[#allocation12 + $0x230] sm:$0xff] }
 0x2f5   :  { %1616 = vmatprep.subr.mxu1 %v887_v35  ;;  %1685 = vmatprep.subr.mxu0 %v1151_v36  ;;  %v1040_v34 = vld [vmem:[#allocation12 + $0xa70] sm:$0xff]  ;;  %v769_v35 = vld [vmem:[#allocation12 + $0x1f8] sm:$0xff] }
 0x2f6   :  { %1617 = vmatpush2.msra.mxu1 %v886_v37  ;;  %1686 = vmatpush2.msra.mxu0 %v1150_v38  ;;  %v1033_v36 = vld [vmem:[#allocation12 + $0xa38] sm:$0xff]  ;;  %v768_v37 = vld [vmem:[#allocation12 + $0x1f0] sm:$0xff] }
 0x2f7   :  { %1618 = vmatprep.subr.mxu1 %v879_v39  ;;  %1687 = vmatprep.subr.mxu0 %v1143_v40  ;;  %v1032_v38 = vld [vmem:[#allocation12 + $0xa30] sm:$0xff]  ;;  %v761_v39 = vld [vmem:[#allocation12 + $0x1b8] sm:$0xff] }
 0x2f8   :  { %1619 = vmatpush2.msra.mxu1 %v878_v41  ;;  %1688 = vmatpush2.msra.mxu0 %v1142_v43  ;;  %v1025_v40 = vld [vmem:[#allocation12 + $0x9f8] sm:$0xff]  ;;  %v760_v41 = vld [vmem:[#allocation12 + $0x1b0] sm:$0xff] }
 0x2f9   :  { %1620 = vmatprep.subr.mxu1 %v871_v46  ;;  %1689 = vmatprep.subr.mxu0 %v1135_v48  ;;  %v1024_v43 = vld [vmem:[#allocation12 + $0x9f0] sm:$0xff]  ;;  %v753_v46 = vld [vmem:[#allocation12 + $0x178] sm:$0xff] }
 0x2fa   :  { %1621 = vmatpush2.msra.mxu1 %v870_v49  ;;  %1690 = vmatpush2.msra.mxu0 %v1134_v50  ;;  %v1017_v48 = vld [vmem:[#allocation12 + $0x9b8] sm:$0xff]  ;;  %v752_v49 = vld [vmem:[#allocation12 + $0x170] sm:$0xff] }
 0x2fb   :  { %1622 = vmatprep.subr.mxu1 %v863_v51  ;;  %1691 = vmatprep.subr.mxu0 %v1127_v52  ;;  %v1016_v50 = vld [vmem:[#allocation12 + $0x9b0] sm:$0xff]  ;;  %v745_v51 = vld [vmem:[#allocation12 + $0x138] sm:$0xff] }
 0x2fc   :  { %1623 = vmatpush2.msra.mxu1 %v862_v53  ;;  %1692 = vmatpush2.msra.mxu0 %v1126_v54  ;;  %v1009_v52 = vld [vmem:[#allocation12 + $0x978] sm:$0xff]  ;;  %v744_v53 = vld [vmem:[#allocation12 + $0x130] sm:$0xff] }
 0x2fd   :  { %1624 = vmatprep.subr.mxu1 %v855_v55  ;;  %1693 = vmatprep.subr.mxu0 %v1119_v56  ;;  %v1008_v54 = vld [vmem:[#allocation12 + $0x970] sm:$0xff]  ;;  %v737_v55 = vld [vmem:[#allocation12 + $0xf8] sm:$0xff] }
 0x2fe   :  { %1625 = vmatpush2.msra.mxu1 %v854_v57  ;;  %1694 = vmatpush2.msra.mxu0 %v1118_v58  ;;  %v1001_v56 = vld [vmem:[#allocation12 + $0x938] sm:$0xff]  ;;  %v736_v57 = vld [vmem:[#allocation12 + $0xf0] sm:$0xff] }
 0x2ff   :  { %1626 = vmatprep.subr.mxu1 %v847_v59  ;;  %1695 = vmatprep.subr.mxu0 %v1111_v60  ;;  %v1000_v58 = vld [vmem:[#allocation12 + $0x930] sm:$0xff]  ;;  %v729_v59 = vld [vmem:[#allocation12 + $0xb8] sm:$0xff] }
 0x300   :  { %1627 = vmatpush2.msra.mxu1 %v846_v61  ;;  %1696 = vmatpush2.msra.mxu0 %v1110_v62  ;;  %v993_v60 = vld [vmem:[#allocation12 + $0x8f8] sm:$0xff]  ;;  %v728_v61 = vld [vmem:[#allocation12 + $0xb0] sm:$0xff] }
 0x301   :  { %1628 = vmatprep.subr.mxu1 %v839_v63  ;;  %1697 = vmatprep.subr.mxu0 %v1103_v1  ;;  %v992_v62 = vld [vmem:[#allocation12 + $0x8f0] sm:$0xff]  ;;  %v721_v63 = vld [vmem:[#allocation12 + $0x78] sm:$0xff] }
 0x302   :  { %1629 = vmatpush2.msra.mxu1 %v838_v2  ;;  %1698 = vmatpush2.msra.mxu0 %v1102_v3  ;;  %v985_v1 = vld [vmem:[#allocation12 + $0x8b8] sm:$0xff]  ;;  %v720_v2 = vld [vmem:[#allocation12 + $0x70] sm:$0xff] }
 0x303   :  { %1631 = vmatmul.mubr.f32.vlgmr.msra.gmra.mxu1 %v4688_v42  ;;  %1699 = vmatprep.subr.mxu0 %v1095_v4  ;;  %v984_v3 = vld [vmem:[#allocation12 + $0x8b0] sm:$0xff]  ;;  %v713_v4 = vld [vmem:[#allocation12 + $0x38] sm:$0xff] }
 0x304   :  { %1708 = vmatprep.subr.mxu1 %v833_v5  ;;  %1700 = vmatpush2.msra.mxu0 %v1094_v6  ;;  %v977_v5 = vld [vmem:[#allocation12 + $0x878] sm:$0xff]  ;;  %v712_v6 = vld [vmem:[#allocation12 + $0x30] sm:$0xff] }
 0x305   :  { %1709 = vmatpush1.msra.mxu1 %v832_v7  ;;  %1772 = vmatprep.mubr.f32.mxu1 %v4692_v44  ;;  %v801_v44 = vld [vmem:[#allocation12 + $0x2f8] sm:$0xff]  ;;  %v976_v7 = vld [vmem:[#allocation12 + $0x870] sm:$0xff] }
 0x306   :  { %1702 = vmatmul.mubr.f32.vlgmr.msra.gmra.mxu0 %v4694_v45  ;;  %1710 = vmatprep.subr.mxu1 %v825_v8  ;;  %v961_v8 = vld [vmem:[#allocation12 + $0x7f8] sm:$0xff] }
 0x307   :  { %1779 = vmatprep.subr.mxu0 %v1089_v9  ;;  %1711 = vmatpush1.msra.mxu1 %v824_v10  ;;  %v969_v9 = vld [vmem:[#allocation12 + $0x838] sm:$0xff]  ;;  %v960_v10 = vld [vmem:[#allocation12 + $0x7f0] sm:$0xff] }
 0x308   :  { %1780 = vmatpush1.msra.mxu0 %v1088_v11  ;;  %1843 = vmatprep.mubr.f32.mxu0 %v4699_v47  ;;  %v792_v47 = vld [vmem:[#allocation12 + $0x2b0] sm:$0xff] }
 0x309   :  { %1712 = vmatprep.subr.mxu1 %v817_v12  ;;  %1781 = vmatprep.subr.mxu0 %v1081_v13  ;;  %v968_v11 = vld [vmem:[#allocation12 + $0x830] sm:$0xff]  ;;  %v953_v12 = vld [vmem:[#allocation12 + $0x7b8] sm:$0xff] }
 0x30a   :  { %1713 = vmatpush1.msra.mxu1 %v816_v14  ;;  %1782 = vmatpush1.msra.mxu0 %v1080_v15  ;;  %v1217_v13 = vld [vmem:[#allocation12 + $0xff8] sm:$0xff]  ;;  %v952_v14 = vld [vmem:[#allocation12 + $0x7b0] sm:$0xff] }
 0x30b   :  { %1714 = vmatprep.subr.mxu1 %v809_v16  ;;  %1783 = vmatprep.subr.mxu0 %v1073_v17  ;;  %v1216_v15 = vld [vmem:[#allocation12 + $0xff0] sm:$0xff]  ;;  %v945_v16 = vld [vmem:[#allocation12 + $0x778] sm:$0xff] }
 0x30c   :  { %1715 = vmatpush1.msra.mxu1 %v808_v18  ;;  %1784 = vmatpush1.msra.mxu0 %v1072_v19  ;;  %v1209_v17 = vld [vmem:[#allocation12 + $0xfb8] sm:$0xff]  ;;  %v944_v18 = vld [vmem:[#allocation12 + $0x770] sm:$0xff] }
 0x30d   :  { %1716 = vmatprep.subr.mxu1 %v801_v44  ;;  %1785 = vmatprep.subr.mxu0 %v1065_v20  ;;  %v1208_v19 = vld [vmem:[#allocation12 + $0xfb0] sm:$0xff]  ;;  %v937_v44 = vld [vmem:[#allocation12 + $0x738] sm:$0xff] }
 0x30e   :  { %1717 = vmatpush1.msra.mxu1 %v800_v21  ;;  %1786 = vmatpush1.msra.mxu0 %v1064_v22  ;;  %v1201_v20 = vld [vmem:[#allocation12 + $0xf78] sm:$0xff]  ;;  %v936_v21 = vld [vmem:[#allocation12 + $0x730] sm:$0xff] }
 0x30f   :  { %1718 = vmatprep.subr.mxu1 %v793_v23  ;;  %1787 = vmatprep.subr.mxu0 %v1057_v24  ;;  %v1200_v22 = vld [vmem:[#allocation12 + $0xf70] sm:$0xff]  ;;  %v929_v23 = vld [vmem:[#allocation12 + $0x6f8] sm:$0xff] }
 0x310   :  { %1719 = vmatpush1.msra.mxu1 %v792_v47  ;;  %1788 = vmatpush1.msra.mxu0 %v1056_v25  ;;  %v1193_v24 = vld [vmem:[#allocation12 + $0xf38] sm:$0xff]  ;;  %v928_v47 = vld [vmem:[#allocation12 + $0x6f0] sm:$0xff] }
 0x311   :  { %1720 = vmatprep.subr.mxu1 %v785_v26  ;;  %1789 = vmatprep.subr.mxu0 %v1049_v27  ;;  %v1192_v25 = vld [vmem:[#allocation12 + $0xf30] sm:$0xff]  ;;  %v921_v26 = vld [vmem:[#allocation12 + $0x6b8] sm:$0xff] }
 0x312   :  { %1721 = vmatpush1.msra.mxu1 %v784_v29  ;;  %1790 = vmatpush1.msra.mxu0 %v1048_v30  ;;  %v1185_v27 = vld [vmem:[#allocation12 + $0xef8] sm:$0xff]  ;;  %v920_v29 = vld [vmem:[#allocation12 + $0x6b0] sm:$0xff] }
 0x313   :  { %1722 = vmatprep.subr.mxu1 %v777_v31  ;;  %1791 = vmatprep.subr.mxu0 %v1041_v32  ;;  %v1184_v30 = vld [vmem:[#allocation12 + $0xef0] sm:$0xff]  ;;  %v913_v31 = vld [vmem:[#allocation12 + $0x678] sm:$0xff] }
 0x314   :  { %1723 = vmatpush1.msra.mxu1 %v776_v33  ;;  %1792 = vmatpush1.msra.mxu0 %v1040_v34  ;;  %v1177_v32 = vld [vmem:[#allocation12 + $0xeb8] sm:$0xff]  ;;  %v912_v33 = vld [vmem:[#allocation12 + $0x670] sm:$0xff] }
 0x315   :  { %1724 = vmatprep.subr.mxu1 %v769_v35  ;;  %1793 = vmatprep.subr.mxu0 %v1033_v36  ;;  %v1176_v34 = vld [vmem:[#allocation12 + $0xeb0] sm:$0xff]  ;;  %v905_v35 = vld [vmem:[#allocation12 + $0x638] sm:$0xff] }
 0x316   :  { %1725 = vmatpush1.msra.mxu1 %v768_v37  ;;  %1794 = vmatpush1.msra.mxu0 %v1032_v38  ;;  %v1169_v36 = vld [vmem:[#allocation12 + $0xe78] sm:$0xff]  ;;  %v904_v37 = vld [vmem:[#allocation12 + $0x630] sm:$0xff] }
 0x317   :  { %1726 = vmatprep.subr.mxu1 %v761_v39  ;;  %1795 = vmatprep.subr.mxu0 %v1025_v40  ;;  %v1168_v38 = vld [vmem:[#allocation12 + $0xe70] sm:$0xff]  ;;  %v897_v39 = vld [vmem:[#allocation12 + $0x5f8] sm:$0xff] }
 0x318   :  { %1727 = vmatpush1.msra.mxu1 %v760_v41  ;;  %1796 = vmatpush1.msra.mxu0 %v1024_v43  ;;  %v1161_v40 = vld [vmem:[#allocation12 + $0xe38] sm:$0xff]  ;;  %v896_v41 = vld [vmem:[#allocation12 + $0x5f0] sm:$0xff] }
 0x319   :  { %1728 = vmatprep.subr.mxu1 %v753_v46  ;;  %1797 = vmatprep.subr.mxu0 %v1017_v48  ;;  %v1160_v43 = vld [vmem:[#allocation12 + $0xe30] sm:$0xff]  ;;  %v889_v46 = vld [vmem:[#allocation12 + $0x5b8] sm:$0xff] }
 0x31a   :  { %1729 = vmatpush1.msra.mxu1 %v752_v49  ;;  %1798 = vmatpush1.msra.mxu0 %v1016_v50  ;;  %v1153_v48 = vld [vmem:[#allocation12 + $0xdf8] sm:$0xff]  ;;  %v888_v49 = vld [vmem:[#allocation12 + $0x5b0] sm:$0xff] }
 0x31b   :  { %1730 = vmatprep.subr.mxu1 %v745_v51  ;;  %1799 = vmatprep.subr.mxu0 %v1009_v52  ;;  %v1152_v50 = vld [vmem:[#allocation12 + $0xdf0] sm:$0xff]  ;;  %v881_v51 = vld [vmem:[#allocation12 + $0x578] sm:$0xff] }
 0x31c   :  { %1731 = vmatpush1.msra.mxu1 %v744_v53  ;;  %1800 = vmatpush1.msra.mxu0 %v1008_v54  ;;  %v1145_v52 = vld [vmem:[#allocation12 + $0xdb8] sm:$0xff]  ;;  %v880_v53 = vld [vmem:[#allocation12 + $0x570] sm:$0xff] }
 0x31d   :  { %1732 = vmatprep.subr.mxu1 %v737_v55  ;;  %1801 = vmatprep.subr.mxu0 %v1001_v56  ;;  %v1144_v54 = vld [vmem:[#allocation12 + $0xdb0] sm:$0xff]  ;;  %v873_v55 = vld [vmem:[#allocation12 + $0x538] sm:$0xff] }
 0x31e   :  { %1733 = vmatpush1.msra.mxu1 %v736_v57  ;;  %1802 = vmatpush1.msra.mxu0 %v1000_v58  ;;  %v1137_v56 = vld [vmem:[#allocation12 + $0xd78] sm:$0xff]  ;;  %v872_v57 = vld [vmem:[#allocation12 + $0x530] sm:$0xff] }
 0x31f   :  { %1734 = vmatprep.subr.mxu1 %v729_v59  ;;  %1803 = vmatprep.subr.mxu0 %v993_v60  ;;  %v1136_v58 = vld [vmem:[#allocation12 + $0xd70] sm:$0xff]  ;;  %v865_v59 = vld [vmem:[#allocation12 + $0x4f8] sm:$0xff] }
 0x320   :  { %1735 = vmatpush1.msra.mxu1 %v728_v61  ;;  %1804 = vmatpush1.msra.mxu0 %v992_v62  ;;  %v1129_v60 = vld [vmem:[#allocation12 + $0xd38] sm:$0xff]  ;;  %v864_v61 = vld [vmem:[#allocation12 + $0x4f0] sm:$0xff] }
 0x321   :  { %1736 = vmatprep.subr.mxu1 %v721_v63  ;;  %1805 = vmatprep.subr.mxu0 %v985_v1  ;;  %v1128_v62 = vld [vmem:[#allocation12 + $0xd30] sm:$0xff]  ;;  %v1226_v63 = vsub.s32 1, %v4685_v28  ;;  %v857_v1 = vld [vmem:[#allocation12 + $0x4b8] sm:$0xff] }
 0x322   :  { %1737 = vmatpush1.msra.mxu1 %v720_v2  ;;  %1806 = vmatpush1.msra.mxu0 %v984_v3  ;;  %v1121_v2 = vld [vmem:[#allocation12 + $0xcf8] sm:$0xff]  ;;  %v856_v3 = vld [vmem:[#allocation12 + $0x4b0] sm:$0xff] }
 0x323   :  { %1738 = vmatprep.subr.mxu1 %v713_v4  ;;  %1807 = vmatprep.subr.mxu0 %v977_v5  ;;  %v1120_v4 = vld [vmem:[#allocation12 + $0xcf0] sm:$0xff]  ;;  %v849_v5 = vld [vmem:[#allocation12 + $0x478] sm:$0xff] }
 0x324   :  { %1739 = vmatpush1.msra.mxu1 %v712_v6  ;;  %1808 = vmatpush1.msra.mxu0 %v976_v7  ;;  %v1113_v6 = vld [vmem:[#allocation12 + $0xcb8] sm:$0xff]  ;;  %v4715_v7 = vld [vmem:[#allocation13] sm:$0xff] }
 0x325   :  { %1740 = vmatprep.subr.mxu1 %v961_v8  ;;  %1809 = vmatprep.subr.mxu0 %v969_v9  ;;  %v848_v8 = vld [vmem:[#allocation12 + $0x470] sm:$0xff] }
 0x326   :  { %1741 = vmatpush2.msra.mxu1 %v960_v10  ;;  %1810 = vmatpush1.msra.mxu0 %v968_v11  ;;  %v1112_v9 = vld [vmem:[#allocation12 + $0xcb0] sm:$0xff]  ;;  %v1227_v10 = vrot.slane %v4715_v7, %v1226_v63  ;;  %v841_v11 = vld [vmem:[#allocation12 + $0x438] sm:$0xff] }
 0x327   :  { %1742 = vmatprep.subr.mxu1 %v953_v12  ;;  %1811 = vmatprep.subr.mxu0 %v1217_v13  ;;  %v1105_v12 = vld [vmem:[#allocation12 + $0xc78] sm:$0xff] }
 0x328   :  { %1743 = vmatpush2.msra.mxu1 %v952_v14  ;;  %1812 = vmatpush2.msra.mxu0 %v1216_v15  ;;  %v840_v14 = vld [vmem:[#allocation12 + $0x430] sm:$0xff] }
 0x329   :  { %1744 = vmatprep.subr.mxu1 %v945_v16  ;;  %1813 = vmatprep.subr.mxu0 %v1209_v17  ;;  %v1104_v15 = vld [vmem:[#allocation12 + $0xc70] sm:$0xff]  ;;  %v1097_v16 = vld [vmem:[#allocation12 + $0xc38] sm:$0xff] }
 0x32a   :  { %1745 = vmatpush2.msra.mxu1 %v944_v18  ;;  %1814 = vmatpush2.msra.mxu0 %v1208_v19  ;;  %v1934_v18 = vld [vmem:[#allocation15 + $0x260] sm:$0xff]  ;;  %v1096_v19 = vld [vmem:[#allocation12 + $0xc30] sm:$0xff] }
 0x32b   :  { %1746 = vmatprep.subr.mxu1 %v937_v44  ;;  %1815 = vmatprep.subr.mxu0 %v1201_v20 }
 0x32c   :  { %1747 = vmatpush2.msra.mxu1 %v936_v21  ;;  %1816 = vmatpush2.msra.mxu0 %v1200_v22  ;;  %v1933_v21 = vld [vmem:[#allocation15 + $0x258] sm:$0xff] }
 0x32d   :  { %1748 = vmatprep.subr.mxu1 %v929_v23  ;;  %1817 = vmatprep.subr.mxu0 %v1193_v24  ;;  %v1929_v22 = vld [vmem:[#allocation15 + $0x238] sm:$0xff]  ;;  %v2094_v24 = vld [vmem:[#allocation15 + $0x760] sm:$0xff] }
 0x32e   :  { %1749 = vmatpush2.msra.mxu1 %v928_v47  ;;  %1818 = vmatpush2.msra.mxu0 %v1192_v25  ;;  %v1928_v47 = vld [vmem:[#allocation15 + $0x230] sm:$0xff] }
 0x32f   :  { %1750 = vmatprep.subr.mxu1 %v921_v26  ;;  %1819 = vmatprep.subr.mxu0 %v1185_v27  ;;  %v2093_v26 = vld [vmem:[#allocation15 + $0x758] sm:$0xff]  ;;  %v1924_v27 = vld [vmem:[#allocation15 + $0x210] sm:$0xff] }
 0x330   :  { %1751 = vmatpush2.msra.mxu1 %v920_v29  ;;  %1820 = vmatpush2.msra.mxu0 %v1184_v30  ;;  %v1923_v30 = vld [vmem:[#allocation15 + $0x208] sm:$0xff] }
 0x331   :  { %1752 = vmatprep.subr.mxu1 %v913_v31  ;;  %1821 = vmatprep.subr.mxu0 %v1177_v32  ;;  %v2089_v31 = vld [vmem:[#allocation15 + $0x738] sm:$0xff]  ;;  %v2088_v32 = vld [vmem:[#allocation15 + $0x730] sm:$0xff] }
 0x332   :  { %1753 = vmatpush2.msra.mxu1 %v912_v33  ;;  %1822 = vmatpush2.msra.mxu0 %v1176_v34  ;;  %v1918_v33 = vld [vmem:[#allocation15 + $0x1e0] sm:$0xff]  ;;  %v2084_v34 = vld [vmem:[#allocation15 + $0x710] sm:$0xff] }
 0x333   :  { %1754 = vmatprep.subr.mxu1 %v905_v35  ;;  %1823 = vmatprep.subr.mxu0 %v1169_v36  ;;  %v1914_v35 = vld [vmem:[#allocation15 + $0x1c0] sm:$0xff]  ;;  %v1913_v36 = vld [vmem:[#allocation15 + $0x1b8] sm:$0xff] }
 0x334   :  { %1755 = vmatpush2.msra.mxu1 %v904_v37  ;;  %1824 = vmatpush2.msra.mxu0 %v1168_v38  ;;  %v2079_v37 = vld [vmem:[#allocation15 + $0x6e8] sm:$0xff]  ;;  %v1909_v38 = vld [vmem:[#allocation15 + $0x198] sm:$0xff] }
 0x335   :  { %1756 = vmatprep.subr.mxu1 %v897_v39  ;;  %1825 = vmatprep.subr.mxu0 %v1161_v40  ;;  %v2078_v39 = vld [vmem:[#allocation15 + $0x6e0] sm:$0xff]  ;;  %v1908_v40 = vld [vmem:[#allocation15 + $0x190] sm:$0xff] }
 0x336   :  { %1757 = vmatpush2.msra.mxu1 %v896_v41  ;;  %1826 = vmatpush2.msra.mxu0 %v1160_v43  ;;  %v2074_v41 = vld [vmem:[#allocation15 + $0x6c0] sm:$0xff]  ;;  %v1904_v43 = vld [vmem:[#allocation15 + $0x170] sm:$0xff] }
 0x337   :  { %1758 = vmatprep.subr.mxu1 %v889_v46  ;;  %1827 = vmatprep.subr.mxu0 %v1153_v48  ;;  %v2073_v46 = vld [vmem:[#allocation15 + $0x6b8] sm:$0xff]  ;;  %v1903_v48 = vld [vmem:[#allocation15 + $0x168] sm:$0xff] }
 0x338   :  { %1759 = vmatpush2.msra.mxu1 %v888_v49  ;;  %1828 = vmatpush2.msra.mxu0 %v1152_v50  ;;  %v2069_v49 = vld [vmem:[#allocation15 + $0x698] sm:$0xff]  ;;  %v1899_v50 = vld [vmem:[#allocation15 + $0x148] sm:$0xff] }
 0x339   :  { %1760 = vmatprep.subr.mxu1 %v881_v51  ;;  %1829 = vmatprep.subr.mxu0 %v1145_v52  ;;  %v2068_v51 = vld [vmem:[#allocation15 + $0x690] sm:$0xff]  ;;  %v1898_v52 = vld [vmem:[#allocation15 + $0x140] sm:$0xff] }
 0x33a   :  { %1761 = vmatpush2.msra.mxu1 %v880_v53  ;;  %1830 = vmatpush2.msra.mxu0 %v1144_v54  ;;  %v2064_v53 = vld [vmem:[#allocation15 + $0x670] sm:$0xff]  ;;  %v1894_v54 = vld [vmem:[#allocation15 + $0x120] sm:$0xff] }
 0x33b   :  { %1762 = vmatprep.subr.mxu1 %v873_v55  ;;  %1831 = vmatprep.subr.mxu0 %v1137_v56  ;;  %v2063_v55 = vld [vmem:[#allocation15 + $0x668] sm:$0xff]  ;;  %v1893_v56 = vld [vmem:[#allocation15 + $0x118] sm:$0xff] }
 0x33c   :  { %1763 = vmatpush2.msra.mxu1 %v872_v57  ;;  %1832 = vmatpush2.msra.mxu0 %v1136_v58  ;;  %v2059_v57 = vld [vmem:[#allocation15 + $0x648] sm:$0xff]  ;;  %v1889_v58 = vld [vmem:[#allocation15 + $0xf8] sm:$0xff] }
 0x33d   :  { %1764 = vmatprep.subr.mxu1 %v865_v59  ;;  %1833 = vmatprep.subr.mxu0 %v1129_v60  ;;  %v2058_v59 = vld [vmem:[#allocation15 + $0x640] sm:$0xff]  ;;  %v1888_v60 = vld [vmem:[#allocation15 + $0xf0] sm:$0xff] }
 0x33e   :  { %1765 = vmatpush2.msra.mxu1 %v864_v61  ;;  %1834 = vmatpush2.msra.mxu0 %v1128_v62  ;;  %v2054_v61 = vld [vmem:[#allocation15 + $0x620] sm:$0xff]  ;;  %v1884_v62 = vld [vmem:[#allocation15 + $0xd0] sm:$0xff] }
 0x33f   :  { %1766 = vmatprep.subr.mxu1 %v857_v1  ;;  %1835 = vmatprep.subr.mxu0 %v1121_v2  ;;  %v2053_v1 = vld [vmem:[#allocation15 + $0x618] sm:$0xff]  ;;  %v1883_v2 = vld [vmem:[#allocation15 + $0xc8] sm:$0xff] }
 0x340   :  { %1767 = vmatpush2.msra.mxu1 %v856_v3  ;;  %1836 = vmatpush2.msra.mxu0 %v1120_v4  ;;  %v4720_v13 = vpop.f32.mrf.mxu1  ;;  %v2049_v3 = vld [vmem:[#allocation15 + $0x5f8] sm:$0xff]  ;;  %v1879_v4 = vld [vmem:[#allocation15 + $0xa8] sm:$0xff] }
 0x341   :  { %1768 = vmatprep.subr.mxu1 %v849_v5  ;;  %1837 = vmatprep.subr.mxu0 %v1113_v6  ;;  %v2048_v5 = vld [vmem:[#allocation15 + $0x5f0] sm:$0xff]  ;;  %v1878_v6 = vld [vmem:[#allocation15 + $0xa0] sm:$0xff] }
 0x342   :  { %1769 = vmatpush2.msra.mxu1 %v848_v8  ;;  %1838 = vmatpush2.msra.mxu0 %v1112_v9  ;;  %v1350_v17 = vpop.f32.mrf.mxu1  ;;  %v2044_v8 = vld [vmem:[#allocation15 + $0x5d0] sm:$0xff]  ;;  %v1874_v9 = vld [vmem:[#allocation15 + $0x80] sm:$0xff] }
 0x343   :  { %1770 = vmatprep.subr.mxu1 %v841_v11  ;;  %1839 = vmatprep.subr.mxu0 %v1105_v12  ;;  %v1351_v44 = vadd.f32 %v1350_v17, %v1227_v10  ;;  %v4722_v20 = vpop.f32.mrf.mxu0  ;;  %v2043_v10 = vld [vmem:[#allocation15 + $0x5c8] sm:$0xff]  ;;  %v1873_v11 = vld [vmem:[#allocation15 + $0x78] sm:$0xff]  ;;  %v2034_v17 = vld [vmem:[#allocation15 + $0x580] sm:$0xff] }
 0x344   :  { %1771 = vmatpush2.msra.mxu1 %v840_v14  ;;  %1840 = vmatpush2.msra.mxu0 %v1104_v15  ;;  %v2039_v12 = vld [vmem:[#allocation15 + $0x5a8] sm:$0xff]  ;;  %v1869_v14 = vld [vmem:[#allocation15 + $0x58] sm:$0xff]  ;;  %v2038_v15 = vld [vmem:[#allocation15 + $0x5a0] sm:$0xff] }
 0x345   :  { %1773 = vmatmul.mubr.f32.vlgmr.msra.gmra.mxu1 %v4688_v42  ;;  %1841 = vmatprep.subr.mxu0 %v1097_v16  ;;  %v1421_v23 = vpop.f32.mrf.mxu0  ;;  %v1919_v42 = vld [vmem:[#allocation15 + $0x1e8] sm:$0xff]  ;;  %v1868_v16 = vld [vmem:[#allocation15 + $0x50] sm:$0xff] }
 0x346   :  { %2525 = vmatprep.subr.mxu1 %v1934_v18  ;;  %1842 = vmatpush2.msra.mxu0 %v1096_v19  ;;  %v1422_v25 = vadd.f32 %v1421_v23, %v1351_v44  ;;  %v1864_v18 = vld [vmem:[#allocation15 + $0x30] sm:$0xff]  ;;  %v2033_v19 = vld [vmem:[#allocation15 + $0x578] sm:$0xff]  ;;  %v1863_v44 = vld [vmem:[#allocation15 + $0x28] sm:$0xff] }
 0x347   :  { %2526 = vmatpush1.msra.mxu1 %v1933_v21  ;;  %1844 = vmatmul.mubr.f32.vlgmr.msra.gmra.mxu0 %v4694_v45  ;;  %v2083_v45 = vld [vmem:[#allocation15 + $0x708] sm:$0xff]  ;;  %v2029_v21 = vld [vmem:[#allocation15 + $0x558] sm:$0xff]  ;;  %v2028_v23 = vld [vmem:[#allocation15 + $0x550] sm:$0xff] }
 0x348   :  { %2527 = vmatprep.subr.mxu1 %v1929_v22  ;;  %v4726_v29 = vmax.f32 %v1422_v25, 0.0  ;;  %2596 = vmatprep.subr.mxu0 %v2094_v24  ;;  %v1859_v22 = vld [vmem:[#allocation15 + $0x8] sm:$0xff]  ;;  %v1858_v24 = vld [vmem:[#allocation15] sm:$0xff] }
 0x349   :  { %2528 = vmatpush1.msra.mxu1 %v1928_v47  ;;  %2597 = vmatpush1.msra.mxu0 %v2093_v26  ;;  %v2024_v47 = vld [vmem:[#allocation15 + $0x530] sm:$0xff]  ;;  %v2014_v25 = vld [vmem:[#allocation15 + $0x4e0] sm:$0xff]  ;;  %v2023_v26 = vld [vmem:[#allocation15 + $0x528] sm:$0xff] }
 0x34a   :  { %2529 = vmatprep.subr.mxu1 %v1924_v27  ;;  %2589 = vmatprep.mubr.f32.mxu1 %v4726_v29  ;;  %v2013_v27 = vld [vmem:[#allocation15 + $0x4d8] sm:$0xff] }
 0x34b   :  { %2530 = vmatpush1.msra.mxu1 %v1923_v30  ;;  %2598 = vmatprep.subr.mxu0 %v2089_v31  ;;  %v2019_v30 = vld [vmem:[#allocation15 + $0x508] sm:$0xff]  ;;  %v2009_v31 = vld [vmem:[#allocation15 + $0x4b8] sm:$0xff] }
 0x34c   :  { %2531 = vmatprep.subr.mxu1 %v1919_v42  ;;  %2599 = vmatpush1.msra.mxu0 %v2088_v32  ;;  %v2018_v42 = vld [vmem:[#allocation15 + $0x500] sm:$0xff]  ;;  %v2008_v32 = vld [vmem:[#allocation15 + $0x4b0] sm:$0xff] }
 0x34d   :  { %2532 = vmatpush1.msra.mxu1 %v1918_v33  ;;  %2600 = vmatprep.subr.mxu0 %v2084_v34  ;;  %v2174_v33 = vld [vmem:[#allocation15 + $0x9e0] sm:$0xff]  ;;  %v2004_v34 = vld [vmem:[#allocation15 + $0x490] sm:$0xff] }
 0x34e   :  { %2533 = vmatprep.subr.mxu1 %v1914_v35  ;;  %2601 = vmatpush1.msra.mxu0 %v2083_v45  ;;  %v2173_v35 = vld [vmem:[#allocation15 + $0x9d8] sm:$0xff]  ;;  %v2003_v45 = vld [vmem:[#allocation15 + $0x488] sm:$0xff] }
 0x34f   :  { %2534 = vmatpush1.msra.mxu1 %v1913_v36  ;;  %2602 = vmatprep.subr.mxu0 %v2079_v37  ;;  %v2169_v36 = vld [vmem:[#allocation15 + $0x9b8] sm:$0xff]  ;;  %v1999_v37 = vld [vmem:[#allocation15 + $0x468] sm:$0xff] }
 0x350   :  { %2535 = vmatprep.subr.mxu1 %v1909_v38  ;;  %2603 = vmatpush1.msra.mxu0 %v2078_v39  ;;  %v2168_v38 = vld [vmem:[#allocation15 + $0x9b0] sm:$0xff]  ;;  %v1998_v39 = vld [vmem:[#allocation15 + $0x460] sm:$0xff] }
 0x351   :  { %2536 = vmatpush1.msra.mxu1 %v1908_v40  ;;  %2604 = vmatprep.subr.mxu0 %v2074_v41  ;;  %v2164_v40 = vld [vmem:[#allocation15 + $0x990] sm:$0xff]  ;;  %v1994_v41 = vld [vmem:[#allocation15 + $0x440] sm:$0xff] }
 0x352   :  { %2537 = vmatprep.subr.mxu1 %v1904_v43  ;;  %2605 = vmatpush1.msra.mxu0 %v2073_v46  ;;  %v2163_v43 = vld [vmem:[#allocation15 + $0x988] sm:$0xff]  ;;  %v1993_v46 = vld [vmem:[#allocation15 + $0x438] sm:$0xff] }
 0x353   :  { %2538 = vmatpush1.msra.mxu1 %v1903_v48  ;;  %2606 = vmatprep.subr.mxu0 %v2069_v49  ;;  %v2159_v48 = vld [vmem:[#allocation15 + $0x968] sm:$0xff]  ;;  %v1989_v49 = vld [vmem:[#allocation15 + $0x418] sm:$0xff] }
 0x354   :  { %2539 = vmatprep.subr.mxu1 %v1899_v50  ;;  %2607 = vmatpush1.msra.mxu0 %v2068_v51  ;;  %v2158_v50 = vld [vmem:[#allocation15 + $0x960] sm:$0xff]  ;;  %v1988_v51 = vld [vmem:[#allocation15 + $0x410] sm:$0xff] }
 0x355   :  { %2540 = vmatpush1.msra.mxu1 %v1898_v52  ;;  %2608 = vmatprep.subr.mxu0 %v2064_v53  ;;  %v2154_v52 = vld [vmem:[#allocation15 + $0x940] sm:$0xff]  ;;  %v1984_v53 = vld [vmem:[#allocation15 + $0x3f0] sm:$0xff] }
 0x356   :  { %2541 = vmatprep.subr.mxu1 %v1894_v54  ;;  %2609 = vmatpush1.msra.mxu0 %v2063_v55  ;;  %v2153_v54 = vld [vmem:[#allocation15 + $0x938] sm:$0xff]  ;;  %v1983_v55 = vld [vmem:[#allocation15 + $0x3e8] sm:$0xff] }
 0x357   :  { %2542 = vmatpush1.msra.mxu1 %v1893_v56  ;;  %2610 = vmatprep.subr.mxu0 %v2059_v57  ;;  %v2149_v56 = vld [vmem:[#allocation15 + $0x918] sm:$0xff]  ;;  %v1979_v57 = vld [vmem:[#allocation15 + $0x3c8] sm:$0xff] }
 0x358   :  { %2543 = vmatprep.subr.mxu1 %v1889_v58  ;;  %2611 = vmatpush1.msra.mxu0 %v2058_v59  ;;  %v2148_v58 = vld [vmem:[#allocation15 + $0x910] sm:$0xff]  ;;  %v1978_v59 = vld [vmem:[#allocation15 + $0x3c0] sm:$0xff] }
 0x359   :  { %2544 = vmatpush1.msra.mxu1 %v1888_v60  ;;  %2612 = vmatprep.subr.mxu0 %v2054_v61  ;;  %v2144_v60 = vld [vmem:[#allocation15 + $0x8f0] sm:$0xff]  ;;  %v1974_v61 = vld [vmem:[#allocation15 + $0x3a0] sm:$0xff] }
 0x35a   :  { %2545 = vmatprep.subr.mxu1 %v1884_v62  ;;  %2613 = vmatpush1.msra.mxu0 %v2053_v1  ;;  %v2143_v62 = vld [vmem:[#allocation15 + $0x8e8] sm:$0xff]  ;;  %v1222_v1 = vsub.s32 0, %v4685_v28 }
 0x35b   :  { %2546 = vmatpush1.msra.mxu1 %v1883_v2  ;;  %2614 = vmatprep.subr.mxu0 %v2049_v3  ;;  %v1973_v2 = vld [vmem:[#allocation15 + $0x398] sm:$0xff]  ;;  %v2139_v3 = vld [vmem:[#allocation15 + $0x8c8] sm:$0xff] }
 0x35c   :  { %2547 = vmatprep.subr.mxu1 %v1879_v4  ;;  %2615 = vmatpush1.msra.mxu0 %v2048_v5  ;;  %v1969_v4 = vld [vmem:[#allocation15 + $0x378] sm:$0xff]  ;;  %v2138_v5 = vld [vmem:[#allocation15 + $0x8c0] sm:$0xff] }
 0x35d   :  { %2548 = vmatpush1.msra.mxu1 %v1878_v6  ;;  %2616 = vmatprep.subr.mxu0 %v2044_v8  ;;  %v1968_v6 = vld [vmem:[#allocation15 + $0x370] sm:$0xff]  ;;  %v2134_v8 = vld [vmem:[#allocation15 + $0x8a0] sm:$0xff] }
 0x35e   :  { %2549 = vmatprep.subr.mxu1 %v1874_v9  ;;  %2617 = vmatpush1.msra.mxu0 %v2043_v10  ;;  %v1964_v9 = vld [vmem:[#allocation15 + $0x350] sm:$0xff]  ;;  %v2133_v10 = vld [vmem:[#allocation15 + $0x898] sm:$0xff] }
 0x35f   :  { %2550 = vmatpush1.msra.mxu1 %v1873_v11  ;;  %2618 = vmatprep.subr.mxu0 %v2039_v12  ;;  %v1223_v11 = vrot.slane %v4715_v7, %v1222_v1  ;;  %v1963_v12 = vld [vmem:[#allocation15 + $0x348] sm:$0xff] }
 0x360   :  { %2551 = vmatprep.subr.mxu1 %v1869_v14  ;;  %2619 = vmatpush1.msra.mxu0 %v2038_v15  ;;  %v2129_v14 = vld [vmem:[#allocation15 + $0x878] sm:$0xff]  ;;  %v1959_v15 = vld [vmem:[#allocation15 + $0x328] sm:$0xff] }
 0x361   :  { %2552 = vmatpush1.msra.mxu1 %v1868_v16  ;;  %2620 = vmatprep.subr.mxu0 %v2034_v17  ;;  %v2128_v16 = vld [vmem:[#allocation15 + $0x870] sm:$0xff]  ;;  %v1958_v17 = vld [vmem:[#allocation15 + $0x320] sm:$0xff] }
 0x362   :  { %2553 = vmatprep.subr.mxu1 %v1864_v18  ;;  %2621 = vmatpush1.msra.mxu0 %v2033_v19  ;;  %v2124_v18 = vld [vmem:[#allocation15 + $0x850] sm:$0xff]  ;;  %v1230_v19 = vsub.s32 2, %v4685_v28 }
 0x363   :  { %2554 = vmatpush1.msra.mxu1 %v1863_v44  ;;  %2622 = vmatprep.subr.mxu0 %v2029_v21  ;;  %v1954_v44 = vld [vmem:[#allocation15 + $0x300] sm:$0xff]  ;;  %v2123_v21 = vld [vmem:[#allocation15 + $0x848] sm:$0xff] }
 0x364   :  { %2555 = vmatprep.subr.mxu1 %v1859_v22  ;;  %2623 = vmatpush1.msra.mxu0 %v2028_v23  ;;  %v1349_v22 = vadd.f32 %v4720_v13, %v1223_v11  ;;  %v1953_v23 = vld [vmem:[#allocation15 + $0x2f8] sm:$0xff]  ;;  %v1944_v13 = vld [vmem:[#allocation15 + $0x2b0] sm:$0xff]  ;;  %v2403_v11 = vld [vmem:[#allocation15 + $0x1108] sm:$0xff] }
 0x365   :  { %2556 = vmatpush1.msra.mxu1 %v1858_v24  ;;  %2624 = vmatprep.subr.mxu0 %v2024_v47  ;;  %v2119_v24 = vld [vmem:[#allocation15 + $0x828] sm:$0xff]  ;;  %v1234_v47 = vsub.s32 3, %v4685_v28 }
 0x366   :  { %2557 = vmatprep.subr.mxu1 %v2014_v25  ;;  %2625 = vmatpush1.msra.mxu0 %v2023_v26  ;;  %v1949_v25 = vld [vmem:[#allocation15 + $0x2d8] sm:$0xff]  ;;  %v2118_v26 = vld [vmem:[#allocation15 + $0x820] sm:$0xff] }
 0x367   :  { %2558 = vmatpush2.msra.mxu1 %v2013_v27  ;;  %2626 = vmatprep.subr.mxu0 %v2019_v30  ;;  %v1948_v27 = vld [vmem:[#allocation15 + $0x2d0] sm:$0xff]  ;;  %v1231_v30 = vrot.slane %v4715_v7, %v1230_v19 }
 0x368   :  { %2559 = vmatprep.subr.mxu1 %v2009_v31  ;;  %2627 = vmatpush1.msra.mxu0 %v2018_v42  ;;  %v2114_v31 = vld [vmem:[#allocation15 + $0x800] sm:$0xff]  ;;  %v2113_v42 = vld [vmem:[#allocation15 + $0x7f8] sm:$0xff] }
 0x369   :  { %2560 = vmatpush2.msra.mxu1 %v2008_v32  ;;  %2628 = vmatprep.subr.mxu0 %v2174_v33  ;;  %v1420_v32 = vadd.f32 %v4722_v20, %v1349_v22  ;;  %v1943_v33 = vld [vmem:[#allocation15 + $0x2a8] sm:$0xff]  ;;  %v2218_v22 = vld [vmem:[#allocation15 + $0xb40] sm:$0xff] }
 0x36a   :  { %2561 = vmatprep.subr.mxu1 %v2004_v34  ;;  %2629 = vmatpush2.msra.mxu0 %v2173_v35  ;;  %v1235_v34 = vrot.slane %v4715_v7, %v1234_v47  ;;  %v2109_v35 = vld [vmem:[#allocation15 + $0x7d8] sm:$0xff] }
 0x36b   :  { %2562 = vmatpush2.msra.mxu1 %v2003_v45  ;;  %2630 = vmatprep.subr.mxu0 %v2169_v36  ;;  %v1939_v45 = vld [vmem:[#allocation15 + $0x288] sm:$0xff] }
 0x36c   :  { %2563 = vmatprep.subr.mxu1 %v1999_v37  ;;  %2631 = vmatpush2.msra.mxu0 %v2168_v38  ;;  %v2108_v37 = vld [vmem:[#allocation15 + $0x7d0] sm:$0xff]  ;;  %v1938_v38 = vld [vmem:[#allocation15 + $0x280] sm:$0xff] }
 0x36d   :  { %2564 = vmatpush2.msra.mxu1 %v1998_v39  ;;  %2632 = vmatprep.subr.mxu0 %v2164_v40  ;;  %v2104_v40 = vld [vmem:[#allocation15 + $0x7b0] sm:$0xff] }
 0x36e   :  { %2565 = vmatprep.subr.mxu1 %v1994_v41  ;;  %2633 = vmatpush2.msra.mxu0 %v2163_v43  ;;  %v2103_v41 = vld [vmem:[#allocation15 + $0x7a8] sm:$0xff]  ;;  %v4743_v43 = vmax.f32 %v1420_v32, 0.0  ;;  %v2204_v32 = vld [vmem:[#allocation15 + $0xad0] sm:$0xff] }
 0x36f   :  { %2566 = vmatpush2.msra.mxu1 %v1993_v46  ;;  %2634 = vmatprep.subr.mxu0 %v2159_v48  ;;  %v2099_v48 = vld [vmem:[#allocation15 + $0x788] sm:$0xff] }
 0x370   :  { %2567 = vmatprep.subr.mxu1 %v1989_v49  ;;  %2635 = vmatpush2.msra.mxu0 %v2158_v50  ;;  %v2254_v49 = vld [vmem:[#allocation15 + $0xc60] sm:$0xff] }
 0x371   :  { %2568 = vmatpush2.msra.mxu1 %v1988_v51  ;;  %2636 = vmatprep.subr.mxu0 %v2154_v52  ;;  %v2098_v50 = vld [vmem:[#allocation15 + $0x780] sm:$0xff]  ;;  %v2253_v51 = vld [vmem:[#allocation15 + $0xc58] sm:$0xff] }
 0x372   :  { %2569 = vmatprep.subr.mxu1 %v1984_v53  ;;  %2637 = vmatpush2.msra.mxu0 %v2153_v54  ;;  %v2249_v54 = vld [vmem:[#allocation15 + $0xc38] sm:$0xff] }
 0x373   :  { %2570 = vmatpush2.msra.mxu1 %v1983_v55  ;;  %2638 = vmatprep.subr.mxu0 %v2149_v56  ;;  %v2414_v55 = vld [vmem:[#allocation15 + $0x1160] sm:$0xff] }
 0x374   :  { %2571 = vmatprep.subr.mxu1 %v1979_v57  ;;  %2639 = vmatpush2.msra.mxu0 %v2148_v58  ;;  %v2248_v57 = vld [vmem:[#allocation15 + $0xc30] sm:$0xff] }
 0x375   :  { %2572 = vmatpush2.msra.mxu1 %v1978_v59  ;;  %2640 = vmatprep.subr.mxu0 %v2144_v60  ;;  %v2244_v58 = vld [vmem:[#allocation15 + $0xc10] sm:$0xff]  ;;  %v2243_v60 = vld [vmem:[#allocation15 + $0xc08] sm:$0xff] }
 0x376   :  { %2573 = vmatprep.subr.mxu1 %v1974_v61  ;;  %2641 = vmatpush2.msra.mxu0 %v2143_v62  ;;  %v2239_v62 = vld [vmem:[#allocation15 + $0xbe8] sm:$0xff] }
 0x377   :  { %2574 = vmatpush2.msra.mxu1 %v1973_v2  ;;  %2642 = vmatprep.subr.mxu0 %v2139_v3  ;;  %v2413_v2 = vld [vmem:[#allocation15 + $0x1158] sm:$0xff]  ;;  %v2238_v3 = vld [vmem:[#allocation15 + $0xbe0] sm:$0xff] }
 0x378   :  { %2575 = vmatprep.subr.mxu1 %v1969_v4  ;;  %2643 = vmatpush2.msra.mxu0 %v2138_v5  ;;  %v2409_v4 = vld [vmem:[#allocation15 + $0x1138] sm:$0xff]  ;;  %v2234_v5 = vld [vmem:[#allocation15 + $0xbc0] sm:$0xff] }
 0x379   :  { %2576 = vmatpush2.msra.mxu1 %v1968_v6  ;;  %2644 = vmatprep.subr.mxu0 %v2134_v8  ;;  %v2408_v6 = vld [vmem:[#allocation15 + $0x1130] sm:$0xff]  ;;  %v2233_v8 = vld [vmem:[#allocation15 + $0xbb8] sm:$0xff] }
 0x37a   :  { %2577 = vmatprep.subr.mxu1 %v1964_v9  ;;  %2645 = vmatpush2.msra.mxu0 %v2133_v10  ;;  %v2404_v9 = vld [vmem:[#allocation15 + $0x1110] sm:$0xff]  ;;  %v2229_v10 = vld [vmem:[#allocation15 + $0xb98] sm:$0xff] }
 0x37b   :  { %2578 = vmatpush2.msra.mxu1 %v1963_v12  ;;  %2646 = vmatprep.subr.mxu0 %v2129_v14  ;;  %v2228_v12 = vld [vmem:[#allocation15 + $0xb90] sm:$0xff]  ;;  %v2399_v14 = vld [vmem:[#allocation15 + $0x10e8] sm:$0xff] }
 0x37c   :  { %2579 = vmatprep.subr.mxu1 %v1959_v15  ;;  %2647 = vmatpush2.msra.mxu0 %v2128_v16  ;;  %v2224_v15 = vld [vmem:[#allocation15 + $0xb70] sm:$0xff]  ;;  %v2398_v16 = vld [vmem:[#allocation15 + $0x10e0] sm:$0xff] }
 0x37d   :  { %2580 = vmatpush2.msra.mxu1 %v1958_v17  ;;  %2648 = vmatprep.subr.mxu0 %v2124_v18  ;;  %v2223_v17 = vld [vmem:[#allocation15 + $0xb68] sm:$0xff]  ;;  %v2394_v18 = vld [vmem:[#allocation15 + $0x10c0] sm:$0xff] }
 0x37e   :  { %2581 = vmatprep.subr.mxu1 %v1954_v44  ;;  %2649 = vmatpush2.msra.mxu0 %v2123_v21  ;;  %v2219_v44 = vld [vmem:[#allocation15 + $0xb48] sm:$0xff]  ;;  %v2393_v21 = vld [vmem:[#allocation15 + $0x10b8] sm:$0xff] }
 0x37f   :  { %2582 = vmatpush2.msra.mxu1 %v1953_v23  ;;  %2650 = vmatprep.subr.mxu0 %v2119_v24  ;;  %v2389_v23 = vld [vmem:[#allocation15 + $0x1098] sm:$0xff]  ;;  %v2214_v24 = vld [vmem:[#allocation15 + $0xb20] sm:$0xff] }
 0x380   :  { %2583 = vmatprep.subr.mxu1 %v1949_v25  ;;  %2651 = vmatpush2.msra.mxu0 %v2118_v26  ;;  %v2388_v25 = vld [vmem:[#allocation15 + $0x1090] sm:$0xff]  ;;  %v2213_v26 = vld [vmem:[#allocation15 + $0xb18] sm:$0xff] }
 0x381   :  { %2584 = vmatpush2.msra.mxu1 %v1948_v27  ;;  %v1490_v36 = vpop.f32.mrf.mxu1  ;;  %2652 = vmatprep.subr.mxu0 %v2114_v31  ;;  %v2384_v27 = vld [vmem:[#allocation15 + $0x1070] sm:$0xff]  ;;  %v2383_v31 = vld [vmem:[#allocation15 + $0x1068] sm:$0xff] }
 0x382   :  { %2585 = vmatprep.subr.mxu1 %v1944_v13  ;;  %v1491_v39 = vadd.f32 %v1490_v36, %v1231_v30  ;;  %2653 = vmatpush2.msra.mxu0 %v2113_v42  ;;  %v2209_v30 = vld [vmem:[#allocation15 + $0xaf8] sm:$0xff]  ;;  %v2208_v13 = vld [vmem:[#allocation15 + $0xaf0] sm:$0xff]  ;;  %v2379_v42 = vld [vmem:[#allocation15 + $0x1048] sm:$0xff] }
 0x383   :  { %2586 = vmatpush2.msra.mxu1 %v1943_v33  ;;  %v1492_v20 = vpop.f32.mrf.mxu1  ;;  %2654 = vmatprep.subr.mxu0 %v2109_v35  ;;  %v2378_v33 = vld [vmem:[#allocation15 + $0x1040] sm:$0xff]  ;;  %v2373_v36 = vld [vmem:[#allocation15 + $0x1018] sm:$0xff] }
 0x384   :  { %2587 = vmatprep.subr.mxu1 %v1939_v45  ;;  %v1493_v46 = vadd.f32 %v1492_v20, %v1235_v34  ;;  %v1561_v7 = vpop.f32.mrf.mxu0  ;;  %2655 = vmatpush2.msra.mxu0 %v2108_v37  ;;  %v2203_v34 = vld [vmem:[#allocation15 + $0xac8] sm:$0xff]  ;;  %v2374_v35 = vld [vmem:[#allocation15 + $0x1020] sm:$0xff]  ;;  %v2193_v20 = vld [vmem:[#allocation15 + $0xa78] sm:$0xff] }
 0x385   :  { %2588 = vmatpush2.msra.mxu1 %v1938_v38  ;;  %2656 = vmatprep.subr.mxu0 %v2104_v40  ;;  %v1562_v52 = vadd.f32 %v1561_v7, %v1491_v39  ;;  %v2199_v45 = vld [vmem:[#allocation15 + $0xaa8] sm:$0xff]  ;;  %v2198_v37 = vld [vmem:[#allocation15 + $0xaa0] sm:$0xff]  ;;  %v2369_v38 = vld [vmem:[#allocation15 + $0xff8] sm:$0xff] }
 0x386   :  { %2590 = vmatmul.mubr.f32.vlgmr.msra.gmra.mxu1 %v4743_v43  ;;  %v1563_v53 = vpop.f32.mrf.mxu0  ;;  %2657 = vmatpush2.msra.mxu0 %v2103_v41  ;;  %v2194_v39 = vld [vmem:[#allocation15 + $0xa80] sm:$0xff]  ;;  %v2368_v40 = vld [vmem:[#allocation15 + $0xff0] sm:$0xff]  ;;  %v2363_v7 = vld [vmem:[#allocation15 + $0xfc8] sm:$0xff] }
 0x387   :  { %v1564_v56 = vadd.f32 %v1563_v53, %v1493_v46  ;;  %2658 = vmatprep.subr.mxu0 %v2099_v48  ;;  %2667 = vmatprep.subr.mxu1 %v2254_v49  ;;  %v4748_v61 = vmax.f32 %v1562_v52, 0.0  ;;  %v2364_v41 = vld [vmem:[#allocation15 + $0xfd0] sm:$0xff]  ;;  %v2189_v46 = vld [vmem:[#allocation15 + $0xa58] sm:$0xff]  ;;  %v2359_v49 = vld [vmem:[#allocation15 + $0xfa8] sm:$0xff] }
 0x388   :  { %2659 = vmatpush2.msra.mxu0 %v2098_v50  ;;  %2668 = vmatpush1.msra.mxu1 %v2253_v51  ;;  %v2188_v48 = vld [vmem:[#allocation15 + $0xa50] sm:$0xff]  ;;  %v2358_v51 = vld [vmem:[#allocation15 + $0xfa0] sm:$0xff]  ;;  %v2183_v52 = vld [vmem:[#allocation15 + $0xa28] sm:$0xff] }
 0x389   :  { %v4746_v59 = vmax.f32 %v1564_v56, 0.0  ;;  %2669 = vmatprep.subr.mxu1 %v2249_v54  ;;  %2738 = vmatprep.subr.mxu0 %v2414_v55  ;;  %v2184_v50 = vld [vmem:[#allocation15 + $0xa30] sm:$0xff]  ;;  %v2354_v53 = vld [vmem:[#allocation15 + $0xf80] sm:$0xff]  ;;  %v2179_v54 = vld [vmem:[#allocation15 + $0xa08] sm:$0xff] }
 0x38a   :  { %2670 = vmatpush1.msra.mxu1 %v2248_v57  ;;  %v2353_v55 = vld [vmem:[#allocation15 + $0xf78] sm:$0xff]  ;;  %v2178_v56 = vld [vmem:[#allocation15 + $0xa00] sm:$0xff] }
 0x38b   :  { %2660 = vmatprep.mubr.f32.mxu0 %v4746_v59  ;;  %2671 = vmatprep.subr.mxu1 %v2244_v58  ;;  %v2349_v57 = vld [vmem:[#allocation15 + $0xf58] sm:$0xff]  ;;  %v2334_v58 = vld [vmem:[#allocation15 + $0xee0] sm:$0xff] }
 0x38c   :  { %2661 = vmatmul.mubr.f32.vlgmr.msra.gmra.mxu0 %v4748_v61  ;;  %2672 = vmatpush1.msra.mxu1 %v2243_v60  ;;  %v2348_v60 = vld [vmem:[#allocation15 + $0xf50] sm:$0xff] }
 0x38d   :  { %2673 = vmatprep.subr.mxu1 %v2239_v62  ;;  %2739 = vmatpush1.msra.mxu0 %v2413_v2  ;;  %v2333_v62 = vld [vmem:[#allocation15 + $0xed8] sm:$0xff]  ;;  %v2344_v2 = vld [vmem:[#allocation15 + $0xf30] sm:$0xff] }
 0x38e   :  { %2674 = vmatpush1.msra.mxu1 %v2238_v3  ;;  %2740 = vmatprep.subr.mxu0 %v2409_v4  ;;  %v2329_v3 = vld [vmem:[#allocation15 + $0xeb8] sm:$0xff]  ;;  %v2343_v4 = vld [vmem:[#allocation15 + $0xf28] sm:$0xff] }
 0x38f   :  { %2675 = vmatprep.subr.mxu1 %v2234_v5  ;;  %2741 = vmatpush1.msra.mxu0 %v2408_v6  ;;  %v2328_v5 = vld [vmem:[#allocation15 + $0xeb0] sm:$0xff]  ;;  %v2339_v6 = vld [vmem:[#allocation15 + $0xf08] sm:$0xff] }
 0x390   :  { %2676 = vmatpush1.msra.mxu1 %v2233_v8  ;;  %2742 = vmatprep.subr.mxu0 %v2404_v9  ;;  %v2324_v8 = vld [vmem:[#allocation15 + $0xe90] sm:$0xff]  ;;  %v2338_v9 = vld [vmem:[#allocation15 + $0xf00] sm:$0xff] }
 0x391   :  { %2677 = vmatprep.subr.mxu1 %v2229_v10  ;;  %2743 = vmatpush1.msra.mxu0 %v2403_v11  ;;  %v2323_v10 = vld [vmem:[#allocation15 + $0xe88] sm:$0xff]  ;;  %v2494_v11 = vld [vmem:[#allocation15 + $0x13e0] sm:$0xff] }
 0x392   :  { %2678 = vmatpush1.msra.mxu1 %v2228_v12  ;;  %2744 = vmatprep.subr.mxu0 %v2399_v14  ;;  %v2319_v12 = vld [vmem:[#allocation15 + $0xe68] sm:$0xff]  ;;  %v2493_v14 = vld [vmem:[#allocation15 + $0x13d8] sm:$0xff] }
 0x393   :  { %2679 = vmatprep.subr.mxu1 %v2224_v15  ;;  %2745 = vmatpush1.msra.mxu0 %v2398_v16  ;;  %v2318_v15 = vld [vmem:[#allocation15 + $0xe60] sm:$0xff]  ;;  %v2489_v16 = vld [vmem:[#allocation15 + $0x13b8] sm:$0xff] }
 0x394   :  { %2680 = vmatpush1.msra.mxu1 %v2223_v17  ;;  %2746 = vmatprep.subr.mxu0 %v2394_v18  ;;  %v2314_v17 = vld [vmem:[#allocation15 + $0xe40] sm:$0xff]  ;;  %v2488_v18 = vld [vmem:[#allocation15 + $0x13b0] sm:$0xff] }
 0x395   :  { %2681 = vmatprep.subr.mxu1 %v2219_v44  ;;  %2747 = vmatpush1.msra.mxu0 %v2393_v21  ;;  %v2313_v44 = vld [vmem:[#allocation15 + $0xe38] sm:$0xff]  ;;  %v2484_v21 = vld [vmem:[#allocation15 + $0x1390] sm:$0xff] }
 0x396   :  { %2682 = vmatpush1.msra.mxu1 %v2218_v22  ;;  %2748 = vmatprep.subr.mxu0 %v2389_v23  ;;  %v2309_v22 = vld [vmem:[#allocation15 + $0xe18] sm:$0xff]  ;;  %v2483_v23 = vld [vmem:[#allocation15 + $0x1388] sm:$0xff] }
 0x397   :  { %2683 = vmatprep.subr.mxu1 %v2214_v24  ;;  %2749 = vmatpush1.msra.mxu0 %v2388_v25  ;;  %v2308_v24 = vld [vmem:[#allocation15 + $0xe10] sm:$0xff]  ;;  %v2479_v25 = vld [vmem:[#allocation15 + $0x1368] sm:$0xff] }
 0x398   :  { %2684 = vmatpush1.msra.mxu1 %v2213_v26  ;;  %2750 = vmatprep.subr.mxu0 %v2384_v27  ;;  %v2304_v26 = vld [vmem:[#allocation15 + $0xdf0] sm:$0xff]  ;;  %v2478_v27 = vld [vmem:[#allocation15 + $0x1360] sm:$0xff] }
 0x399   :  { %2685 = vmatprep.subr.mxu1 %v2209_v30  ;;  %2751 = vmatpush1.msra.mxu0 %v2383_v31  ;;  %v2303_v30 = vld [vmem:[#allocation15 + $0xde8] sm:$0xff]  ;;  %v2474_v31 = vld [vmem:[#allocation15 + $0x1340] sm:$0xff] }
 0x39a   :  { %2686 = vmatpush1.msra.mxu1 %v2208_v13  ;;  %2752 = vmatprep.subr.mxu0 %v2379_v42  ;;  %v2299_v13 = vld [vmem:[#allocation15 + $0xdc8] sm:$0xff]  ;;  %v2473_v42 = vld [vmem:[#allocation15 + $0x1338] sm:$0xff] }
 0x39b   :  { %2687 = vmatprep.subr.mxu1 %v2204_v32  ;;  %2753 = vmatpush1.msra.mxu0 %v2378_v33  ;;  %v2298_v32 = vld [vmem:[#allocation15 + $0xdc0] sm:$0xff]  ;;  %v2469_v33 = vld [vmem:[#allocation15 + $0x1318] sm:$0xff] }
 0x39c   :  { %2688 = vmatpush1.msra.mxu1 %v2203_v34  ;;  %2754 = vmatprep.subr.mxu0 %v2374_v35  ;;  %v2294_v34 = vld [vmem:[#allocation15 + $0xda0] sm:$0xff]  ;;  %v2468_v35 = vld [vmem:[#allocation15 + $0x1310] sm:$0xff] }
 0x39d   :  { %2689 = vmatprep.subr.mxu1 %v2199_v45  ;;  %2755 = vmatpush1.msra.mxu0 %v2373_v36  ;;  %v2293_v45 = vld [vmem:[#allocation15 + $0xd98] sm:$0xff]  ;;  %v2464_v36 = vld [vmem:[#allocation15 + $0x12f0] sm:$0xff] }
 0x39e   :  { %2690 = vmatpush1.msra.mxu1 %v2198_v37  ;;  %2756 = vmatprep.subr.mxu0 %v2369_v38  ;;  %v2289_v37 = vld [vmem:[#allocation15 + $0xd78] sm:$0xff]  ;;  %v2463_v38 = vld [vmem:[#allocation15 + $0x12e8] sm:$0xff] }
 0x39f   :  { %2691 = vmatprep.subr.mxu1 %v2194_v39  ;;  %2757 = vmatpush1.msra.mxu0 %v2368_v40  ;;  %v2288_v39 = vld [vmem:[#allocation15 + $0xd70] sm:$0xff]  ;;  %v2459_v40 = vld [vmem:[#allocation15 + $0x12c8] sm:$0xff] }
 0x3a0   :  { %2692 = vmatpush1.msra.mxu1 %v2193_v20  ;;  %2758 = vmatprep.subr.mxu0 %v2364_v41  ;;  %v2284_v20 = vld [vmem:[#allocation15 + $0xd50] sm:$0xff]  ;;  %v2458_v41 = vld [vmem:[#allocation15 + $0x12c0] sm:$0xff] }
 0x3a1   :  { %2693 = vmatprep.subr.mxu1 %v2189_v46  ;;  %2759 = vmatpush1.msra.mxu0 %v2363_v7  ;;  %v2283_v46 = vld [vmem:[#allocation15 + $0xd48] sm:$0xff]  ;;  %v2454_v7 = vld [vmem:[#allocation15 + $0x12a0] sm:$0xff] }
 0x3a2   :  { %2694 = vmatpush1.msra.mxu1 %v2188_v48  ;;  %2760 = vmatprep.subr.mxu0 %v2359_v49  ;;  %v2279_v48 = vld [vmem:[#allocation15 + $0xd28] sm:$0xff]  ;;  %v2453_v49 = vld [vmem:[#allocation15 + $0x1298] sm:$0xff] }
 0x3a3   :  { %2695 = vmatprep.subr.mxu1 %v2184_v50  ;;  %2761 = vmatpush1.msra.mxu0 %v2358_v51  ;;  %v2278_v50 = vld [vmem:[#allocation15 + $0xd20] sm:$0xff]  ;;  %v2449_v51 = vld [vmem:[#allocation15 + $0x1278] sm:$0xff] }
 0x3a4   :  { %2696 = vmatpush1.msra.mxu1 %v2183_v52  ;;  %2762 = vmatprep.subr.mxu0 %v2354_v53  ;;  %v1238_v52 = vsub.s32 4, %v4685_v28  ;;  %v2274_v53 = vld [vmem:[#allocation15 + $0xd00] sm:$0xff] }
 0x3a5   :  { %2697 = vmatprep.subr.mxu1 %v2179_v54  ;;  %2763 = vmatpush1.msra.mxu0 %v2353_v55  ;;  %v2448_v54 = vld [vmem:[#allocation15 + $0x1270] sm:$0xff]  ;;  %v2273_v55 = vld [vmem:[#allocation15 + $0xcf8] sm:$0xff] }
 0x3a6   :  { %2698 = vmatpush1.msra.mxu1 %v2178_v56  ;;  %2764 = vmatprep.subr.mxu0 %v2349_v57  ;;  %v2444_v56 = vld [vmem:[#allocation15 + $0x1250] sm:$0xff]  ;;  %v1242_v57 = vsub.s32 5, %v4685_v28 }
 0x3a7   :  { %2699 = vmatprep.subr.mxu1 %v2334_v58  ;;  %2765 = vmatpush1.msra.mxu0 %v2348_v60  ;;  %v2269_v58 = vld [vmem:[#allocation15 + $0xcd8] sm:$0xff]  ;;  %v2443_v60 = vld [vmem:[#allocation15 + $0x1248] sm:$0xff] }
 0x3a8   :  { %2700 = vmatpush2.msra.mxu1 %v2333_v62  ;;  %2766 = vmatprep.subr.mxu0 %v2344_v2  ;;  %v2268_v62 = vld [vmem:[#allocation15 + $0xcd0] sm:$0xff]  ;;  %v2439_v2 = vld [vmem:[#allocation15 + $0x1228] sm:$0xff] }
 0x3a9   :  { %2701 = vmatprep.subr.mxu1 %v2329_v3  ;;  %2767 = vmatpush1.msra.mxu0 %v2343_v4  ;;  %v4754_v3 = vld [vmem:[#allocation13] sm:$0xff] }
 0x3aa   :  { %2702 = vmatpush2.msra.mxu1 %v2328_v5  ;;  %2768 = vmatprep.subr.mxu0 %v2339_v6  ;;  %v1239_v4 = vrot.slane %v4754_v3, %v1238_v52  ;;  %v2264_v5 = vld [vmem:[#allocation15 + $0xcb0] sm:$0xff]  ;;  %v2438_v6 = vld [vmem:[#allocation15 + $0x1220] sm:$0xff] }
 0x3ab   :  { %2703 = vmatprep.subr.mxu1 %v2324_v8  ;;  %2769 = vmatpush1.msra.mxu0 %v2338_v9  ;;  %v2263_v8 = vld [vmem:[#allocation15 + $0xca8] sm:$0xff]  ;;  %v2434_v9 = vld [vmem:[#allocation15 + $0x1200] sm:$0xff] }
 0x3ac   :  { %2704 = vmatpush2.msra.mxu1 %v2323_v10  ;;  %2770 = vmatprep.subr.mxu0 %v2494_v11  ;;  %v1243_v10 = vrot.slane %v4754_v3, %v1242_v57  ;;  %v2259_v11 = vld [vmem:[#allocation15 + $0xc88] sm:$0xff]  ;;  %v1885_v57 = vld [vmem:[#allocation15 + $0xd8] sm:$0xff] }
 0x3ad   :  { %2705 = vmatprep.subr.mxu1 %v2319_v12  ;;  %2771 = vmatpush2.msra.mxu0 %v2493_v14  ;;  %v2433_v12 = vld [vmem:[#allocation15 + $0x11f8] sm:$0xff] }
 0x3ae   :  { %2706 = vmatpush2.msra.mxu1 %v2318_v15  ;;  %2772 = vmatprep.subr.mxu0 %v2489_v16  ;;  %v2258_v15 = vld [vmem:[#allocation15 + $0xc80] sm:$0xff]  ;;  %v2429_v16 = vld [vmem:[#allocation15 + $0x11d8] sm:$0xff] }
 0x3af   :  { %2707 = vmatprep.subr.mxu1 %v2314_v17  ;;  %2773 = vmatpush2.msra.mxu0 %v2488_v18  ;;  %v1936_v18 = vld [vmem:[#allocation15 + $0x270] sm:$0xff] }
 0x3b0   :  { %2708 = vmatpush2.msra.mxu1 %v2313_v44  ;;  %2774 = vmatprep.subr.mxu0 %v2484_v21  ;;  %v2428_v44 = vld [vmem:[#allocation15 + $0x11d0] sm:$0xff] }
 0x3b1   :  { %2709 = vmatprep.subr.mxu1 %v2309_v22  ;;  %2775 = vmatpush2.msra.mxu0 %v2483_v23  ;;  %v2424_v22 = vld [vmem:[#allocation15 + $0x11b0] sm:$0xff] }
 0x3b2   :  { %2710 = vmatpush2.msra.mxu1 %v2308_v24  ;;  %2776 = vmatprep.subr.mxu0 %v2479_v25  ;;  %v2423_v25 = vld [vmem:[#allocation15 + $0x11a8] sm:$0xff] }
 0x3b3   :  { %2711 = vmatprep.subr.mxu1 %v2304_v26  ;;  %2777 = vmatpush2.msra.mxu0 %v2478_v27  ;;  %v2419_v26 = vld [vmem:[#allocation15 + $0x1188] sm:$0xff] }
 0x3b4   :  { %2712 = vmatpush2.msra.mxu1 %v2303_v30  ;;  %2778 = vmatprep.subr.mxu0 %v2474_v31  ;;  %v2418_v31 = vld [vmem:[#allocation15 + $0x1180] sm:$0xff] }
 0x3b5   :  { %2713 = vmatprep.subr.mxu1 %v2299_v13  ;;  %2779 = vmatpush2.msra.mxu0 %v2473_v42  ;;  %v2096_v42 = vld [vmem:[#allocation15 + $0x770] sm:$0xff] }
 0x3b6   :  { %2714 = vmatpush2.msra.mxu1 %v2298_v32  ;;  %2780 = vmatprep.subr.mxu0 %v2469_v33 }
 0x3b7   :  { %2715 = vmatprep.subr.mxu1 %v2294_v34  ;;  %2781 = vmatpush2.msra.mxu0 %v2468_v35  ;;  %v1935_v34 = vld [vmem:[#allocation15 + $0x268] sm:$0xff] }
 0x3b8   :  { %2716 = vmatpush2.msra.mxu1 %v2293_v45  ;;  %2782 = vmatprep.subr.mxu0 %v2464_v36  ;;  %v1931_v35 = vld [vmem:[#allocation15 + $0x248] sm:$0xff]  ;;  %v1930_v45 = vld [vmem:[#allocation15 + $0x240] sm:$0xff] }
 0x3b9   :  { %2717 = vmatprep.subr.mxu1 %v2289_v37  ;;  %2783 = vmatpush2.msra.mxu0 %v2463_v38  ;;  %v1926_v36 = vld [vmem:[#allocation15 + $0x220] sm:$0xff]  ;;  %v1925_v37 = vld [vmem:[#allocation15 + $0x218] sm:$0xff] }
 0x3ba   :  { %2718 = vmatpush2.msra.mxu1 %v2288_v39  ;;  %2784 = vmatprep.subr.mxu0 %v2459_v40  ;;  %v1921_v38 = vld [vmem:[#allocation15 + $0x1f8] sm:$0xff]  ;;  %v1920_v39 = vld [vmem:[#allocation15 + $0x1f0] sm:$0xff] }
 0x3bb   :  { %2719 = vmatprep.subr.mxu1 %v2284_v20  ;;  %2785 = vmatpush2.msra.mxu0 %v2458_v41  ;;  %v1916_v40 = vld [vmem:[#allocation15 + $0x1d0] sm:$0xff]  ;;  %v1915_v20 = vld [vmem:[#allocation15 + $0x1c8] sm:$0xff] }
 0x3bc   :  { %2720 = vmatpush2.msra.mxu1 %v2283_v46  ;;  %2786 = vmatprep.subr.mxu0 %v2454_v7  ;;  %v1911_v41 = vld [vmem:[#allocation15 + $0x1a8] sm:$0xff]  ;;  %v1910_v46 = vld [vmem:[#allocation15 + $0x1a0] sm:$0xff] }
 0x3bd   :  { %2721 = vmatprep.subr.mxu1 %v2279_v48  ;;  %2787 = vmatpush2.msra.mxu0 %v2453_v49  ;;  %v1906_v7 = vld [vmem:[#allocation15 + $0x180] sm:$0xff]  ;;  %v1905_v48 = vld [vmem:[#allocation15 + $0x178] sm:$0xff] }
 0x3be   :  { %2722 = vmatpush2.msra.mxu1 %v2278_v50  ;;  %2788 = vmatprep.subr.mxu0 %v2449_v51  ;;  %v1901_v49 = vld [vmem:[#allocation15 + $0x158] sm:$0xff]  ;;  %v1900_v50 = vld [vmem:[#allocation15 + $0x150] sm:$0xff] }
 0x3bf   :  { %2723 = vmatprep.subr.mxu1 %v2274_v53  ;;  %2789 = vmatpush2.msra.mxu0 %v2448_v54  ;;  %v1896_v51 = vld [vmem:[#allocation15 + $0x130] sm:$0xff]  ;;  %v1895_v53 = vld [vmem:[#allocation15 + $0x128] sm:$0xff] }
 0x3c0   :  { %2724 = vmatpush2.msra.mxu1 %v2273_v55  ;;  %2790 = vmatprep.subr.mxu0 %v2444_v56  ;;  %v1891_v54 = vld [vmem:[#allocation15 + $0x108] sm:$0xff]  ;;  %v1890_v55 = vld [vmem:[#allocation15 + $0x100] sm:$0xff] }
 0x3c1   :  { %2725 = vmatprep.subr.mxu1 %v2269_v58  ;;  %2791 = vmatpush2.msra.mxu0 %v2443_v60  ;;  %v1886_v56 = vld [vmem:[#allocation15 + $0xe0] sm:$0xff]  ;;  %v1881_v58 = vld [vmem:[#allocation15 + $0xb8] sm:$0xff]  ;;  %v1880_v60 = vld [vmem:[#allocation15 + $0xb0] sm:$0xff] }
 0x3c2   :  { %2726 = vmatpush2.msra.mxu1 %v2268_v62  ;;  %2792 = vmatprep.subr.mxu0 %v2439_v2  ;;  %v1876_v62 = vld [vmem:[#allocation15 + $0x90] sm:$0xff]  ;;  %v1875_v2 = vld [vmem:[#allocation15 + $0x88] sm:$0xff] }
 0x3c3   :  { %v1632_v14 = vpop.f32.mrf.mxu1  ;;  %2727 = vmatprep.subr.mxu1 %v2264_v5  ;;  %2793 = vmatpush2.msra.mxu0 %v2438_v6  ;;  %v1870_v5 = vld [vmem:[#allocation15 + $0x60] sm:$0xff] }
 0x3c4   :  { %v1633_v17 = vadd.f32 %v1632_v14, %v1239_v4  ;;  %2728 = vmatpush2.msra.mxu1 %v2263_v8  ;;  %2794 = vmatprep.subr.mxu0 %v2434_v9  ;;  %v1871_v4 = vld [vmem:[#allocation15 + $0x68] sm:$0xff]  ;;  %v1866_v6 = vld [vmem:[#allocation15 + $0x40] sm:$0xff]  ;;  %v1865_v8 = vld [vmem:[#allocation15 + $0x38] sm:$0xff] }
 0x3c5   :  { %v1634_v21 = vpop.f32.mrf.mxu1  ;;  %2729 = vmatprep.subr.mxu1 %v2259_v11  ;;  %2795 = vmatpush2.msra.mxu0 %v2433_v12  ;;  %v1861_v9 = vld [vmem:[#allocation15 + $0x18] sm:$0xff]  ;;  %v2016_v11 = vld [vmem:[#allocation15 + $0x4f0] sm:$0xff]  ;;  %v2015_v12 = vld [vmem:[#allocation15 + $0x4e8] sm:$0xff] }
 0x3c6   :  { %v1635_v23 = vadd.f32 %v1634_v21, %v1243_v10  ;;  %v1703_v24 = vpop.f32.mrf.mxu0  ;;  %2730 = vmatpush2.msra.mxu1 %v2258_v15  ;;  %2796 = vmatprep.subr.mxu0 %v2429_v16  ;;  %v1860_v10 = vld [vmem:[#allocation15 + $0x10] sm:$0xff]  ;;  %v2011_v14 = vld [vmem:[#allocation15 + $0x4c8] sm:$0xff]  ;;  %v2010_v15 = vld [vmem:[#allocation15 + $0x4c0] sm:$0xff] }
 0x3c7   :  { %2809 = vmatprep.subr.mxu1 %v1936_v18  ;;  %2797 = vmatpush2.msra.mxu0 %v2428_v44  ;;  %v1704_v27 = vadd.f32 %v1703_v24, %v1633_v17  ;;  %v2006_v16 = vld [vmem:[#allocation15 + $0x4a0] sm:$0xff]  ;;  %v2005_v17 = vld [vmem:[#allocation15 + $0x498] sm:$0xff]  ;;  %v2000_v44 = vld [vmem:[#allocation15 + $0x470] sm:$0xff] }
 0x3c8   :  { %v1705_v30 = vpop.f32.mrf.mxu0  ;;  %2798 = vmatprep.subr.mxu0 %v2424_v22  ;;  %v2001_v18 = vld [vmem:[#allocation15 + $0x478] sm:$0xff]  ;;  %v1996_v21 = vld [vmem:[#allocation15 + $0x450] sm:$0xff]  ;;  %v1995_v22 = vld [vmem:[#allocation15 + $0x448] sm:$0xff] }
 0x3c9   :  { %v1706_v13 = vadd.f32 %v1705_v30, %v1635_v23  ;;  %2799 = vmatpush2.msra.mxu0 %v2423_v25  ;;  %v4762_v33 = vmax.f32 %v1704_v27, 0.0  ;;  %v1991_v23 = vld [vmem:[#allocation15 + $0x428] sm:$0xff]  ;;  %v1990_v24 = vld [vmem:[#allocation15 + $0x420] sm:$0xff]  ;;  %v1981_v27 = vld [vmem:[#allocation15 + $0x3d8] sm:$0xff] }
 0x3ca   :  { %2800 = vmatprep.subr.mxu0 %v2419_v26  ;;  %v1986_v25 = vld [vmem:[#allocation15 + $0x400] sm:$0xff]  ;;  %v1985_v26 = vld [vmem:[#allocation15 + $0x3f8] sm:$0xff]  ;;  %v1980_v30 = vld [vmem:[#allocation15 + $0x3d0] sm:$0xff] }
 0x3cb   :  { %v4760_v32 = vmax.f32 %v1706_v13, 0.0  ;;  %2801 = vmatpush2.msra.mxu0 %v2418_v31  ;;  %v1976_v31 = vld [vmem:[#allocation15 + $0x3b0] sm:$0xff]  ;;  %v1975_v13 = vld [vmem:[#allocation15 + $0x3a8] sm:$0xff] }
 0x3cc   :  { %2880 = vmatprep.subr.mxu0 %v2096_v42  ;;  %v1971_v42 = vld [vmem:[#allocation15 + $0x388] sm:$0xff] }
 0x3cd   :  { %2731 = vmatprep.mubr.f32.mxu1 %v4760_v32 }
 0x3ce   :  { %2732 = vmatmul.mubr.f32.vlgmr.msra.gmra.mxu1 %v4762_v33 }
 0x3cf   :  { %2810 = vmatpush1.msra.mxu1 %v1935_v34  ;;  %2873 = vmatprep.mubr.f32.mxu1 %v4726_v29  ;;  %v1970_v34 = vld [vmem:[#allocation15 + $0x380] sm:$0xff] }
 0x3d0   :  { %2811 = vmatprep.subr.mxu1 %v1931_v35  ;;  %v1246_v35 = vsub.s32 6, %v4685_v28 }
 0x3d1   :  { %2812 = vmatpush1.msra.mxu1 %v1930_v45  ;;  %v1966_v45 = vld [vmem:[#allocation15 + $0x360] sm:$0xff] }
 0x3d2   :  { %2813 = vmatprep.subr.mxu1 %v1926_v36  ;;  %v1965_v36 = vld [vmem:[#allocation15 + $0x358] sm:$0xff] }
 0x3d3   :  { %2814 = vmatpush1.msra.mxu1 %v1925_v37  ;;  %v1250_v37 = vsub.s32 7, %v4685_v28 }
 0x3d4   :  { %2815 = vmatprep.subr.mxu1 %v1921_v38  ;;  %v1961_v38 = vld [vmem:[#allocation15 + $0x338] sm:$0xff] }
 0x3d5   :  { %2816 = vmatpush1.msra.mxu1 %v1920_v39  ;;  %v1247_v39 = vrot.slane %v4754_v3, %v1246_v35  ;;  %v2065_v35 = vld [vmem:[#allocation15 + $0x678] sm:$0xff] }
 0x3d6   :  { %2817 = vmatprep.subr.mxu1 %v1916_v40  ;;  %v1960_v40 = vld [vmem:[#allocation15 + $0x330] sm:$0xff] }
 0x3d7   :  { %2818 = vmatpush1.msra.mxu1 %v1915_v20  ;;  %v1956_v20 = vld [vmem:[#allocation15 + $0x310] sm:$0xff] }
 0x3d8   :  { %2819 = vmatprep.subr.mxu1 %v1911_v41  ;;  %v1251_v41 = vrot.slane %v4754_v3, %v1250_v37  ;;  %v1940_v3 = vld [vmem:[#allocation15 + $0x290] sm:$0xff]  ;;  %v2221_v37 = vld [vmem:[#allocation15 + $0xb58] sm:$0xff] }
 0x3d9   :  { %2820 = vmatpush1.msra.mxu1 %v1910_v46  ;;  %v1955_v46 = vld [vmem:[#allocation15 + $0x308] sm:$0xff] }
 0x3da   :  { %2821 = vmatprep.subr.mxu1 %v1906_v7 }
 0x3db   :  { %2822 = vmatpush1.msra.mxu1 %v1905_v48  ;;  %v1951_v48 = vld [vmem:[#allocation15 + $0x2e8] sm:$0xff] }
 0x3dc   :  { %2823 = vmatprep.subr.mxu1 %v1901_v49 }
 0x3dd   :  { %2824 = vmatpush1.msra.mxu1 %v1900_v50  ;;  %v1950_v50 = vld [vmem:[#allocation15 + $0x2e0] sm:$0xff] }
 0x3de   :  { %2825 = vmatprep.subr.mxu1 %v1896_v51 }
 0x3df   :  { %2826 = vmatpush1.msra.mxu1 %v1895_v53 }
 0x3e0   :  { %2827 = vmatprep.subr.mxu1 %v1891_v54  ;;  %v1946_v54 = vld [vmem:[#allocation15 + $0x2c0] sm:$0xff] }
 0x3e1   :  { %2828 = vmatpush1.msra.mxu1 %v1890_v55 }
 0x3e2   :  { %2829 = vmatprep.subr.mxu1 %v1886_v56  ;;  %v1945_v56 = vld [vmem:[#allocation15 + $0x2b8] sm:$0xff] }
 0x3e3   :  { %2830 = vmatpush1.msra.mxu1 %v1885_v57 }
 0x3e4   :  { %2831 = vmatprep.subr.mxu1 %v1881_v58 }
 0x3e5   :  { %2832 = vmatpush1.msra.mxu1 %v1880_v60  ;;  %v1941_v60 = vld [vmem:[#allocation15 + $0x298] sm:$0xff] }
 0x3e6   :  { %2833 = vmatprep.subr.mxu1 %v1876_v62 }
 0x3e7   :  { %2834 = vmatpush1.msra.mxu1 %v1875_v2 }
 0x3e8   :  { %2835 = vmatprep.subr.mxu1 %v1871_v4  ;;  %v2256_v4 = vld [vmem:[#allocation15 + $0xc70] sm:$0xff] }
 0x3e9   :  { %2836 = vmatpush1.msra.mxu1 %v1870_v5 }
 0x3ea   :  { %2837 = vmatprep.subr.mxu1 %v1866_v6  ;;  %v2095_v6 = vld [vmem:[#allocation15 + $0x768] sm:$0xff] }
 0x3eb   :  { %2838 = vmatpush1.msra.mxu1 %v1865_v8  ;;  %v2255_v8 = vld [vmem:[#allocation15 + $0xc68] sm:$0xff] }
 0x3ec   :  { %2839 = vmatprep.subr.mxu1 %v1861_v9  ;;  %v2091_v9 = vld [vmem:[#allocation15 + $0x748] sm:$0xff] }
 0x3ed   :  { %2840 = vmatpush1.msra.mxu1 %v1860_v10  ;;  %v2251_v10 = vld [vmem:[#allocation15 + $0xc48] sm:$0xff] }
 0x3ee   :  { %2841 = vmatprep.subr.mxu1 %v2016_v11  ;;  %v2090_v11 = vld [vmem:[#allocation15 + $0x740] sm:$0xff] }
 0x3ef   :  { %2842 = vmatpush2.msra.mxu1 %v2015_v12  ;;  %v2250_v12 = vld [vmem:[#allocation15 + $0xc40] sm:$0xff] }
 0x3f0   :  { %2843 = vmatprep.subr.mxu1 %v2011_v14  ;;  %v2086_v14 = vld [vmem:[#allocation15 + $0x720] sm:$0xff] }
 0x3f1   :  { %2844 = vmatpush2.msra.mxu1 %v2010_v15  ;;  %v2246_v15 = vld [vmem:[#allocation15 + $0xc20] sm:$0xff] }
 0x3f2   :  { %2845 = vmatprep.subr.mxu1 %v2006_v16  ;;  %v2085_v16 = vld [vmem:[#allocation15 + $0x718] sm:$0xff] }
 0x3f3   :  { %2846 = vmatpush2.msra.mxu1 %v2005_v17  ;;  %v2245_v17 = vld [vmem:[#allocation15 + $0xc18] sm:$0xff] }
 0x3f4   :  { %2847 = vmatprep.subr.mxu1 %v2001_v18  ;;  %v2081_v18 = vld [vmem:[#allocation15 + $0x6f8] sm:$0xff] }
 0x3f5   :  { %2848 = vmatpush2.msra.mxu1 %v2000_v44  ;;  %v2241_v44 = vld [vmem:[#allocation15 + $0xbf8] sm:$0xff] }
 0x3f6   :  { %2849 = vmatprep.subr.mxu1 %v1996_v21  ;;  %v2080_v21 = vld [vmem:[#allocation15 + $0x6f0] sm:$0xff] }
 0x3f7   :  { %2850 = vmatpush2.msra.mxu1 %v1995_v22  ;;  %v2240_v22 = vld [vmem:[#allocation15 + $0xbf0] sm:$0xff] }
 0x3f8   :  { %2851 = vmatprep.subr.mxu1 %v1991_v23  ;;  %v2076_v23 = vld [vmem:[#allocation15 + $0x6d0] sm:$0xff] }
 0x3f9   :  { %2852 = vmatpush2.msra.mxu1 %v1990_v24  ;;  %v2236_v24 = vld [vmem:[#allocation15 + $0xbd0] sm:$0xff] }
 0x3fa   :  { %2853 = vmatprep.subr.mxu1 %v1986_v25  ;;  %v2075_v25 = vld [vmem:[#allocation15 + $0x6c8] sm:$0xff] }
 0x3fb   :  { %2854 = vmatpush2.msra.mxu1 %v1985_v26  ;;  %v2235_v26 = vld [vmem:[#allocation15 + $0xbc8] sm:$0xff] }
 0x3fc   :  { %2855 = vmatprep.subr.mxu1 %v1981_v27  ;;  %v2071_v27 = vld [vmem:[#allocation15 + $0x6a8] sm:$0xff] }
 0x3fd   :  { %2856 = vmatpush2.msra.mxu1 %v1980_v30  ;;  %v2231_v30 = vld [vmem:[#allocation15 + $0xba8] sm:$0xff] }
 0x3fe   :  { %2857 = vmatprep.subr.mxu1 %v1976_v31  ;;  %v2070_v31 = vld [vmem:[#allocation15 + $0x6a0] sm:$0xff] }
 0x3ff   :  { %2858 = vmatpush2.msra.mxu1 %v1975_v13  ;;  %v2230_v13 = vld [vmem:[#allocation15 + $0xba0] sm:$0xff] }
 0x400   :  { %2859 = vmatprep.subr.mxu1 %v1971_v42  ;;  %v2066_v42 = vld [vmem:[#allocation15 + $0x680] sm:$0xff] }
 0x401   :  { %2860 = vmatpush2.msra.mxu1 %v1970_v34  ;;  %v2226_v34 = vld [vmem:[#allocation15 + $0xb80] sm:$0xff] }
 0x402   :  { %2861 = vmatprep.subr.mxu1 %v1966_v45  ;;  %v2225_v45 = vld [vmem:[#allocation15 + $0xb78] sm:$0xff] }
 0x403   :  { %2862 = vmatpush2.msra.mxu1 %v1965_v36  ;;  %v2061_v36 = vld [vmem:[#allocation15 + $0x658] sm:$0xff] }
 0x404   :  { %2863 = vmatprep.subr.mxu1 %v1961_v38  ;;  %v2060_v38 = vld [vmem:[#allocation15 + $0x650] sm:$0xff] }
 0x405   :  { %v1774_v7 = vpop.f32.mrf.mxu1  ;;  %2864 = vmatpush2.msra.mxu1 %v1960_v40  ;;  %v2056_v40 = vld [vmem:[#allocation15 + $0x630] sm:$0xff] }
 0x406   :  { %v1775_v49 = vadd.f32 %v1774_v7, %v1247_v39  ;;  %2865 = vmatprep.subr.mxu1 %v1956_v20  ;;  %v2220_v39 = vld [vmem:[#allocation15 + $0xb50] sm:$0xff]  ;;  %v2051_v7 = vld [vmem:[#allocation15 + $0x608] sm:$0xff] }
 0x407   :  { %v1776_v51 = vpop.f32.mrf.mxu1  ;;  %v1845_v53 = vpop.f32.mrf.mxu0  ;;  %2866 = vmatpush2.msra.mxu1 %v1955_v46  ;;  %v2216_v20 = vld [vmem:[#allocation15 + $0xb30] sm:$0xff]  ;;  %v2215_v46 = vld [vmem:[#allocation15 + $0xb28] sm:$0xff] }
 0x408   :  { %v1777_v55 = vadd.f32 %v1776_v51, %v1251_v41  ;;  %2867 = vmatprep.subr.mxu1 %v1951_v48  ;;  %v1846_v57 = vadd.f32 %v1845_v53, %v1775_v49  ;;  %v2055_v41 = vld [vmem:[#allocation15 + $0x628] sm:$0xff]  ;;  %v2050_v49 = vld [vmem:[#allocation15 + $0x600] sm:$0xff] }
 0x409   :  { %v1847_v58 = vpop.f32.mrf.mxu0  ;;  %2868 = vmatpush2.msra.mxu1 %v1950_v50  ;;  %v2211_v48 = vld [vmem:[#allocation15 + $0xb08] sm:$0xff]  ;;  %v2210_v50 = vld [vmem:[#allocation15 + $0xb00] sm:$0xff] }
 0x40a   :  { %v1848_v62 = vadd.f32 %v1847_v58, %v1777_v55  ;;  %2869 = vmatprep.subr.mxu1 %v1946_v54  ;;  %v4773_v5 = vmax.f32 %v1846_v57, 0.0  ;;  %v2046_v51 = vld [vmem:[#allocation15 + $0x5e0] sm:$0xff]  ;;  %v2045_v54 = vld [vmem:[#allocation15 + $0x5d8] sm:$0xff]  ;;  %v2040_v58 = vld [vmem:[#allocation15 + $0x5b0] sm:$0xff] }
 0x40b   :  { %2870 = vmatpush2.msra.mxu1 %v1945_v56  ;;  %v2206_v53 = vld [vmem:[#allocation15 + $0xae0] sm:$0xff]  ;;  %v2205_v55 = vld [vmem:[#allocation15 + $0xad8] sm:$0xff] }
 0x40c   :  { %v4771_v2 = vmax.f32 %v1848_v62, 0.0  ;;  %2871 = vmatprep.subr.mxu1 %v1941_v60  ;;  %v2041_v56 = vld [vmem:[#allocation15 + $0x5b8] sm:$0xff]  ;;  %v2200_v60 = vld [vmem:[#allocation15 + $0xab0] sm:$0xff] }
 0x40d   :  { %2872 = vmatpush2.msra.mxu1 %v1940_v3  ;;  %v2201_v57 = vld [vmem:[#allocation15 + $0xab8] sm:$0xff]  ;;  %v2036_v62 = vld [vmem:[#allocation15 + $0x590] sm:$0xff] }
 0x40e   :  { %2802 = vmatprep.mubr.f32.mxu0 %v4771_v2  ;;  %2874 = vmatmul.mubr.f32.vlgmr.msra.gmra.mxu1 %v4743_v43  ;;  %v2196_v3 = vld [vmem:[#allocation15 + $0xa90] sm:$0xff] }
 0x40f   :  { %2951 = vmatprep.subr.mxu1 %v2256_v4  ;;  %2803 = vmatmul.mubr.f32.vlgmr.msra.gmra.mxu0 %v4773_v5  ;;  %v2035_v4 = vld [vmem:[#allocation15 + $0x588] sm:$0xff] }
 0x410   :  { %2881 = vmatpush1.msra.mxu0 %v2095_v6  ;;  %2952 = vmatpush1.msra.mxu1 %v2255_v8  ;;  %v2195_v6 = vld [vmem:[#allocation15 + $0xa88] sm:$0xff] }
 0x411   :  { %3015 = vmatprep.mubr.f32.mxu1 %v4760_v32  ;;  %2882 = vmatprep.subr.mxu0 %v2091_v9  ;;  %v2031_v8 = vld [vmem:[#allocation15 + $0x568] sm:$0xff] }
 0x412   :  { %2944 = vmatprep.mubr.f32.mxu0 %v4746_v59  ;;  %2953 = vmatprep.subr.mxu1 %v2251_v10  ;;  %v2191_v9 = vld [vmem:[#allocation15 + $0xa68] sm:$0xff]  ;;  %v2030_v10 = vld [vmem:[#allocation15 + $0x560] sm:$0xff] }
 0x413   :  { %2883 = vmatpush1.msra.mxu0 %v2090_v11  ;;  %2954 = vmatpush1.msra.mxu1 %v2250_v12  ;;  %v2190_v11 = vld [vmem:[#allocation15 + $0xa60] sm:$0xff] }
 0x414   :  { %2884 = vmatprep.subr.mxu0 %v2086_v14  ;;  %2955 = vmatprep.subr.mxu1 %v2246_v15  ;;  %v2026_v12 = vld [vmem:[#allocation15 + $0x540] sm:$0xff]  ;;  %v2025_v15 = vld [vmem:[#allocation15 + $0x538] sm:$0xff] }
 0x415   :  { %2885 = vmatpush1.msra.mxu0 %v2085_v16  ;;  %2956 = vmatpush1.msra.mxu1 %v2245_v17  ;;  %v2186_v14 = vld [vmem:[#allocation15 + $0xa40] sm:$0xff]  ;;  %v2185_v16 = vld [vmem:[#allocation15 + $0xa38] sm:$0xff] }
 0x416   :  { %2886 = vmatprep.subr.mxu0 %v2081_v18  ;;  %2957 = vmatprep.subr.mxu1 %v2241_v44  ;;  %v2021_v17 = vld [vmem:[#allocation15 + $0x518] sm:$0xff]  ;;  %v2020_v44 = vld [vmem:[#allocation15 + $0x510] sm:$0xff] }
 0x417   :  { %2887 = vmatpush1.msra.mxu0 %v2080_v21  ;;  %2958 = vmatpush1.msra.mxu1 %v2240_v22  ;;  %v2181_v18 = vld [vmem:[#allocation15 + $0xa18] sm:$0xff]  ;;  %v2180_v21 = vld [vmem:[#allocation15 + $0xa10] sm:$0xff] }
 0x418   :  { %2888 = vmatprep.subr.mxu0 %v2076_v23  ;;  %2959 = vmatprep.subr.mxu1 %v2236_v24  ;;  %v2176_v22 = vld [vmem:[#allocation15 + $0x9f0] sm:$0xff]  ;;  %v2175_v24 = vld [vmem:[#allocation15 + $0x9e8] sm:$0xff] }
 0x419   :  { %2889 = vmatpush1.msra.mxu0 %v2075_v25  ;;  %2960 = vmatpush1.msra.mxu1 %v2235_v26  ;;  %v2336_v23 = vld [vmem:[#allocation15 + $0xef0] sm:$0xff]  ;;  %v2335_v25 = vld [vmem:[#allocation15 + $0xee8] sm:$0xff] }
 0x41a   :  { %2890 = vmatprep.subr.mxu0 %v2071_v27  ;;  %2961 = vmatprep.subr.mxu1 %v2231_v30  ;;  %v2171_v26 = vld [vmem:[#allocation15 + $0x9c8] sm:$0xff]  ;;  %v2170_v30 = vld [vmem:[#allocation15 + $0x9c0] sm:$0xff] }
 0x41b   :  { %2891 = vmatpush1.msra.mxu0 %v2070_v31  ;;  %2962 = vmatpush1.msra.mxu1 %v2230_v13  ;;  %v2331_v27 = vld [vmem:[#allocation15 + $0xec8] sm:$0xff]  ;;  %v2330_v31 = vld [vmem:[#allocation15 + $0xec0] sm:$0xff] }
 0x41c   :  { %2892 = vmatprep.subr.mxu0 %v2066_v42  ;;  %2963 = vmatprep.subr.mxu1 %v2226_v34  ;;  %v2166_v13 = vld [vmem:[#allocation15 + $0x9a0] sm:$0xff]  ;;  %v2165_v34 = vld [vmem:[#allocation15 + $0x998] sm:$0xff] }
 0x41d   :  { %2893 = vmatpush1.msra.mxu0 %v2065_v35  ;;  %2964 = vmatpush1.msra.mxu1 %v2225_v45  ;;  %v2326_v42 = vld [vmem:[#allocation15 + $0xea0] sm:$0xff]  ;;  %v2325_v35 = vld [vmem:[#allocation15 + $0xe98] sm:$0xff] }
 0x41e   :  { %2894 = vmatprep.subr.mxu0 %v2061_v36  ;;  %2965 = vmatprep.subr.mxu1 %v2221_v37  ;;  %v2161_v45 = vld [vmem:[#allocation15 + $0x978] sm:$0xff]  ;;  %v2160_v37 = vld [vmem:[#allocation15 + $0x970] sm:$0xff] }
 0x41f   :  { %2895 = vmatpush1.msra.mxu0 %v2060_v38  ;;  %2966 = vmatpush1.msra.mxu1 %v2220_v39  ;;  %v2321_v36 = vld [vmem:[#allocation15 + $0xe78] sm:$0xff]  ;;  %v2320_v38 = vld [vmem:[#allocation15 + $0xe70] sm:$0xff] }
 0x420   :  { %2896 = vmatprep.subr.mxu0 %v2056_v40  ;;  %2967 = vmatprep.subr.mxu1 %v2216_v20  ;;  %v2156_v39 = vld [vmem:[#allocation15 + $0x950] sm:$0xff]  ;;  %v2155_v20 = vld [vmem:[#allocation15 + $0x948] sm:$0xff] }
 0x421   :  { %2897 = vmatpush1.msra.mxu0 %v2055_v41  ;;  %2968 = vmatpush1.msra.mxu1 %v2215_v46  ;;  %v2316_v40 = vld [vmem:[#allocation15 + $0xe50] sm:$0xff]  ;;  %v2315_v41 = vld [vmem:[#allocation15 + $0xe48] sm:$0xff] }
 0x422   :  { %2898 = vmatprep.subr.mxu0 %v2051_v7  ;;  %2969 = vmatprep.subr.mxu1 %v2211_v48  ;;  %v2151_v46 = vld [vmem:[#allocation15 + $0x928] sm:$0xff]  ;;  %v2150_v48 = vld [vmem:[#allocation15 + $0x920] sm:$0xff] }
 0x423   :  { %2899 = vmatpush1.msra.mxu0 %v2050_v49  ;;  %2970 = vmatpush1.msra.mxu1 %v2210_v50  ;;  %v2311_v7 = vld [vmem:[#allocation15 + $0xe28] sm:$0xff]  ;;  %v2310_v49 = vld [vmem:[#allocation15 + $0xe20] sm:$0xff] }
 0x424   :  { %2900 = vmatprep.subr.mxu0 %v2046_v51  ;;  %2971 = vmatprep.subr.mxu1 %v2206_v53  ;;  %v2146_v50 = vld [vmem:[#allocation15 + $0x900] sm:$0xff]  ;;  %v2145_v53 = vld [vmem:[#allocation15 + $0x8f8] sm:$0xff] }
 0x425   :  { %2901 = vmatpush1.msra.mxu0 %v2045_v54  ;;  %2972 = vmatpush1.msra.mxu1 %v2205_v55  ;;  %v2306_v51 = vld [vmem:[#allocation15 + $0xe00] sm:$0xff]  ;;  %v2305_v54 = vld [vmem:[#allocation15 + $0xdf8] sm:$0xff] }
 0x426   :  { %2902 = vmatprep.subr.mxu0 %v2041_v56  ;;  %2973 = vmatprep.subr.mxu1 %v2201_v57  ;;  %v2141_v55 = vld [vmem:[#allocation15 + $0x8d8] sm:$0xff]  ;;  %v2140_v57 = vld [vmem:[#allocation15 + $0x8d0] sm:$0xff] }
 0x427   :  { %2903 = vmatpush1.msra.mxu0 %v2040_v58  ;;  %2974 = vmatpush1.msra.mxu1 %v2200_v60  ;;  %v2301_v56 = vld [vmem:[#allocation15 + $0xdd8] sm:$0xff]  ;;  %v2300_v58 = vld [vmem:[#allocation15 + $0xdd0] sm:$0xff] }
 0x428   :  { %2904 = vmatprep.subr.mxu0 %v2036_v62  ;;  %2975 = vmatprep.subr.mxu1 %v2196_v3  ;;  %v2136_v60 = vld [vmem:[#allocation15 + $0x8b0] sm:$0xff]  ;;  %v2135_v3 = vld [vmem:[#allocation15 + $0x8a8] sm:$0xff] }
 0x429   :  { %2905 = vmatpush1.msra.mxu0 %v2035_v4  ;;  %2976 = vmatpush1.msra.mxu1 %v2195_v6  ;;  %v2296_v62 = vld [vmem:[#allocation15 + $0xdb0] sm:$0xff]  ;;  %v2295_v4 = vld [vmem:[#allocation15 + $0xda8] sm:$0xff] }
 0x42a   :  { %2906 = vmatprep.subr.mxu0 %v2031_v8  ;;  %2977 = vmatprep.subr.mxu1 %v2191_v9  ;;  %v2131_v6 = vld [vmem:[#allocation15 + $0x888] sm:$0xff]  ;;  %v2130_v9 = vld [vmem:[#allocation15 + $0x880] sm:$0xff] }
 0x42b   :  { %2907 = vmatpush1.msra.mxu0 %v2030_v10  ;;  %2978 = vmatpush1.msra.mxu1 %v2190_v11  ;;  %v2291_v8 = vld [vmem:[#allocation15 + $0xd88] sm:$0xff]  ;;  %v2290_v10 = vld [vmem:[#allocation15 + $0xd80] sm:$0xff] }
 0x42c   :  { %2908 = vmatprep.subr.mxu0 %v2026_v12  ;;  %2979 = vmatprep.subr.mxu1 %v2186_v14  ;;  %v2126_v11 = vld [vmem:[#allocation15 + $0x860] sm:$0xff]  ;;  %v2125_v14 = vld [vmem:[#allocation15 + $0x858] sm:$0xff] }
 0x42d   :  { %2909 = vmatpush1.msra.mxu0 %v2025_v15  ;;  %2980 = vmatpush1.msra.mxu1 %v2185_v16  ;;  %v2286_v12 = vld [vmem:[#allocation15 + $0xd60] sm:$0xff]  ;;  %v2285_v15 = vld [vmem:[#allocation15 + $0xd58] sm:$0xff] }
 0x42e   :  { %2910 = vmatprep.subr.mxu0 %v2021_v17  ;;  %2981 = vmatprep.subr.mxu1 %v2181_v18  ;;  %v2121_v16 = vld [vmem:[#allocation15 + $0x838] sm:$0xff]  ;;  %v2120_v18 = vld [vmem:[#allocation15 + $0x830] sm:$0xff] }
 0x42f   :  { %2911 = vmatpush1.msra.mxu0 %v2020_v44  ;;  %2982 = vmatpush1.msra.mxu1 %v2180_v21  ;;  %v2281_v17 = vld [vmem:[#allocation15 + $0xd38] sm:$0xff]  ;;  %v2280_v44 = vld [vmem:[#allocation15 + $0xd30] sm:$0xff] }
 0x430   :  { %2912 = vmatprep.subr.mxu0 %v2176_v22  ;;  %2983 = vmatprep.subr.mxu1 %v2336_v23  ;;  %v2116_v21 = vld [vmem:[#allocation15 + $0x810] sm:$0xff]  ;;  %v2115_v23 = vld [vmem:[#allocation15 + $0x808] sm:$0xff] }
 0x431   :  { %2913 = vmatpush2.msra.mxu0 %v2175_v24  ;;  %2984 = vmatpush2.msra.mxu1 %v2335_v25  ;;  %v2276_v22 = vld [vmem:[#allocation15 + $0xd10] sm:$0xff]  ;;  %v2275_v24 = vld [vmem:[#allocation15 + $0xd08] sm:$0xff] }
 0x432   :  { %2914 = vmatprep.subr.mxu0 %v2171_v26  ;;  %2985 = vmatprep.subr.mxu1 %v2331_v27  ;;  %v2111_v25 = vld [vmem:[#allocation15 + $0x7e8] sm:$0xff]  ;;  %v2110_v27 = vld [vmem:[#allocation15 + $0x7e0] sm:$0xff] }
 0x433   :  { %2915 = vmatpush2.msra.mxu0 %v2170_v30  ;;  %2986 = vmatpush2.msra.mxu1 %v2330_v31  ;;  %v2271_v26 = vld [vmem:[#allocation15 + $0xce8] sm:$0xff]  ;;  %v2270_v30 = vld [vmem:[#allocation15 + $0xce0] sm:$0xff] }
 0x434   :  { %2916 = vmatprep.subr.mxu0 %v2166_v13  ;;  %2987 = vmatprep.subr.mxu1 %v2326_v42  ;;  %v2106_v31 = vld [vmem:[#allocation15 + $0x7c0] sm:$0xff]  ;;  %v2105_v42 = vld [vmem:[#allocation15 + $0x7b8] sm:$0xff] }
 0x435   :  { %2917 = vmatpush2.msra.mxu0 %v2165_v34  ;;  %2988 = vmatpush2.msra.mxu1 %v2325_v35  ;;  %v2266_v13 = vld [vmem:[#allocation15 + $0xcc0] sm:$0xff]  ;;  %v2265_v34 = vld [vmem:[#allocation15 + $0xcb8] sm:$0xff] }
 0x436   :  { %2918 = vmatprep.subr.mxu0 %v2161_v45  ;;  %2989 = vmatprep.subr.mxu1 %v2321_v36  ;;  %v2101_v35 = vld [vmem:[#allocation15 + $0x798] sm:$0xff]  ;;  %v2100_v36 = vld [vmem:[#allocation15 + $0x790] sm:$0xff] }
 0x437   :  { %2919 = vmatpush2.msra.mxu0 %v2160_v37  ;;  %2990 = vmatpush2.msra.mxu1 %v2320_v38  ;;  %v2261_v45 = vld [vmem:[#allocation15 + $0xc98] sm:$0xff]  ;;  %v2260_v37 = vld [vmem:[#allocation15 + $0xc90] sm:$0xff] }
 0x438   :  { %2920 = vmatprep.subr.mxu0 %v2156_v39  ;;  %2991 = vmatprep.subr.mxu1 %v2316_v40  ;;  %v2416_v38 = vld [vmem:[#allocation15 + $0x1170] sm:$0xff]  ;;  %v2017_v39 = vld [vmem:[#allocation15 + $0x4f8] sm:$0xff]  ;;  %v2415_v40 = vld [vmem:[#allocation15 + $0x1168] sm:$0xff] }
 0x439   :  { %2921 = vmatpush2.msra.mxu0 %v2155_v20  ;;  %2992 = vmatpush2.msra.mxu1 %v2315_v41  ;;  %v1937_v20 = vld [vmem:[#allocation15 + $0x278] sm:$0xff]  ;;  %v2411_v41 = vld [vmem:[#allocation15 + $0x1148] sm:$0xff] }
 0x43a   :  { %2922 = vmatprep.subr.mxu0 %v2151_v46  ;;  %2993 = vmatprep.subr.mxu1 %v2311_v7  ;;  %v2012_v46 = vld [vmem:[#allocation15 + $0x4d0] sm:$0xff]  ;;  %v2410_v7 = vld [vmem:[#allocation15 + $0x1140] sm:$0xff] }
 0x43b   :  { %2923 = vmatpush2.msra.mxu0 %v2150_v48  ;;  %2994 = vmatpush2.msra.mxu1 %v2310_v49  ;;  %v1932_v48 = vld [vmem:[#allocation15 + $0x250] sm:$0xff]  ;;  %v2406_v49 = vld [vmem:[#allocation15 + $0x1120] sm:$0xff] }
 0x43c   :  { %2924 = vmatprep.subr.mxu0 %v2146_v50  ;;  %2995 = vmatprep.subr.mxu1 %v2306_v51  ;;  %v2007_v50 = vld [vmem:[#allocation15 + $0x4a8] sm:$0xff]  ;;  %v2405_v51 = vld [vmem:[#allocation15 + $0x1118] sm:$0xff] }
 0x43d   :  { %2925 = vmatpush2.msra.mxu0 %v2145_v53  ;;  %2996 = vmatpush2.msra.mxu1 %v2305_v54  ;;  %v1927_v53 = vld [vmem:[#allocation15 + $0x228] sm:$0xff]  ;;  %v2401_v54 = vld [vmem:[#allocation15 + $0x10f8] sm:$0xff] }
 0x43e   :  { %2926 = vmatprep.subr.mxu0 %v2141_v55  ;;  %2997 = vmatprep.subr.mxu1 %v2301_v56  ;;  %v2002_v55 = vld [vmem:[#allocation15 + $0x480] sm:$0xff]  ;;  %v2400_v56 = vld [vmem:[#allocation15 + $0x10f0] sm:$0xff] }
 0x43f   :  { %2927 = vmatpush2.msra.mxu0 %v2140_v57  ;;  %2998 = vmatpush2.msra.mxu1 %v2300_v58  ;;  %v1922_v57 = vld [vmem:[#allocation15 + $0x200] sm:$0xff]  ;;  %v2396_v58 = vld [vmem:[#allocation15 + $0x10d0] sm:$0xff] }
 0x440   :  { %2928 = vmatprep.subr.mxu0 %v2136_v60  ;;  %2999 = vmatprep.subr.mxu1 %v2296_v62  ;;  %v1997_v60 = vld [vmem:[#allocation15 + $0x458] sm:$0xff] }
 0x441   :  { %2929 = vmatpush2.msra.mxu0 %v2135_v3  ;;  %3000 = vmatpush2.msra.mxu1 %v2295_v4  ;;  %v1917_v62 = vld [vmem:[#allocation15 + $0x1d8] sm:$0xff]  ;;  %v2391_v3 = vld [vmem:[#allocation15 + $0x10a8] sm:$0xff]  ;;  %v1992_v4 = vld [vmem:[#allocation15 + $0x430] sm:$0xff] }
 0x442   :  { %2930 = vmatprep.subr.mxu0 %v2131_v6  ;;  %3001 = vmatprep.subr.mxu1 %v2291_v8  ;;  %v2390_v6 = vld [vmem:[#allocation15 + $0x10a0] sm:$0xff]  ;;  %v1912_v8 = vld [vmem:[#allocation15 + $0x1b0] sm:$0xff] }
 0x443   :  { %2931 = vmatpush2.msra.mxu0 %v2130_v9  ;;  %3002 = vmatpush2.msra.mxu1 %v2290_v10  ;;  %v2386_v9 = vld [vmem:[#allocation15 + $0x1080] sm:$0xff]  ;;  %v1987_v10 = vld [vmem:[#allocation15 + $0x408] sm:$0xff] }
 0x444   :  { %2932 = vmatprep.subr.mxu0 %v2126_v11  ;;  %3003 = vmatprep.subr.mxu1 %v2286_v12  ;;  %v2385_v11 = vld [vmem:[#allocation15 + $0x1078] sm:$0xff]  ;;  %v1907_v12 = vld [vmem:[#allocation15 + $0x188] sm:$0xff] }
 0x445   :  { %2933 = vmatpush2.msra.mxu0 %v2125_v14  ;;  %3004 = vmatpush2.msra.mxu1 %v2285_v15  ;;  %v2381_v14 = vld [vmem:[#allocation15 + $0x1058] sm:$0xff]  ;;  %v1982_v15 = vld [vmem:[#allocation15 + $0x3e0] sm:$0xff] }
 0x446   :  { %2934 = vmatprep.subr.mxu0 %v2121_v16  ;;  %3005 = vmatprep.subr.mxu1 %v2281_v17  ;;  %v2380_v16 = vld [vmem:[#allocation15 + $0x1050] sm:$0xff]  ;;  %v1902_v17 = vld [vmem:[#allocation15 + $0x160] sm:$0xff] }
 0x447   :  { %2935 = vmatpush2.msra.mxu0 %v2120_v18  ;;  %3006 = vmatpush2.msra.mxu1 %v2280_v44  ;;  %v2376_v18 = vld [vmem:[#allocation15 + $0x1030] sm:$0xff]  ;;  %v1977_v44 = vld [vmem:[#allocation15 + $0x3b8] sm:$0xff] }
 0x448   :  { %2936 = vmatprep.subr.mxu0 %v2116_v21  ;;  %3007 = vmatprep.subr.mxu1 %v2276_v22  ;;  %v2375_v21 = vld [vmem:[#allocation15 + $0x1028] sm:$0xff]  ;;  %v1897_v22 = vld [vmem:[#allocation15 + $0x138] sm:$0xff] }
 0x449   :  { %2937 = vmatpush2.msra.mxu0 %v2115_v23  ;;  %3008 = vmatpush2.msra.mxu1 %v2275_v24  ;;  %v2371_v23 = vld [vmem:[#allocation15 + $0x1008] sm:$0xff]  ;;  %v1972_v24 = vld [vmem:[#allocation15 + $0x390] sm:$0xff] }
 0x44a   :  { %2938 = vmatprep.subr.mxu0 %v2111_v25  ;;  %3009 = vmatprep.subr.mxu1 %v2271_v26  ;;  %v2370_v25 = vld [vmem:[#allocation15 + $0x1000] sm:$0xff]  ;;  %v1892_v26 = vld [vmem:[#allocation15 + $0x110] sm:$0xff] }
 0x44b   :  { %2939 = vmatpush2.msra.mxu0 %v2110_v27  ;;  %3010 = vmatpush2.msra.mxu1 %v2270_v30  ;;  %v2366_v27 = vld [vmem:[#allocation15 + $0xfe0] sm:$0xff]  ;;  %v1967_v30 = vld [vmem:[#allocation15 + $0x368] sm:$0xff] }
 0x44c   :  { %2940 = vmatprep.subr.mxu0 %v2106_v31  ;;  %3011 = vmatprep.subr.mxu1 %v2266_v13  ;;  %v2365_v31 = vld [vmem:[#allocation15 + $0xfd8] sm:$0xff]  ;;  %v1887_v13 = vld [vmem:[#allocation15 + $0xe8] sm:$0xff] }
 0x44d   :  { %2941 = vmatpush2.msra.mxu0 %v2105_v42  ;;  %3012 = vmatpush2.msra.mxu1 %v2265_v34  ;;  %v2361_v42 = vld [vmem:[#allocation15 + $0xfb8] sm:$0xff]  ;;  %v1962_v34 = vld [vmem:[#allocation15 + $0x340] sm:$0xff] }
 0x44e   :  { %2942 = vmatprep.subr.mxu0 %v2101_v35  ;;  %3013 = vmatprep.subr.mxu1 %v2261_v45  ;;  %v2360_v35 = vld [vmem:[#allocation15 + $0xfb0] sm:$0xff]  ;;  %v1882_v45 = vld [vmem:[#allocation15 + $0xc0] sm:$0xff] }
 0x44f   :  { %2943 = vmatpush2.msra.mxu0 %v2100_v36  ;;  %3014 = vmatpush2.msra.mxu1 %v2260_v37  ;;  %v2356_v36 = vld [vmem:[#allocation15 + $0xf90] sm:$0xff]  ;;  %v1957_v37 = vld [vmem:[#allocation15 + $0x318] sm:$0xff] }
 0x450   :  { %2945 = vmatmul.mubr.f32.vlgmr.msra.gmra.mxu0 %v4748_v61  ;;  %3016 = vmatmul.mubr.f32.vlgmr.msra.gmra.mxu1 %v4762_v33 }
 0x451   :  { %3022 = vmatprep.subr.mxu0 %v2416_v38  ;;  %3815 = vmatprep.subr.mxu1 %v2017_v39  ;;  %v2355_v38 = vld [vmem:[#allocation15 + $0xf88] sm:$0xff]  ;;  %v1877_v39 = vld [vmem:[#allocation15 + $0x98] sm:$0xff] }
 0x452   :  { %3023 = vmatpush1.msra.mxu0 %v2415_v40  ;;  %3086 = vmatprep.mubr.f32.mxu0 %v4771_v2  ;;  %v2351_v40 = vld [vmem:[#allocation15 + $0xf68] sm:$0xff] }
 0x453   :  { %3816 = vmatpush3.msra.mxu1 %v1937_v20  ;;  %3157 = vmatprep.mubr.f32.mxu1 %v4726_v29  ;;  %v2395_v29 = vld [vmem:[#allocation15 + $0x10c8] sm:$0xff]  ;;  %v1952_v20 = vld [vmem:[#allocation15 + $0x2f0] sm:$0xff] }
 0x454   :  { %3024 = vmatprep.subr.mxu0 %v2411_v41  ;;  %3817 = vmatprep.subr.mxu1 %v2012_v46  ;;  %v2350_v41 = vld [vmem:[#allocation15 + $0xf60] sm:$0xff]  ;;  %v1872_v46 = vld [vmem:[#allocation15 + $0x70] sm:$0xff] }
 0x455   :  { %3025 = vmatpush1.msra.mxu0 %v2410_v7  ;;  %3818 = vmatpush3.msra.mxu1 %v1932_v48  ;;  %v2346_v7 = vld [vmem:[#allocation15 + $0xf40] sm:$0xff]  ;;  %v1947_v48 = vld [vmem:[#allocation15 + $0x2c8] sm:$0xff] }
 0x456   :  { %3026 = vmatprep.subr.mxu0 %v2406_v49  ;;  %3819 = vmatprep.subr.mxu1 %v2007_v50  ;;  %v2345_v49 = vld [vmem:[#allocation15 + $0xf38] sm:$0xff]  ;;  %v1867_v50 = vld [vmem:[#allocation15 + $0x48] sm:$0xff] }
 0x457   :  { %3027 = vmatpush1.msra.mxu0 %v2405_v51  ;;  %3820 = vmatpush3.msra.mxu1 %v1927_v53  ;;  %v2341_v51 = vld [vmem:[#allocation15 + $0xf18] sm:$0xff]  ;;  %v1942_v53 = vld [vmem:[#allocation15 + $0x2a0] sm:$0xff] }
 0x458   :  { %3028 = vmatprep.subr.mxu0 %v2401_v54  ;;  %3821 = vmatprep.subr.mxu1 %v2002_v55  ;;  %v2340_v54 = vld [vmem:[#allocation15 + $0xf10] sm:$0xff]  ;;  %v1862_v55 = vld [vmem:[#allocation15 + $0x20] sm:$0xff] }
 0x459   :  { %3029 = vmatpush1.msra.mxu0 %v2400_v56  ;;  %3822 = vmatpush3.msra.mxu1 %v1922_v57  ;;  %v2496_v56 = vld [vmem:[#allocation15 + $0x13f0] sm:$0xff]  ;;  %v2337_v57 = vld [vmem:[#allocation15 + $0xef8] sm:$0xff] }
 0x45a   :  { %3030 = vmatprep.subr.mxu0 %v2396_v58  ;;  %3823 = vmatprep.subr.mxu1 %v1997_v60  ;;  %v2495_v58 = vld [vmem:[#allocation15 + $0x13e8] sm:$0xff]  ;;  %v2257_v60 = vld [vmem:[#allocation15 + $0xc78] sm:$0xff] }
 0x45b   :  { %3031 = vmatpush1.msra.mxu0 %v2395_v29  ;;  %3824 = vmatpush3.msra.mxu1 %v1917_v62  ;;  %v2491_v29 = vld [vmem:[#allocation15 + $0x13c8] sm:$0xff]  ;;  %v2332_v62 = vld [vmem:[#allocation15 + $0xed0] sm:$0xff] }
 0x45c   :  { %3032 = vmatprep.subr.mxu0 %v2391_v3  ;;  %3825 = vmatprep.subr.mxu1 %v1992_v4  ;;  %v2490_v3 = vld [vmem:[#allocation15 + $0x13c0] sm:$0xff]  ;;  %v2252_v4 = vld [vmem:[#allocation15 + $0xc50] sm:$0xff] }
 0x45d   :  { %3033 = vmatpush1.msra.mxu0 %v2390_v6  ;;  %3826 = vmatpush3.msra.mxu1 %v1912_v8  ;;  %v2486_v6 = vld [vmem:[#allocation15 + $0x13a0] sm:$0xff]  ;;  %v2327_v8 = vld [vmem:[#allocation15 + $0xea8] sm:$0xff] }
 0x45e   :  { %3034 = vmatprep.subr.mxu0 %v2386_v9  ;;  %3827 = vmatprep.subr.mxu1 %v1987_v10  ;;  %v2485_v9 = vld [vmem:[#allocation15 + $0x1398] sm:$0xff]  ;;  %v2247_v10 = vld [vmem:[#allocation15 + $0xc28] sm:$0xff] }
 0x45f   :  { %3035 = vmatpush1.msra.mxu0 %v2385_v11  ;;  %3828 = vmatpush3.msra.mxu1 %v1907_v12  ;;  %v2481_v11 = vld [vmem:[#allocation15 + $0x1378] sm:$0xff]  ;;  %v2322_v12 = vld [vmem:[#allocation15 + $0xe80] sm:$0xff] }
 0x460   :  { %3036 = vmatprep.subr.mxu0 %v2381_v14  ;;  %3829 = vmatprep.subr.mxu1 %v1982_v15  ;;  %v2242_v14 = vld [vmem:[#allocation15 + $0xc00] sm:$0xff]  ;;  %v2476_v15 = vld [vmem:[#allocation15 + $0x1350] sm:$0xff] }
 0x461   :  { %3037 = vmatpush1.msra.mxu0 %v2380_v16  ;;  %3830 = vmatpush3.msra.mxu1 %v1902_v17  ;;  %v2317_v16 = vld [vmem:[#allocation15 + $0xe58] sm:$0xff] }
 0x462   :  { %3038 = vmatprep.subr.mxu0 %v2376_v18  ;;  %3831 = vmatprep.subr.mxu1 %v1977_v44  ;;  %v2237_v17 = vld [vmem:[#allocation15 + $0xbd8] sm:$0xff]  ;;  %v2471_v18 = vld [vmem:[#allocation15 + $0x1328] sm:$0xff]  ;;  %v2312_v44 = vld [vmem:[#allocation15 + $0xe30] sm:$0xff] }
 0x463   :  { %3039 = vmatpush1.msra.mxu0 %v2375_v21  ;;  %3832 = vmatpush3.msra.mxu1 %v1897_v22  ;;  %v2470_v21 = vld [vmem:[#allocation15 + $0x1320] sm:$0xff]  ;;  %v2232_v22 = vld [vmem:[#allocation15 + $0xbb0] sm:$0xff] }
 0x464   :  { %3040 = vmatprep.subr.mxu0 %v2371_v23  ;;  %3833 = vmatprep.subr.mxu1 %v1972_v24  ;;  %v2466_v23 = vld [vmem:[#allocation15 + $0x1300] sm:$0xff]  ;;  %v2307_v24 = vld [vmem:[#allocation15 + $0xe08] sm:$0xff] }
 0x465   :  { %3041 = vmatpush1.msra.mxu0 %v2370_v25  ;;  %3834 = vmatpush3.msra.mxu1 %v1892_v26  ;;  %v2465_v25 = vld [vmem:[#allocation15 + $0x12f8] sm:$0xff]  ;;  %v2227_v26 = vld [vmem:[#allocation15 + $0xb88] sm:$0xff] }
 0x466   :  { %3042 = vmatprep.subr.mxu0 %v2366_v27  ;;  %3835 = vmatprep.subr.mxu1 %v1967_v30  ;;  %v2461_v27 = vld [vmem:[#allocation15 + $0x12d8] sm:$0xff]  ;;  %v2302_v30 = vld [vmem:[#allocation15 + $0xde0] sm:$0xff] }
 0x467   :  { %3043 = vmatpush1.msra.mxu0 %v2365_v31  ;;  %3836 = vmatpush3.msra.mxu1 %v1887_v13  ;;  %v2460_v31 = vld [vmem:[#allocation15 + $0x12d0] sm:$0xff]  ;;  %v2222_v13 = vld [vmem:[#allocation15 + $0xb60] sm:$0xff] }
 0x468   :  { %3044 = vmatprep.subr.mxu0 %v2361_v42  ;;  %3837 = vmatprep.subr.mxu1 %v1962_v34  ;;  %v2456_v42 = vld [vmem:[#allocation15 + $0x12b0] sm:$0xff]  ;;  %v2297_v34 = vld [vmem:[#allocation15 + $0xdb8] sm:$0xff] }
 0x469   :  { %3045 = vmatpush1.msra.mxu0 %v2360_v35  ;;  %3838 = vmatpush3.msra.mxu1 %v1882_v45  ;;  %v2455_v35 = vld [vmem:[#allocation15 + $0x12a8] sm:$0xff]  ;;  %v2217_v45 = vld [vmem:[#allocation15 + $0xb38] sm:$0xff] }
 0x46a   :  { %3046 = vmatprep.subr.mxu0 %v2356_v36  ;;  %3839 = vmatprep.subr.mxu1 %v1957_v37  ;;  %v2451_v36 = vld [vmem:[#allocation15 + $0x1288] sm:$0xff]  ;;  %v2292_v37 = vld [vmem:[#allocation15 + $0xd90] sm:$0xff] }
 0x46b   :  { %3047 = vmatpush1.msra.mxu0 %v2355_v38  ;;  %3840 = vmatpush3.msra.mxu1 %v1877_v39  ;;  %v2450_v38 = vld [vmem:[#allocation15 + $0x1280] sm:$0xff]  ;;  %v2212_v39 = vld [vmem:[#allocation15 + $0xb10] sm:$0xff] }
 0x46c   :  { %3048 = vmatprep.subr.mxu0 %v2351_v40  ;;  %3841 = vmatprep.subr.mxu1 %v1952_v20  ;;  %v2446_v40 = vld [vmem:[#allocation15 + $0x1260] sm:$0xff]  ;;  %v2287_v20 = vld [vmem:[#allocation15 + $0xd68] sm:$0xff] }
 0x46d   :  { %3049 = vmatpush1.msra.mxu0 %v2350_v41  ;;  %3842 = vmatpush3.msra.mxu1 %v1872_v46  ;;  %v2445_v41 = vld [vmem:[#allocation15 + $0x1258] sm:$0xff]  ;;  %v2207_v46 = vld [vmem:[#allocation15 + $0xae8] sm:$0xff] }
 0x46e   :  { %3050 = vmatprep.subr.mxu0 %v2346_v7  ;;  %3843 = vmatprep.subr.mxu1 %v1947_v48  ;;  %v2441_v7 = vld [vmem:[#allocation15 + $0x1238] sm:$0xff]  ;;  %v2282_v48 = vld [vmem:[#allocation15 + $0xd40] sm:$0xff] }
 0x46f   :  { %3051 = vmatpush1.msra.mxu0 %v2345_v49  ;;  %3844 = vmatpush3.msra.mxu1 %v1867_v50  ;;  %v2440_v49 = vld [vmem:[#allocation15 + $0x1230] sm:$0xff]  ;;  %v2202_v50 = vld [vmem:[#allocation15 + $0xac0] sm:$0xff] }
 0x470   :  { %3052 = vmatprep.subr.mxu0 %v2341_v51  ;;  %3845 = vmatprep.subr.mxu1 %v1942_v53  ;;  %v2436_v51 = vld [vmem:[#allocation15 + $0x1210] sm:$0xff]  ;;  %v2277_v53 = vld [vmem:[#allocation15 + $0xd18] sm:$0xff] }
 0x471   :  { %3053 = vmatpush1.msra.mxu0 %v2340_v54  ;;  %3846 = vmatpush3.msra.mxu1 %v1862_v55  ;;  %v2435_v54 = vld [vmem:[#allocation15 + $0x1208] sm:$0xff]  ;;  %v2197_v55 = vld [vmem:[#allocation15 + $0xa98] sm:$0xff] }
 0x472   :  { %3054 = vmatprep.subr.mxu0 %v2496_v56  ;;  %3158 = vmatmul.mubr.f32.vlgmr.msra.gmra.mxu1 %v4743_v43  ;;  %v2480_v43 = vld [vmem:[#allocation15 + $0x1370] sm:$0xff]  ;;  %v2431_v56 = vld [vmem:[#allocation15 + $0x11e8] sm:$0xff] }
 0x473   :  { %3885 = vmatprep.subr.mxu1 %v2337_v57  ;;  %3055 = vmatpush2.msra.mxu0 %v2495_v58  ;;  %v2272_v57 = vld [vmem:[#allocation15 + $0xcf0] sm:$0xff]  ;;  %v2430_v58 = vld [vmem:[#allocation15 + $0x11e0] sm:$0xff] }
 0x474   :  { %3886 = vmatpush3.msra.mxu1 %v2257_v60  ;;  %3297 = vmatprep.mubr.f32.mxu1 %v4760_v32  ;;  %v2475_v32 = vld [vmem:[#allocation15 + $0x1348] sm:$0xff]  ;;  %v2192_v60 = vld [vmem:[#allocation15 + $0xa70] sm:$0xff] }
 0x475   :  { %3056 = vmatprep.subr.mxu0 %v2491_v29  ;;  %3887 = vmatprep.subr.mxu1 %v2332_v62  ;;  %v2426_v29 = vld [vmem:[#allocation15 + $0x11c0] sm:$0xff]  ;;  %v2267_v62 = vld [vmem:[#allocation15 + $0xcc8] sm:$0xff] }
 0x476   :  { %3057 = vmatpush2.msra.mxu0 %v2490_v3  ;;  %3888 = vmatpush3.msra.mxu1 %v2252_v4  ;;  %v2425_v3 = vld [vmem:[#allocation15 + $0x11b8] sm:$0xff]  ;;  %v2187_v4 = vld [vmem:[#allocation15 + $0xa48] sm:$0xff] }
 0x477   :  { %3058 = vmatprep.subr.mxu0 %v2486_v6  ;;  %3889 = vmatprep.subr.mxu1 %v2327_v8  ;;  %v2421_v6 = vld [vmem:[#allocation15 + $0x1198] sm:$0xff]  ;;  %v2262_v8 = vld [vmem:[#allocation15 + $0xca0] sm:$0xff] }
 0x478   :  { %3059 = vmatpush2.msra.mxu0 %v2485_v9  ;;  %3890 = vmatpush3.msra.mxu1 %v2247_v10  ;;  %v2420_v9 = vld [vmem:[#allocation15 + $0x1190] sm:$0xff]  ;;  %v2182_v10 = vld [vmem:[#allocation15 + $0xa20] sm:$0xff] }
 0x479   :  { %3060 = vmatprep.subr.mxu0 %v2481_v11  ;;  %3891 = vmatprep.subr.mxu1 %v2322_v12  ;;  %v2177_v11 = vld [vmem:[#allocation15 + $0x9f8] sm:$0xff] }
 0x47a   :  { %3061 = vmatpush2.msra.mxu0 %v2480_v43  ;;  %3892 = vmatpush3.msra.mxu1 %v2242_v14  ;;  %v2097_v12 = vld [vmem:[#allocation15 + $0x778] sm:$0xff]  ;;  %v2172_v43 = vld [vmem:[#allocation15 + $0x9d0] sm:$0xff] }
 0x47b   :  { %3062 = vmatprep.subr.mxu0 %v2476_v15  ;;  %3893 = vmatprep.subr.mxu1 %v2317_v16  ;;  %v2092_v14 = vld [vmem:[#allocation15 + $0x750] sm:$0xff]  ;;  %v2167_v15 = vld [vmem:[#allocation15 + $0x9a8] sm:$0xff] }
 0x47c   :  { %3063 = vmatpush2.msra.mxu0 %v2475_v32  ;;  %3894 = vmatpush3.msra.mxu1 %v2237_v17  ;;  %v2087_v16 = vld [vmem:[#allocation15 + $0x728] sm:$0xff]  ;;  %v2162_v32 = vld [vmem:[#allocation15 + $0x980] sm:$0xff] }
 0x47d   :  { %3064 = vmatprep.subr.mxu0 %v2471_v18  ;;  %3895 = vmatprep.subr.mxu1 %v2312_v44  ;;  %v2082_v17 = vld [vmem:[#allocation15 + $0x700] sm:$0xff]  ;;  %v2157_v18 = vld [vmem:[#allocation15 + $0x958] sm:$0xff] }
 0x47e   :  { %3065 = vmatpush2.msra.mxu0 %v2470_v21  ;;  %3896 = vmatpush3.msra.mxu1 %v2232_v22  ;;  %v2077_v44 = vld [vmem:[#allocation15 + $0x6d8] sm:$0xff]  ;;  %v2072_v21 = vld [vmem:[#allocation15 + $0x6b0] sm:$0xff]  ;;  %v2067_v22 = vld [vmem:[#allocation15 + $0x688] sm:$0xff] }
 0x47f   :  { %3066 = vmatprep.subr.mxu0 %v2466_v23  ;;  %3897 = vmatprep.subr.mxu1 %v2307_v24  ;;  %v2142_v23 = vld [vmem:[#allocation15 + $0x8e0] sm:$0xff] }
 0x480   :  { %3067 = vmatpush2.msra.mxu0 %v2465_v25  ;;  %3898 = vmatpush3.msra.mxu1 %v2227_v26  ;;  %v2062_v24 = vld [vmem:[#allocation15 + $0x660] sm:$0xff]  ;;  %v2137_v25 = vld [vmem:[#allocation15 + $0x8b8] sm:$0xff] }
 0x481   :  { %3068 = vmatprep.subr.mxu0 %v2461_v27  ;;  %3899 = vmatprep.subr.mxu1 %v2302_v30  ;;  %v2057_v26 = vld [vmem:[#allocation15 + $0x638] sm:$0xff]  ;;  %v2132_v27 = vld [vmem:[#allocation15 + $0x890] sm:$0xff] }
 0x482   :  { %3069 = vmatpush2.msra.mxu0 %v2460_v31  ;;  %3900 = vmatpush3.msra.mxu1 %v2222_v13  ;;  %v2052_v30 = vld [vmem:[#allocation15 + $0x610] sm:$0xff]  ;;  %v2127_v31 = vld [vmem:[#allocation15 + $0x868] sm:$0xff] }
 0x483   :  { %3070 = vmatprep.subr.mxu0 %v2456_v42  ;;  %3901 = vmatprep.subr.mxu1 %v2297_v34  ;;  %v2047_v13 = vld [vmem:[#allocation15 + $0x5e8] sm:$0xff]  ;;  %v2122_v42 = vld [vmem:[#allocation15 + $0x840] sm:$0xff] }
 0x484   :  { %3071 = vmatpush2.msra.mxu0 %v2455_v35  ;;  %3902 = vmatpush3.msra.mxu1 %v2217_v45  ;;  %v2042_v34 = vld [vmem:[#allocation15 + $0x5c0] sm:$0xff]  ;;  %v2117_v35 = vld [vmem:[#allocation15 + $0x818] sm:$0xff] }
 0x485   :  { %3072 = vmatprep.subr.mxu0 %v2451_v36  ;;  %3903 = vmatprep.subr.mxu1 %v2292_v37  ;;  %v2037_v45 = vld [vmem:[#allocation15 + $0x598] sm:$0xff]  ;;  %v2112_v36 = vld [vmem:[#allocation15 + $0x7f0] sm:$0xff] }
 0x486   :  { %3073 = vmatpush2.msra.mxu0 %v2450_v38  ;;  %3904 = vmatpush3.msra.mxu1 %v2212_v39  ;;  %v2032_v37 = vld [vmem:[#allocation15 + $0x570] sm:$0xff]  ;;  %v2107_v38 = vld [vmem:[#allocation15 + $0x7c8] sm:$0xff] }
 0x487   :  { %3074 = vmatprep.subr.mxu0 %v2446_v40  ;;  %3905 = vmatprep.subr.mxu1 %v2287_v20  ;;  %v2027_v39 = vld [vmem:[#allocation15 + $0x548] sm:$0xff]  ;;  %v2102_v40 = vld [vmem:[#allocation15 + $0x7a0] sm:$0xff] }
 0x488   :  { %3075 = vmatpush2.msra.mxu0 %v2445_v41  ;;  %3906 = vmatpush3.msra.mxu1 %v2207_v46  ;;  %v2022_v20 = vld [vmem:[#allocation15 + $0x520] sm:$0xff]  ;;  %v2497_v41 = vld [vmem:[#allocation15 + $0x13f8] sm:$0xff] }
 0x489   :  { %3076 = vmatprep.subr.mxu0 %v2441_v7  ;;  %3907 = vmatprep.subr.mxu1 %v2282_v48  ;;  %v2417_v46 = vld [vmem:[#allocation15 + $0x1178] sm:$0xff]  ;;  %v2492_v7 = vld [vmem:[#allocation15 + $0x13d0] sm:$0xff] }
 0x48a   :  { %3077 = vmatpush2.msra.mxu0 %v2440_v49  ;;  %3908 = vmatpush3.msra.mxu1 %v2202_v50  ;;  %v2412_v48 = vld [vmem:[#allocation15 + $0x1150] sm:$0xff]  ;;  %v2487_v49 = vld [vmem:[#allocation15 + $0x13a8] sm:$0xff] }
 0x48b   :  { %3078 = vmatprep.subr.mxu0 %v2436_v51  ;;  %3909 = vmatprep.subr.mxu1 %v2277_v53  ;;  %v2407_v50 = vld [vmem:[#allocation15 + $0x1128] sm:$0xff]  ;;  %v2482_v51 = vld [vmem:[#allocation15 + $0x1380] sm:$0xff] }
 0x48c   :  { %3079 = vmatpush2.msra.mxu0 %v2435_v54  ;;  %3910 = vmatpush3.msra.mxu1 %v2197_v55  ;;  %v2402_v53 = vld [vmem:[#allocation15 + $0x1100] sm:$0xff]  ;;  %v2477_v54 = vld [vmem:[#allocation15 + $0x1358] sm:$0xff] }
 0x48d   :  { %3080 = vmatprep.subr.mxu0 %v2431_v56  ;;  %3911 = vmatprep.subr.mxu1 %v2272_v57  ;;  %v2397_v55 = vld [vmem:[#allocation15 + $0x10d8] sm:$0xff]  ;;  %v2472_v56 = vld [vmem:[#allocation15 + $0x1330] sm:$0xff]  ;;  %v2467_v57 = vld [vmem:[#allocation15 + $0x1308] sm:$0xff] }
 0x48e   :  { %3081 = vmatpush2.msra.mxu0 %v2430_v58  ;;  %3912 = vmatpush3.msra.mxu1 %v2192_v60  ;;  %v2387_v58 = vld [vmem:[#allocation15 + $0x1088] sm:$0xff]  ;;  %v2382_v60 = vld [vmem:[#allocation15 + $0x1060] sm:$0xff] }
 0x48f   :  { %3082 = vmatprep.subr.mxu0 %v2426_v29  ;;  %3913 = vmatprep.subr.mxu1 %v2267_v62  ;;  %v2457_v29 = vld [vmem:[#allocation15 + $0x12b8] sm:$0xff] }
 0x490   :  { %3083 = vmatpush2.msra.mxu0 %v2425_v3  ;;  %3914 = vmatpush3.msra.mxu1 %v2187_v4  ;;  %v2377_v62 = vld [vmem:[#allocation15 + $0x1038] sm:$0xff]  ;;  %v2452_v3 = vld [vmem:[#allocation15 + $0x1290] sm:$0xff]  ;;  %v4794_v4 = vld [vmem:[#allocation16] sm:$0x1f] }
 0x491   :  { %3084 = vmatprep.subr.mxu0 %v2421_v6  ;;  %3915 = vmatprep.subr.mxu1 %v2262_v8  ;;  %v2372_v6 = vld [vmem:[#allocation15 + $0x1010] sm:$0xff]  ;;  %v2447_v8 = vld [vmem:[#allocation15 + $0x1268] sm:$0xff] }
 0x492   :  { %3085 = vmatpush2.msra.mxu0 %v2420_v9  ;;  %3916 = vmatpush3.msra.mxu1 %v2182_v10  ;;  %v2591_v9 = vpop.f32.mrf.mxu1  ;;  %v2367_v10 = vld [vmem:[#allocation15 + $0xfe8] sm:$0xff] }
 0x493   :  { %3087 = vmatmul.mubr.f32.vlgmr.msra.gmra.mxu0 %v4773_v5  ;;  %3850 = vmatprep.subr.mxu0 %v2177_v11  ;;  %v2503_v11 = vrot.slane %v4794_v4, %v1222_v1  ;;  %v2427_v1 = vld [vmem:[#allocation15 + $0x11c8] sm:$0xff] }
 0x494   :  { %3298 = vmatmul.mubr.f32.vlgmr.msra.gmra.mxu1 %v4762_v33  ;;  %3851 = vmatpush3.msra.mxu0 %v2097_v12  ;;  %v2152_v33 = vld [vmem:[#allocation15 + $0x930] sm:$0xff]  ;;  %v2442_v12 = vld [vmem:[#allocation15 + $0x1240] sm:$0xff] }
 0x495   :  { %3227 = vmatprep.mubr.f32.mxu0 %v4746_v59  ;;  %3852 = vmatprep.subr.mxu0 %v2172_v43  ;;  %v2147_v59 = vld [vmem:[#allocation15 + $0x908] sm:$0xff]  ;;  %v2362_v43 = vld [vmem:[#allocation15 + $0xfc0] sm:$0xff] }
 0x496   :  { %3853 = vmatpush3.msra.mxu0 %v2092_v14  ;;  %4139 = vmatprep.subr.mxu1 %v4477_v0  ;;  %v2437_v14 = vld [vmem:[#allocation15 + $0x1218] sm:$0xff] }
 0x497   :  { %3854 = vmatprep.subr.mxu0 %v2167_v15  ;;  %4171 = vmatprep.mubr.msk.f32.mxu1 %vm4478_vm0, %v4477_v0  ;;  %v4799_v15 = vpop.f32.mrf.mxu1 }
 0x498   :  { %3855 = vmatpush3.msra.mxu0 %v2087_v16  ;;  %v2662_v16 = vpop.f32.mrf.mxu0 }
 0x499   :  { %3856 = vmatprep.subr.mxu0 %v2162_v32  ;;  %v2357_v32 = vld [vmem:[#allocation15 + $0xf98] sm:$0xff] }
 0x49a   :  { %3857 = vmatpush3.msra.mxu0 %v2082_v17  ;;  %v2592_v17 = vadd.f32 %v2591_v9, %v2503_v11 }
 0x49b   :  { %3858 = vmatprep.subr.mxu0 %v2157_v18  ;;  %v2432_v18 = vld [vmem:[#allocation15 + $0x11f0] sm:$0xff] }
 0x49c   :  { %3859 = vmatpush3.msra.mxu0 %v2077_v44  ;;  %v2733_v44 = vpop.f32.mrf.mxu1 }
 0x49d   :  { %3860 = vmatprep.subr.mxu0 %v2152_v33  ;;  %v2352_v33 = vld [vmem:[#allocation15 + $0xf70] sm:$0xff] }
 0x49e   :  { %3861 = vmatpush3.msra.mxu0 %v2072_v21  ;;  %v2663_v21 = vadd.f32 %v2662_v16, %v2592_v17 }
 0x49f   :  { %3862 = vmatprep.subr.mxu0 %v2147_v59  ;;  %v4801_v59 = vpop.f32.mrf.mxu0 }
 0x4a0   :  { %3863 = vmatpush3.msra.mxu0 %v2067_v22  ;;  %v2347_v22 = vld [vmem:[#allocation15 + $0xf48] sm:$0xff] }
 0x4a1   :  { %3864 = vmatprep.subr.mxu0 %v2142_v23  ;;  %v2734_v23 = vadd.f32 %v2733_v44, %v2663_v21 }
 0x4a2   :  { %3865 = vmatpush3.msra.mxu0 %v2062_v24  ;;  %v2422_v24 = vld [vmem:[#allocation15 + $0x11a0] sm:$0xff] }
 0x4a3   :  { %3866 = vmatprep.subr.mxu0 %v2137_v25  ;;  %v2342_v25 = vld [vmem:[#allocation15 + $0xf20] sm:$0xff] }
 0x4a4   :  { %3867 = vmatpush3.msra.mxu0 %v2057_v26 }
 0x4a5   :  { %3868 = vmatprep.subr.mxu0 %v2132_v27 }
 0x4a6   :  { %3869 = vmatpush3.msra.mxu0 %v2052_v30 }
 0x4a7   :  { %3870 = vmatprep.subr.mxu0 %v2127_v31  ;;  %v3443_v31 = vld [vmem:[#allocation18 + $0x78] sm:$0xff] }
 0x4a8   :  { %3871 = vmatpush3.msra.mxu0 %v2047_v13  ;;  %v3442_v13 = vld [vmem:[#allocation18 + $0x70] sm:$0xff]  ;;  %4140 = vmatpush3.msra.mxu1 %v3443_v31 }
 0x4a9   :  { %3872 = vmatprep.subr.mxu0 %v2122_v42  ;;  %4141 = vmatprep.subr.mxu1 %v4477_v0  ;;  %v3441_v42 = vld [vmem:[#allocation18 + $0x68] sm:$0xff] }
 0x4aa   :  { %3873 = vmatpush3.msra.mxu0 %v2042_v34  ;;  %4142 = vmatpush3.msra.mxu1 %v3442_v13  ;;  %v3440_v34 = vld [vmem:[#allocation18 + $0x60] sm:$0xff] }
 0x4ab   :  { %3874 = vmatprep.subr.mxu0 %v2117_v35  ;;  %4143 = vmatprep.subr.mxu1 %v4477_v0  ;;  %v3439_v35 = vld [vmem:[#allocation18 + $0x58] sm:$0xff] }
 0x4ac   :  { %3875 = vmatpush3.msra.mxu0 %v2037_v45  ;;  %4144 = vmatpush3.msra.mxu1 %v3441_v42 }
 0x4ad   :  { %3876 = vmatprep.subr.mxu0 %v2112_v36  ;;  %4145 = vmatprep.subr.mxu1 %v4477_v0 }
 0x4ae   :  { %3877 = vmatpush3.msra.mxu0 %v2032_v37  ;;  %4146 = vmatpush3.msra.mxu1 %v3440_v34 }
 0x4af   :  { %3878 = vmatprep.subr.mxu0 %v2107_v38  ;;  %4147 = vmatprep.subr.mxu1 %v4477_v0 }
 0x4b0   :  { %3879 = vmatpush3.msra.mxu0 %v2027_v39  ;;  %4148 = vmatpush3.msra.mxu1 %v3439_v35  ;;  %v3438_v39 = vld [vmem:[#allocation18 + $0x50] sm:$0xff] }
 0x4b1   :  { %3880 = vmatprep.subr.mxu0 %v2102_v40  ;;  %4149 = vmatprep.subr.mxu1 %v4477_v0  ;;  %v3437_v40 = vld [vmem:[#allocation18 + $0x48] sm:$0xff] }
 0x4b2   :  { %3881 = vmatpush3.msra.mxu0 %v2022_v20  ;;  %4150 = vmatpush3.msra.mxu1 %v3438_v39  ;;  %v3436_v20 = vld [vmem:[#allocation18 + $0x40] sm:$0xff]  ;;  %v3565_v39 = vld [vmem:[#allocation21 + $0xf0] sm:$0xff] }
 0x4b3   :  { %3228 = vmatmul.mubr.f32.vlgmr.msra.gmra.mxu0 %v4748_v61  ;;  %3920 = vmatprep.subr.mxu0 %v2497_v41  ;;  %v2392_v61 = vld [vmem:[#allocation15 + $0x10b0] sm:$0xff]  ;;  %v3435_v41 = vld [vmem:[#allocation18 + $0x38] sm:$0xff] }
 0x4b4   :  { %3921 = vmatpush3.msra.mxu0 %v2417_v46  ;;  %3367 = vmatprep.mubr.f32.mxu0 %v4771_v2  ;;  %v2462_v2 = vld [vmem:[#allocation15 + $0x12e0] sm:$0xff]  ;;  %v2735_v46 = vpop.f32.mrf.mxu1 }
 0x4b5   :  { %3922 = vmatprep.subr.mxu0 %v2492_v7  ;;  %4151 = vmatprep.subr.mxu1 %v4477_v0  ;;  %v3434_v7 = vld [vmem:[#allocation18 + $0x30] sm:$0xff] }
 0x4b6   :  { %3923 = vmatpush3.msra.mxu0 %v2412_v48  ;;  %4152 = vmatpush3.msra.mxu1 %v3437_v40  ;;  %v3549_v40 = vld [vmem:[#allocation21 + $0x70] sm:$0xff] }
 0x4b7   :  { %3924 = vmatprep.subr.mxu0 %v2487_v49  ;;  %4153 = vmatprep.subr.mxu1 %v4477_v0 }
 0x4b8   :  { %3925 = vmatpush3.msra.mxu0 %v2407_v50  ;;  %4154 = vmatpush3.msra.mxu1 %v3436_v20  ;;  %v3433_v50 = vld [vmem:[#allocation18 + $0x28] sm:$0xff] }
 0x4b9   :  { %3926 = vmatprep.subr.mxu0 %v2482_v51  ;;  %4155 = vmatprep.subr.mxu1 %v4477_v0  ;;  %v3564_v20 = vld [vmem:[#allocation21 + $0xe8] sm:$0xff] }
 0x4ba   :  { %3927 = vmatpush3.msra.mxu0 %v2402_v53  ;;  %4156 = vmatpush3.msra.mxu1 %v3435_v41  ;;  %v3432_v53 = vld [vmem:[#allocation18 + $0x20] sm:$0xff]  ;;  %v3548_v41 = vld [vmem:[#allocation21 + $0x68] sm:$0xff] }
 0x4bb   :  { %3928 = vmatprep.subr.mxu0 %v2477_v54  ;;  %4157 = vmatprep.subr.mxu1 %v4477_v0 }
 0x4bc   :  { %3929 = vmatpush3.msra.mxu0 %v2397_v55  ;;  %4158 = vmatpush3.msra.mxu1 %v3434_v7  ;;  %v3431_v55 = vld [vmem:[#allocation18 + $0x18] sm:$0xff]  ;;  %v3547_v7 = vld [vmem:[#allocation21 + $0x60] sm:$0xff] }
 0x4bd   :  { %3930 = vmatprep.subr.mxu0 %v2472_v56  ;;  %4159 = vmatprep.subr.mxu1 %v4477_v0 }
 0x4be   :  { %3931 = vmatpush3.msra.mxu0 %v2392_v61  ;;  %4160 = vmatpush3.msra.mxu1 %v3433_v50 }
 0x4bf   :  { %3932 = vmatprep.subr.mxu0 %v2467_v57  ;;  %4161 = vmatprep.subr.mxu1 %v4477_v0  ;;  %v3430_v57 = vld [vmem:[#allocation18 + $0x10] sm:$0xff] }
 0x4c0   :  { %3933 = vmatpush3.msra.mxu0 %v2387_v58  ;;  %4162 = vmatpush3.msra.mxu1 %v3432_v53 }
 0x4c1   :  { %3934 = vmatprep.subr.mxu0 %v2462_v2  ;;  %4163 = vmatprep.subr.mxu1 %v4477_v0  ;;  %v2511_v2 = vrot.slane %v4794_v4, %v1230_v19  ;;  %v2515_v19 = vrot.slane %v4794_v4, %v1234_v47 }
 0x4c2   :  { %3935 = vmatpush3.msra.mxu0 %v2382_v60  ;;  %4164 = vmatpush3.msra.mxu1 %v3431_v55  ;;  %v3429_v60 = vld [vmem:[#allocation18 + $0x8] sm:$0xff] }
 0x4c3   :  { %3936 = vmatprep.subr.mxu0 %v2457_v29  ;;  %4165 = vmatprep.subr.mxu1 %v4477_v0 }
 0x4c4   :  { %3937 = vmatpush3.msra.mxu0 %v2377_v62  ;;  %4166 = vmatpush3.msra.mxu1 %v3430_v57  ;;  %v3428_v62 = vld [vmem:[#allocation18] sm:$0xff]  ;;  %v3581_v57 = vld [vmem:[#allocation21 + $0x170] sm:$0xff] }
 0x4c5   :  { %3938 = vmatprep.subr.mxu0 %v2452_v3  ;;  %4167 = vmatprep.subr.mxu1 %v4477_v0  ;;  %v2507_v3 = vrot.slane %v4794_v4, %v1226_v63 }
 0x4c6   :  { %3939 = vmatpush3.msra.mxu0 %v2372_v6  ;;  %4168 = vmatpush3.msra.mxu1 %v3429_v60  ;;  %v3595_v60 = vld [vmem:[#allocation21 + $0x1e0] sm:$0xff] }
 0x4c7   :  { %3940 = vmatprep.subr.mxu0 %v2447_v8  ;;  %4169 = vmatprep.subr.mxu1 %v4477_v0 }
 0x4c8   :  { %3941 = vmatpush3.msra.mxu0 %v2367_v10  ;;  %4170 = vmatpush3.msra.mxu1 %v3428_v62 }
 0x4c9   :  { %3942 = vmatprep.subr.mxu0 %v2442_v12  ;;  %v2594_v12 = vadd.f32 %v4799_v15, %v2507_v3 }
 0x4ca   :  { %3943 = vmatpush3.msra.mxu0 %v2362_v43 }
 0x4cb   :  { %3944 = vmatprep.subr.mxu0 %v2437_v14  ;;  %v2665_v16 = vadd.f32 %v4801_v59, %v2594_v12 }
 0x4cc   :  { %3945 = vmatpush3.msra.mxu0 %v2357_v32 }
 0x4cd   :  { %3946 = vmatprep.subr.mxu0 %v2432_v18  ;;  %v2519_v18 = vrot.slane %v4794_v4, %v1238_v52 }
 0x4ce   :  { %3947 = vmatpush3.msra.mxu0 %v2352_v33  ;;  %v2875_v48 = vpop.f32.mrf.mxu1  ;;  %v2736_v33 = vadd.f32 %v2735_v46, %v2665_v16  ;;  %v3563_v46 = vld [vmem:[#allocation21 + $0xe0] sm:$0xff] }
 0x4cf   :  { %3948 = vmatprep.subr.mxu0 %v2427_v1  ;;  %v2804_v26 = vpop.f32.mrf.mxu0  ;;  %v2876_v9 = vadd.f32 %v2875_v48, %v2511_v2  ;;  %v3562_v48 = vld [vmem:[#allocation21 + $0xd8] sm:$0xff]  ;;  %v3580_v2 = vld [vmem:[#allocation21 + $0x168] sm:$0xff] }
 0x4d0   :  { %3949 = vmatpush3.msra.mxu0 %v2347_v22  ;;  %v2805_v27 = vadd.f32 %v2804_v26, %v2734_v23  ;;  %v2877_v54 = vpop.f32.mrf.mxu1 }
 0x4d1   :  { %3950 = vmatprep.subr.mxu0 %v2422_v24  ;;  %v2806_v49 = vpop.f32.mrf.mxu0  ;;  %v2878_v14 = vadd.f32 %v2877_v54, %v2515_v19 }
 0x4d2   :  { %3951 = vmatpush3.msra.mxu0 %v2342_v25  ;;  %v3374_v30 = vsel %vm3373_vm4, %v2805_v27, 0.0  ;;  %v4841_v1 = vadd.f32 %v2806_v49, %v2736_v33  ;;  %v3578_v33 = vld [vmem:[#allocation21 + $0x158] sm:$0xff] }
 0x4d3   :  { %3368 = vmatmul.mubr.f32.vlgmr.msra.gmra.mxu0 %v4773_v5  ;;  %3375 = vadd.xlane.f32.xlu0 %v3374_v30 }
 0x4d4   :  { %v3389_v28 = vsel %vm3373_vm4, %v4841_v1, 0.0 }
 0x510   :  { %v2946_v51 = vpop.f32.mrf.mxu0  ;;  %v3017_v56 = vpop.f32.mrf.mxu1 }
 0x511   :  { %v2947_v11 = vadd.f32 %v2946_v51, %v2876_v9 }
 0x512   :  { %v2948_v61 = vpop.f32.mrf.mxu0  ;;  %v3019_v29 = vpop.f32.mrf.mxu1 }
 0x513   :  { %v3018_v32 = vadd.f32 %v3017_v56, %v2947_v11  ;;  %v2949_v17 = vadd.f32 %v2948_v61, %v2878_v14  ;;  %v3582_v56 = vld [vmem:[#allocation21 + $0x178] sm:$0xff]  ;;  %v3597_v61 = vld [vmem:[#allocation21 + $0x1f0] sm:$0xff] }
 0x515   :  { %v3020_v15 = vadd.f32 %v3019_v29, %v2949_v17  ;;  %v3579_v29 = vld [vmem:[#allocation21 + $0x160] sm:$0xff] }
 0x532   :  { %v3847_v6 = vpop.f32.mrf.mxu1 }
 0x534   :  { %v3848_v43 = vpop.f32.mrf.mxu1 }
 0x535   :  { %v3849_v44 = vadd.f32 %v3848_v43, %v3847_v6 }
 0x537   :  { %v3160_v22 = vadd.f32 %v3849_v44, %v2519_v18  ;;  %v3594_v44 = vld [vmem:[#allocation21 + $0x1d8] sm:$0xff] }
 0x553   :  { %v3088_v58 = vpop.f32.mrf.mxu0 }
 0x554   :  { %v3917_v47 = vpop.f32.mrf.mxu1  ;;  %v4839_v0 = vadd.f32 %v3088_v58, %v3018_v32  ;;  %v3596_v58 = vld [vmem:[#allocation21 + $0x1e8] sm:$0xff] }
 0x555   :  { %v3090_v8 = vpop.f32.mrf.mxu0 }
 0x556   :  { %v3918_v23 = vpop.f32.mrf.mxu1  ;;  %v3390_v59 = vsel %vm3373_vm4, %v4839_v0, 0.0  ;;  %v3091_v24 = vadd.f32 %v3090_v8, %v3020_v15  ;;  %v3577_v15 = vld [vmem:[#allocation21 + $0x150] sm:$0xff] }
 0x557   :  { %v3919_v52 = vadd.f32 %v3918_v23, %v3917_v47  ;;  %v3391_v4 = vadd.f32 %v3390_v59, %v3389_v28  ;;  %v3546_v47 = vld [vmem:[#allocation21 + $0x58] sm:$0xff]  ;;  %v3592_v23 = vld [vmem:[#allocation21 + $0x1c8] sm:$0xff]  ;;  %v3543_v28 = vld [vmem:[#allocation21 + $0x40] sm:$0xff] }
 0x558   :  { %v3392_v30 = vsel %vm3373_vm4, %v3091_v24, 0.0  ;;  %v3544_v59 = vld [vmem:[#allocation21 + $0x48] sm:$0xff] }
 0x559   :  { %v3393_v34 = vadd.f32 %v3392_v30, %v3391_v4  ;;  %v3558_v4 = vld [vmem:[#allocation21 + $0xb8] sm:$0xff] }
 0x55a   :  { %v3542_v30 = vld [vmem:[#allocation21 + $0x38] sm:$0xff] }
 0x55c   :  { %v3376_v5 = vpop.xlane.xlu0 %3375 }
 0x55d   :  { %v3378_v45 = vmul.f32 0.0078125, %v3376_v5 }
 0x55f   :  { %v4810_v36 = vsub.f32 %v2805_v27, %v3378_v45  ;;  %v3566_v45 = vld [vmem:[#allocation21 + $0xf8] sm:$0xff] }
 0x560   :  { %3972 = vmatprep.subr.mxu0 %v3566_v45  ;;  %v3588_v45 = vld [vmem:[#allocation21 + $0x1a8] sm:$0xff] }
 0x561   :  { %v3380_v37 = vmul.f32 %v4810_v36, %v4810_v36 }
 0x563   :  { %v3381_v38 = vsel %vm3373_vm4, %v3380_v37, 0.0  ;;  %v3598_v37 = vld [vmem:[#allocation21 + $0x1f8] sm:$0xff] }
 0x564   :  { %3382 = vadd.xlane.f32.xlu0 %v3381_v38  ;;  %v3550_v38 = vld [vmem:[#allocation21 + $0x78] sm:$0xff]  ;;  %4007 = vmatprep.subr.mxu1 %v3598_v37  ;;  %v3540_v37 = vld [vmem:[#allocation21 + $0x28] sm:$0xff] }
 0x565   :  { %3973 = vmatpush3.msra.mxu0 %v3550_v38  ;;  %v3572_v38 = vld [vmem:[#allocation21 + $0x128] sm:$0xff] }
 0x566   :  { %3974 = vmatprep.subr.mxu0 %v3565_v39  ;;  %v3555_v39 = vld [vmem:[#allocation21 + $0xa0] sm:$0xff] }
 0x567   :  { %3975 = vmatpush3.msra.mxu0 %v3549_v40  ;;  %v3587_v40 = vld [vmem:[#allocation21 + $0x1a0] sm:$0xff] }
 0x568   :  { %3976 = vmatprep.subr.mxu0 %v3564_v20  ;;  %v3539_v20 = vld [vmem:[#allocation21 + $0x20] sm:$0xff] }
 0x569   :  { %3977 = vmatpush3.msra.mxu0 %v3548_v41  ;;  %v3571_v41 = vld [vmem:[#allocation21 + $0x120] sm:$0xff] }
 0x56a   :  { %3978 = vmatprep.subr.mxu0 %v3563_v46  ;;  %v3554_v46 = vld [vmem:[#allocation21 + $0x98] sm:$0xff] }
 0x56b   :  { %3979 = vmatpush3.msra.mxu0 %v3547_v7  ;;  %v3586_v7 = vld [vmem:[#allocation21 + $0x198] sm:$0xff] }
 0x56c   :  { %3980 = vmatprep.subr.mxu0 %v3562_v48  ;;  %v3538_v48 = vld [vmem:[#allocation21 + $0x18] sm:$0xff] }
 0x56d   :  { %3981 = vmatpush3.msra.mxu0 %v3546_v47 }
 0x573   :  { %v3882_v10 = vpop.f32.mrf.mxu0 }
 0x575   :  { %v3883_v63 = vpop.f32.mrf.mxu0 }
 0x576   :  { %v3884_v21 = vadd.f32 %v3883_v63, %v3882_v10 }
 0x578   :  { %v3230_v25 = vadd.f32 %v3884_v21, %v3160_v22  ;;  %v3593_v21 = vld [vmem:[#allocation21 + $0x1d0] sm:$0xff]  ;;  %v3560_v22 = vld [vmem:[#allocation21 + $0xc8] sm:$0xff] }
 0x57a   :  { %v3300_v31 = vadd.f32 %v3919_v52, %v3230_v25  ;;  %v3559_v25 = vld [vmem:[#allocation21 + $0xc0] sm:$0xff] }
 0x57b   :  { %v3575_v52 = vld [vmem:[#allocation21 + $0x140] sm:$0xff] }
 0x593   :  { %v3952_v26 = vpop.f32.mrf.mxu0 }
 0x595   :  { %v3953_v27 = vpop.f32.mrf.mxu0 }
 0x596   :  { %v3954_v13 = vadd.f32 %v3953_v27, %v3952_v26  ;;  %v3591_v26 = vld [vmem:[#allocation21 + $0x1c0] sm:$0xff]  ;;  %v3590_v27 = vld [vmem:[#allocation21 + $0x1b8] sm:$0xff] }
 0x598   :  { %v3370_v42 = vadd.f32 %v3954_v13, %v3300_v31  ;;  %v3574_v31 = vld [vmem:[#allocation21 + $0x138] sm:$0xff]  ;;  %v3557_v13 = vld [vmem:[#allocation21 + $0xb0] sm:$0xff] }
 0x59a   :  { %v3394_v35 = vsel %vm3373_vm4, %v3370_v42, 0.0 }
 0x59b   :  { %v3395_v5 = vadd.f32 %v3394_v35, %v3393_v34  ;;  %v3541_v34 = vld [vmem:[#allocation21 + $0x30] sm:$0xff] }
 0x59c   :  { %v3573_v35 = vld [vmem:[#allocation21 + $0x130] sm:$0xff] }
 0x59d   :  { %3396 = vadd.xlane.f32.xlu1 %v3395_v5  ;;  %v3556_v5 = vld [vmem:[#allocation21 + $0xa8] sm:$0xff] }
 0x5ed   :  { %v3383_v49 = vpop.xlane.xlu0 %3382 }
 0x5ee   :  { %v3384_v50 = vmul.f32 0.0078125, %v3383_v49  ;;  %v3570_v49 = vld [vmem:[#allocation21 + $0x118] sm:$0xff] }
 0x5f0   :  { %v3385_v51 = vadd.f32 1e-05, %v3384_v50  ;;  %v3553_v50 = vld [vmem:[#allocation21 + $0x90] sm:$0xff] }
 0x5f2   :  { %4196 = vrsqrt.f32 %v3385_v51  ;;  %v3585_v51 = vld [vmem:[#allocation21 + $0x190] sm:$0xff] }
 0x5ff   :  { %v4197_v53 = vpop.eup %4196 }
 0x600   :  { %v3387_v54 = vmul.f32 %v4197_v53, %v4810_v36  ;;  %v3537_v53 = vld [vmem:[#allocation21 + $0x10] sm:$0xff] }
 0x602   :  { %v3388_v55 = vmax.f32 %v3387_v54, 0.0  ;;  %v3569_v54 = vld [vmem:[#allocation21 + $0x110] sm:$0xff] }
 0x604   :  { %4172 = vmatmul.mubr.f32.vlgmr.msra.gmra.mxu1 %v3388_v55  ;;  %v3552_v55 = vld [vmem:[#allocation21 + $0x88] sm:$0xff] }
 0x605   :  { %4008 = vmatpush3.msra.mxu1 %v3582_v56  ;;  %v3584_v56 = vld [vmem:[#allocation21 + $0x188] sm:$0xff] }
 0x606   :  { %4009 = vmatprep.subr.mxu1 %v3597_v61  ;;  %v3536_v61 = vld [vmem:[#allocation21 + $0x8] sm:$0xff] }
 0x607   :  { %4010 = vmatpush3.msra.mxu1 %v3581_v57  ;;  %v3568_v57 = vld [vmem:[#allocation21 + $0x108] sm:$0xff] }
 0x608   :  { %4011 = vmatprep.subr.mxu1 %v3596_v58  ;;  %v3551_v58 = vld [vmem:[#allocation21 + $0x80] sm:$0xff] }
 0x609   :  { %4012 = vmatpush3.msra.mxu1 %v3580_v2  ;;  %v3583_v2 = vld [vmem:[#allocation21 + $0x180] sm:$0xff] }
 0x60a   :  { %4013 = vmatprep.subr.mxu1 %v3595_v60  ;;  %v3535_v60 = vld [vmem:[#allocation21] sm:$0xff] }
 0x60b   :  { %4014 = vmatpush3.msra.mxu1 %v3579_v29  ;;  %v3567_v29 = vld [vmem:[#allocation21 + $0x100] sm:$0xff] }
 0x60c   :  { %4015 = vmatprep.subr.mxu1 %v3594_v44 }
 0x60d   :  { %4016 = vmatpush3.msra.mxu1 %v3578_v33 }
 0x60e   :  { %4017 = vmatprep.subr.mxu1 %v3593_v21 }
 0x60f   :  { %4018 = vmatpush3.msra.mxu1 %v3577_v15 }
 0x610   :  { %4019 = vmatprep.subr.mxu1 %v3592_v23  ;;  %v3769_v23 = vld [vmem:[#allocation22] ss:$0 sm:$0xff] }
 0x626   :  { %v3397_v62 = vpop.xlane.xlu1 %3396 }
 0x627   :  { %v3399_v3 = vmul.f32 0.001953125, %v3397_v62 }
 0x629   :  { %v4851_v36 = vsub.f32 %v4841_v1, %v3399_v3  ;;  %v4854_v6 = vsub.f32 %v4839_v0, %v3399_v3  ;;  %v4856_v8 = vsub.f32 %v3091_v24, %v3399_v3  ;;  %v4858_v9 = vsub.f32 %v3370_v42, %v3399_v3  ;;  %v3561_v0 = vld [vmem:[#allocation21 + $0xd0] sm:$0xff]  ;;  %v3576_v24 = vld [vmem:[#allocation21 + $0x148] sm:$0xff] }
 0x62a   :  { %3982 = vmatprep.subr.mxu0 %v3561_v0  ;;  %v3545_v1 = vld [vmem:[#allocation21 + $0x50] sm:$0xff]  ;;  %4020 = vmatpush3.msra.mxu1 %v3576_v24 }
 0x62b   :  { %v3404_v19 = vmul.f32 %v4851_v36, %v4851_v36  ;;  %v3405_v10 = vmul.f32 %v4854_v6, %v4854_v6  ;;  %v3406_v11 = vmul.f32 %v4856_v8, %v4856_v8  ;;  %v3407_v12 = vmul.f32 %v4858_v9, %v4858_v9  ;;  %3983 = vmatpush3.msra.mxu0 %v3545_v1  ;;  %v3589_v42 = vld [vmem:[#allocation21 + $0x1b0] sm:$0xff] }
 0x62c   :  { %3984 = vmatprep.subr.mxu0 %v3560_v22  ;;  %4021 = vmatprep.subr.mxu1 %v3591_v26 }
 0x62d   :  { %v3408_v43 = vsel %vm3373_vm4, %v3404_v19, 0.0  ;;  %v3409_v14 = vsel %vm3373_vm4, %v3405_v10, 0.0  ;;  %v3411_v63 = vsel %vm3373_vm4, %v3406_v11, 0.0  ;;  %v3413_v17 = vsel %vm3373_vm4, %v3407_v12, 0.0  ;;  %3985 = vmatpush3.msra.mxu0 %v3544_v59  ;;  %4022 = vmatpush3.msra.mxu1 %v3575_v52  ;;  %v3768_v10 = vld [vmem:[#allocation19] ss:$0 sm:$0xff] }
 0x62e   :  { %v3410_v16 = vadd.f32 %v3409_v14, %v3408_v43  ;;  %3986 = vmatprep.subr.mxu0 %v3559_v25  ;;  %4023 = vmatprep.subr.mxu1 %v3590_v27 }
 0x62f   :  { %3987 = vmatpush3.msra.mxu0 %v3543_v28  ;;  %4024 = vmatpush3.msra.mxu1 %v3574_v31 }
 0x630   :  { %v3412_v32 = vadd.f32 %v3411_v63, %v3410_v16  ;;  %3988 = vmatprep.subr.mxu0 %v3558_v4  ;;  %4025 = vmatprep.subr.mxu1 %v3589_v42 }
 0x631   :  { %3989 = vmatpush3.msra.mxu0 %v3542_v30  ;;  %4026 = vmatpush3.msra.mxu1 %v3573_v35 }
 0x632   :  { %v3414_v18 = vadd.f32 %v3413_v17, %v3412_v32  ;;  %3990 = vmatprep.subr.mxu0 %v3557_v13  ;;  %4027 = vmatprep.subr.mxu1 %v3588_v45 }
 0x633   :  { %3991 = vmatpush3.msra.mxu0 %v3541_v34  ;;  %4028 = vmatpush3.msra.mxu1 %v3572_v38 }
 0x634   :  { %3415 = vadd.xlane.f32.xlu1 %v3414_v18  ;;  %3992 = vmatprep.subr.mxu0 %v3556_v5 }
 0x635   :  { %3993 = vmatpush3.msra.mxu0 %v3540_v37  ;;  %4029 = vmatprep.subr.mxu1 %v3587_v40 }
 0x636   :  { %3994 = vmatprep.subr.mxu0 %v3555_v39  ;;  %4030 = vmatpush3.msra.mxu1 %v3571_v41 }
 0x637   :  { %3995 = vmatpush3.msra.mxu0 %v3539_v20  ;;  %4031 = vmatprep.subr.mxu1 %v3586_v7 }
 0x638   :  { %3996 = vmatprep.subr.mxu0 %v3554_v46  ;;  %4032 = vmatpush3.msra.mxu1 %v3570_v49 }
 0x639   :  { %3997 = vmatpush3.msra.mxu0 %v3538_v48  ;;  %4033 = vmatprep.subr.mxu1 %v3585_v51 }
 0x63a   :  { %3998 = vmatprep.subr.mxu0 %v3553_v50  ;;  %4034 = vmatpush3.msra.mxu1 %v3569_v54 }
 0x63b   :  { %3999 = vmatpush3.msra.mxu0 %v3537_v53  ;;  %4035 = vmatprep.subr.mxu1 %v3584_v56 }
 0x63c   :  { %4000 = vmatprep.subr.mxu0 %v3552_v55  ;;  %4036 = vmatpush3.msra.mxu1 %v3568_v57 }
 0x63d   :  { %4001 = vmatpush3.msra.mxu0 %v3536_v61  ;;  %4037 = vmatprep.subr.mxu1 %v3583_v2 }
 0x63e   :  { %4002 = vmatprep.subr.mxu0 %v3551_v58  ;;  %4038 = vmatpush3.msra.mxu1 %v3567_v29 }
 0x63f   :  { %4003 = vmatpush3.msra.mxu0 %v3535_v60 }
 0x6bd   :  { %v3416_v62 = vpop.xlane.xlu1 %3415 }
 0x6be   :  { %v3417_v3 = vmul.f32 0.001953125, %v3416_v62 }
 0x6c0   :  { %v3418_v19 = vadd.f32 1e-05, %v3417_v3 }
 0x6c2   :  { %4198 = vrsqrt.f32 %v3418_v19 }
 0x6c4   :  { %v3517_v11 = vpop.f32.mrf.mxu1 }
 0x6c5   :  { %v3518_v12 = vadd.f32 %v3768_v10, %v3517_v11 }
 0x6c6   :  { %v4173_v43 = vpop.f32.mrf.mxu1 }
 0x6c7   :  { %v3521_v14 = vsel %vm3373_vm4, %v3518_v12, -inf }
 0x6c8   :  { %3522 = vmax.xlane.f32.xlu0 %v3521_v14 }
 0x6cf   :  { %v4199_v16 = vpop.eup %4198 }
 0x6d0   :  { %v3421_v63 = vmul.f32 %v4199_v16, %v4854_v6  ;;  %v3423_v32 = vmul.f32 %v4199_v16, %v4858_v9  ;;  %v3420_v17 = vmul.f32 %v4199_v16, %v4851_v36  ;;  %v3422_v18 = vmul.f32 %v4199_v16, %v4856_v8 }
 0x6d2   :  { %v3425_v44 = vmax.f32 %v3421_v63, 0.0  ;;  %v3427_v47 = vmax.f32 %v3423_v32, 0.0  ;;  %v3424_v33 = vmax.f32 %v3420_v17, 0.0  ;;  %v3426_v0 = vmax.f32 %v3422_v18, 0.0 }
 0x6d4   :  { %3670 = vmatprep.mubr.f32.mxu0 %v3425_v44  ;;  %3740 = vmatprep.mubr.f32.mxu1 %v3427_v47 }
 0x6d5   :  { %3671 = vmatmul.mubr.f32.vlgmr.msra.gmra.mxu0 %v3424_v33  ;;  %3741 = vmatmul.mubr.f32.vlgmr.msra.gmra.mxu1 %v3426_v0 }
 0x751   :  { %v3523_v21 = vpop.xlane.xlu0 %3522 }
 0x752   :  { %v3524_v1 = vsub.f32 %v3518_v12, %v3523_v21 }
 0x754   :  { %v3525_v15 = vmul.f32 1.442695, %v3524_v1 }
 0x756   :  { %4200 = vpow2.f32 %v3525_v15 }
 0x763   :  { %v4201_v22 = vpop.eup %4200 }
 0x764   :  { %v3527_v6 = vsel %vm3373_vm4, %v4201_v22, 0.0 }
 0x765   :  { %3528 = vadd.xlane.f32.xlu1 %v3527_v6 }
 0x795   :  { %v4004_v9 = vpop.f32.mrf.mxu0  ;;  %v4039_v36 = vpop.f32.mrf.mxu1 }
 0x797   :  { %v4005_v8 = vpop.f32.mrf.mxu0  ;;  %v4040_v59 = vpop.f32.mrf.mxu1 }
 0x798   :  { %v4006_v24 = vadd.f32 %v4005_v8, %v4004_v9  ;;  %v4041_v26 = vadd.f32 %v4040_v59, %v4039_v36 }
 0x79a   :  { %v3673_v25 = vadd.f32 %v4006_v24, %v3769_v23 }
 0x79c   :  { %v3743_v28 = vadd.f32 %v4041_v26, %v3673_v25 }
 0x79e   :  { %3746 = vst [vmem:[%s4897_s13 + $0x2] sm:$0x3] %v3743_v28 }
 0x7ee   :  { %v3529_v52 = vpop.xlane.xlu1 %3528 }
 0x7ef   :  { %4202 = vlog2.f32 %v3529_v52 }
 0x7fc   :  { %v4203_v4 = vpop.eup %4202 }
 0x7fd   :  { %v3531_v27 = vmul.f32 0.6931472, %v4203_v4 }
 0x7ff   :  { %v3532_v30 = vadd.f32 %v3531_v27, %v3523_v21 }
 0x801   :  { %v3533_v31 = vsub.f32 %v3518_v12, %v3532_v30 }
 0x803   :  { %3534 = vst [vmem:[%s4897_s13] sm:$0x3] %v3533_v31 }
 0x804   :  { %3751 = vsyncpa [#allocation6], 1 }
 0x805   :  { %3752 = vsyncpa [#allocation8], 1 }
 0x806   :  { %3753 = vsyncpa [#allocation11], 1 }
 0x807   :  { %3754 = vsyncpa [#allocation14], 1 }
 0x808   :  { %3755 = vsyncpa [#allocation17], 1 }
 0x809   :  { %3756 = vsyncpa [#allocation20], 1 }
 0x80a   :  { %3757 = vsyncpa [#allocation23], 1 }

</bundles_post_ra>
